<compile_context>
chip_gen: v5e
topology: v5e:2x2
jax: 0.10.0
libtpu: 0.0.40
codegen_flags: <defaults>
</compile_context>

<pallas_src>
import functools

import jax
import jax.numpy as jnp
from jax.experimental import pallas as pl
from jax.experimental.pallas import tpu as pltpu


def _fused_feature_kernel(xp_ref, wconv_ref, bconv_ref, whead_ref, bhead_ref,
                          o_ref, *, h, w, k, cin, cout, d, bb):
    """Fused conv(kxk, SAME) + bias + ReLU -> global avg pool -> linear head.

    xp_ref   : [bb, h+2p, w+2p, cin]  zero-padded NHWC tile (bb batch elements)
    wconv_ref: [k, k, cin, cout]      HWIO conv weight
    bconv_ref: [1, cout]
    whead_ref: [cout, d]
    bhead_ref: [1, d]
    o_ref    : [bb, d]
    """
    xp = xp_ref[...]                  # [bb, hp, wp, cin]
    wconv = wconv_ref[...]            # [k, k, cin, cout]
    hw = h * w
    m = bb * hw

    # Conv as k*k accumulated matmuls over shifted windows (all in VMEM/vregs,
    # no materialized im2col tensor).  Static Python unroll -> full LLO
    # scheduler visibility; MXU pushes pipeline across taps.
    acc = jnp.zeros((m, cout), jnp.float32)
    for di in range(k):
        for dj in range(k):
            window = xp[:, di:di + h, dj:dj + w, :].reshape(m, cin)
            acc = acc + jnp.dot(window, wconv[di, dj],
                                preferred_element_type=jnp.float32)

    y = jnp.maximum(acc + bconv_ref[...], 0.0)            # bias + ReLU [m, cout]
    pooled = jnp.mean(y.reshape(bb, hw, cout), axis=1)    # global avg  [bb, cout]
    out = jnp.dot(pooled, whead_ref[...],
                  preferred_element_type=jnp.float32) + bhead_ref[...]  # [bb, d]
    o_ref[...] = out.astype(o_ref.dtype)


def feature_extractor_forward(x_nchw, params):
    """x_nchw: [N, Cin, H, W] float32 (PyTorch layout).  Returns [N, D]."""
    n, cin, h, w = x_nchw.shape
    w_conv = params["w_conv"]      # [k, k, Cin, Cout] (HWIO).  NOTE: torch
    b_conv = params["b_conv"]      # Conv2d weights are OIHW; transpose with
    w_head = params["w_head"]      # (2, 3, 1, 0) before feeding them here.
    b_head = params["b_head"]      # torch Linear weight [D, Cout] -> pass W.T.
    k = w_conv.shape[0]
    cout = w_conv.shape[-1]
    d = w_head.shape[-1]
    pad = k // 2

    # NCHW -> NHWC (channels on the lane axis) + SAME zero padding, done once.
    x_nhwc = jnp.transpose(x_nchw, (0, 2, 3, 1))
    xp = jnp.pad(x_nhwc, ((0, 0), (pad, pad), (pad, pad), (0, 0)))
    hp, wp = h + 2 * pad, w + 2 * pad

    # Batch block size: process several images per grid step to amortize
    # per-step overhead.  Keep it an exact divisor of n for clean tiling.
    if n <= 8:
        bb = n
    elif n % 8 == 0:
        bb = 8
    else:
        bb = 1
    grid = (n // bb,)

    kernel = functools.partial(_fused_feature_kernel,
                               h=h, w=w, k=k, cin=cin, cout=cout, d=d, bb=bb)

    out = pl.pallas_call(
        kernel,
        out_shape=jax.ShapeDtypeStruct((n, d), jnp.float32),
        grid=grid,
        in_specs=[
            pl.BlockSpec((bb, hp, wp, cin), lambda b: (b, 0, 0, 0)),
            pl.BlockSpec((k, k, cin, cout), lambda b: (0, 0, 0, 0)),
            pl.BlockSpec((1, cout), lambda b: (0, 0)),
            pl.BlockSpec((cout, d), lambda b: (0, 0)),
            pl.BlockSpec((1, d), lambda b: (0, 0)),
        ],
        out_specs=pl.BlockSpec((bb, d), lambda b: (b, 0)),
        compiler_params=pltpu.CompilerParams(
            dimension_semantics=("parallel",)),
    )(xp, w_conv, b_conv, w_head, b_head)

    return out


def _reference_forward(x_nchw, params):
    """Pure-JAX reference (same math, no Pallas) for a correctness check."""
    w_conv, b_conv = params["w_conv"], params["b_conv"]
    w_head, b_head = params["w_head"], params["b_head"]
    x_nhwc = jnp.transpose(x_nchw, (0, 2, 3, 1))
    y = jax.lax.conv_general_dilated(
        x_nhwc, w_conv, window_strides=(1, 1), padding="SAME",
        dimension_numbers=("NHWC", "HWIO", "NHWC"))
    y = jnp.maximum(y + b_conv.reshape(1, 1, 1, -1), 0.0)
    pooled = jnp.mean(y, axis=(1, 2))                   # [N, Cout]
    return pooled @ w_head + b_head                     # [N, D]


def init_params(key, cin=4, cout=8, k=3, d=16):
    k1, k2, k3, k4 = jax.random.split(key, 4)
    return {
        "w_conv": jax.random.normal(k1, (k, k, cin, cout), jnp.float32) * 0.1,
        "b_conv": jax.random.normal(k2, (1, cout), jnp.float32) * 0.01,
        "w_head": jax.random.normal(k3, (cout, d), jnp.float32) * 0.1,
        "b_head": jax.random.normal(k4, (1, d), jnp.float32) * 0.01,
    }


if __name__ == "__main__":
    key = jax.random.PRNGKey(0)
    kx, kp = jax.random.split(key)

    N, Cin, H, W = 2, 4, 16, 16
    x = jax.random.normal(kx, (N, Cin, H, W), jnp.float32)   # NCHW like PyTorch
    params = init_params(kp, cin=Cin, cout=8, k=3, d=16)

    out = jax.jit(feature_extractor_forward)(x, params)
    out = jax.block_until_ready(out)
    assert out.shape == (N, 16) and out.dtype == jnp.float32

    ref = jax.block_until_ready(_reference_forward(x, params))
    assert jnp.allclose(out, ref, rtol=1e-4, atol=1e-4), \
        f"max abs err = {jnp.max(jnp.abs(out - ref))}"

    print("KERNEL_OK")
</pallas_src>

<mosaic_0001>
module attributes {stable_mosaic.version = 11 : i64} {
  func.func @_fused_feature_kernel(%arg0: i32, %arg1: memref<2x18x18x4xf32, #tpu.memory_space<vmem>>, %arg2: memref<3x3x4x8xf32, #tpu.memory_space<vmem>>, %arg3: memref<1x8xf32, #tpu.memory_space<vmem>>, %arg4: memref<8x16xf32, #tpu.memory_space<vmem>>, %arg5: memref<1x16xf32, #tpu.memory_space<vmem>>, %arg6: memref<2x16xf32, #tpu.memory_space<vmem>>) attributes {dimension_semantics = [#tpu.dimension_semantics<parallel>], iteration_bounds = array<i64: 1>, scalar_prefetch = 0 : i64, scratch_operands = 0 : i64, tpu.core_type = #tpu.core_type<tc>, window_params = [{transform_indices = @transform_0, window_bounds = array<i64: 2, 18, 18, 4>}, {pipeline_mode = #tpu.pipeline_mode<synchronous>, transform_indices = @transform_1, window_bounds = array<i64: 3, 3, 4, 8>}, {pipeline_mode = #tpu.pipeline_mode<synchronous>, transform_indices = @transform_2, window_bounds = array<i64: 1, 8>}, {pipeline_mode = #tpu.pipeline_mode<synchronous>, transform_indices = @transform_3, window_bounds = array<i64: 8, 16>}, {pipeline_mode = #tpu.pipeline_mode<synchronous>, transform_indices = @transform_4, window_bounds = array<i64: 1, 16>}, {transform_indices = @transform_5, window_bounds = array<i64: 2, 16>}]} {
    %c0 = arith.constant 0 : index
    %c0_0 = arith.constant 0 : index
    %c0_1 = arith.constant 0 : index
    %c0_2 = arith.constant 0 : index
    %0 = vector.load %arg1[%c0, %c0_0, %c0_1, %c0_2] : memref<2x18x18x4xf32, #tpu.memory_space<vmem>>, vector<2x18x18x4xf32>
    %c0_3 = arith.constant 0 : index
    %c0_4 = arith.constant 0 : index
    %c0_5 = arith.constant 0 : index
    %c0_6 = arith.constant 0 : index
    %1 = vector.load %arg2[%c0_3, %c0_4, %c0_5, %c0_6] : memref<3x3x4x8xf32, #tpu.memory_space<vmem>>, vector<3x3x4x8xf32>
    %cst = arith.constant 0.000000e+00 : f32
    %2 = vector.broadcast %cst : f32 to vector<512x8xf32>
    %3 = vector.extract_strided_slice %0 {offsets = [0, 0, 0, 0], sizes = [2, 16, 16, 4], strides = [1, 1, 1, 1]} : vector<2x18x18x4xf32> to vector<2x16x16x4xf32>
    %4 = vector.shape_cast %3 : vector<2x16x16x4xf32> to vector<512x4xf32>
    %5 = vector.extract_strided_slice %1 {offsets = [0, 0, 0, 0], sizes = [1, 1, 4, 8], strides = [1, 1, 1, 1]} : vector<3x3x4x8xf32> to vector<1x1x4x8xf32>
    %6 = vector.shape_cast %5 : vector<1x1x4x8xf32> to vector<4x8xf32>
    %cst_7 = arith.constant dense<0.000000e+00> : vector<512x8xf32>
    %7 = tpu.matmul %4, %6, %cst_7 {dimension_numbers = #tpu.dot_dimension_numbers<[1], [0], [0], [1], [0, 0, 1, 1], [], []>} : vector<512x4xf32>, vector<4x8xf32>, vector<512x8xf32> -> vector<512x8xf32>
    %8 = arith.addf %2, %7 : vector<512x8xf32>
    %9 = vector.extract_strided_slice %0 {offsets = [0, 0, 1, 0], sizes = [2, 16, 16, 4], strides = [1, 1, 1, 1]} : vector<2x18x18x4xf32> to vector<2x16x16x4xf32>
    %10 = vector.shape_cast %9 : vector<2x16x16x4xf32> to vector<512x4xf32>
    %11 = vector.extract_strided_slice %1 {offsets = [0, 1, 0, 0], sizes = [1, 1, 4, 8], strides = [1, 1, 1, 1]} : vector<3x3x4x8xf32> to vector<1x1x4x8xf32>
    %12 = vector.shape_cast %11 : vector<1x1x4x8xf32> to vector<4x8xf32>
    %cst_8 = arith.constant dense<0.000000e+00> : vector<512x8xf32>
    %13 = tpu.matmul %10, %12, %cst_8 {dimension_numbers = #tpu.dot_dimension_numbers<[1], [0], [0], [1], [0, 0, 1, 1], [], []>} : vector<512x4xf32>, vector<4x8xf32>, vector<512x8xf32> -> vector<512x8xf32>
    %14 = arith.addf %8, %13 : vector<512x8xf32>
    %15 = vector.extract_strided_slice %0 {offsets = [0, 0, 2, 0], sizes = [2, 16, 16, 4], strides = [1, 1, 1, 1]} : vector<2x18x18x4xf32> to vector<2x16x16x4xf32>
    %16 = vector.shape_cast %15 : vector<2x16x16x4xf32> to vector<512x4xf32>
    %17 = vector.extract_strided_slice %1 {offsets = [0, 2, 0, 0], sizes = [1, 1, 4, 8], strides = [1, 1, 1, 1]} : vector<3x3x4x8xf32> to vector<1x1x4x8xf32>
    %18 = vector.shape_cast %17 : vector<1x1x4x8xf32> to vector<4x8xf32>
    %cst_9 = arith.constant dense<0.000000e+00> : vector<512x8xf32>
    %19 = tpu.matmul %16, %18, %cst_9 {dimension_numbers = #tpu.dot_dimension_numbers<[1], [0], [0], [1], [0, 0, 1, 1], [], []>} : vector<512x4xf32>, vector<4x8xf32>, vector<512x8xf32> -> vector<512x8xf32>
    %20 = arith.addf %14, %19 : vector<512x8xf32>
    %21 = vector.extract_strided_slice %0 {offsets = [0, 1, 0, 0], sizes = [2, 16, 16, 4], strides = [1, 1, 1, 1]} : vector<2x18x18x4xf32> to vector<2x16x16x4xf32>
    %22 = vector.shape_cast %21 : vector<2x16x16x4xf32> to vector<512x4xf32>
    %23 = vector.extract_strided_slice %1 {offsets = [1, 0, 0, 0], sizes = [1, 1, 4, 8], strides = [1, 1, 1, 1]} : vector<3x3x4x8xf32> to vector<1x1x4x8xf32>
    %24 = vector.shape_cast %23 : vector<1x1x4x8xf32> to vector<4x8xf32>
    %cst_10 = arith.constant dense<0.000000e+00> : vector<512x8xf32>
    %25 = tpu.matmul %22, %24, %cst_10 {dimension_numbers = #tpu.dot_dimension_numbers<[1], [0], [0], [1], [0, 0, 1, 1], [], []>} : vector<512x4xf32>, vector<4x8xf32>, vector<512x8xf32> -> vector<512x8xf32>
    %26 = arith.addf %20, %25 : vector<512x8xf32>
    %27 = vector.extract_strided_slice %0 {offsets = [0, 1, 1, 0], sizes = [2, 16, 16, 4], strides = [1, 1, 1, 1]} : vector<2x18x18x4xf32> to vector<2x16x16x4xf32>
    %28 = vector.shape_cast %27 : vector<2x16x16x4xf32> to vector<512x4xf32>
    %29 = vector.extract_strided_slice %1 {offsets = [1, 1, 0, 0], sizes = [1, 1, 4, 8], strides = [1, 1, 1, 1]} : vector<3x3x4x8xf32> to vector<1x1x4x8xf32>
    %30 = vector.shape_cast %29 : vector<1x1x4x8xf32> to vector<4x8xf32>
    %cst_11 = arith.constant dense<0.000000e+00> : vector<512x8xf32>
    %31 = tpu.matmul %28, %30, %cst_11 {dimension_numbers = #tpu.dot_dimension_numbers<[1], [0], [0], [1], [0, 0, 1, 1], [], []>} : vector<512x4xf32>, vector<4x8xf32>, vector<512x8xf32> -> vector<512x8xf32>
    %32 = arith.addf %26, %31 : vector<512x8xf32>
    %33 = vector.extract_strided_slice %0 {offsets = [0, 1, 2, 0], sizes = [2, 16, 16, 4], strides = [1, 1, 1, 1]} : vector<2x18x18x4xf32> to vector<2x16x16x4xf32>
    %34 = vector.shape_cast %33 : vector<2x16x16x4xf32> to vector<512x4xf32>
    %35 = vector.extract_strided_slice %1 {offsets = [1, 2, 0, 0], sizes = [1, 1, 4, 8], strides = [1, 1, 1, 1]} : vector<3x3x4x8xf32> to vector<1x1x4x8xf32>
    %36 = vector.shape_cast %35 : vector<1x1x4x8xf32> to vector<4x8xf32>
    %cst_12 = arith.constant dense<0.000000e+00> : vector<512x8xf32>
    %37 = tpu.matmul %34, %36, %cst_12 {dimension_numbers = #tpu.dot_dimension_numbers<[1], [0], [0], [1], [0, 0, 1, 1], [], []>} : vector<512x4xf32>, vector<4x8xf32>, vector<512x8xf32> -> vector<512x8xf32>
    %38 = arith.addf %32, %37 : vector<512x8xf32>
    %39 = vector.extract_strided_slice %0 {offsets = [0, 2, 0, 0], sizes = [2, 16, 16, 4], strides = [1, 1, 1, 1]} : vector<2x18x18x4xf32> to vector<2x16x16x4xf32>
    %40 = vector.shape_cast %39 : vector<2x16x16x4xf32> to vector<512x4xf32>
    %41 = vector.extract_strided_slice %1 {offsets = [2, 0, 0, 0], sizes = [1, 1, 4, 8], strides = [1, 1, 1, 1]} : vector<3x3x4x8xf32> to vector<1x1x4x8xf32>
    %42 = vector.shape_cast %41 : vector<1x1x4x8xf32> to vector<4x8xf32>
    %cst_13 = arith.constant dense<0.000000e+00> : vector<512x8xf32>
    %43 = tpu.matmul %40, %42, %cst_13 {dimension_numbers = #tpu.dot_dimension_numbers<[1], [0], [0], [1], [0, 0, 1, 1], [], []>} : vector<512x4xf32>, vector<4x8xf32>, vector<512x8xf32> -> vector<512x8xf32>
    %44 = arith.addf %38, %43 : vector<512x8xf32>
    %45 = vector.extract_strided_slice %0 {offsets = [0, 2, 1, 0], sizes = [2, 16, 16, 4], strides = [1, 1, 1, 1]} : vector<2x18x18x4xf32> to vector<2x16x16x4xf32>
    %46 = vector.shape_cast %45 : vector<2x16x16x4xf32> to vector<512x4xf32>
    %47 = vector.extract_strided_slice %1 {offsets = [2, 1, 0, 0], sizes = [1, 1, 4, 8], strides = [1, 1, 1, 1]} : vector<3x3x4x8xf32> to vector<1x1x4x8xf32>
    %48 = vector.shape_cast %47 : vector<1x1x4x8xf32> to vector<4x8xf32>
    %cst_14 = arith.constant dense<0.000000e+00> : vector<512x8xf32>
    %49 = tpu.matmul %46, %48, %cst_14 {dimension_numbers = #tpu.dot_dimension_numbers<[1], [0], [0], [1], [0, 0, 1, 1], [], []>} : vector<512x4xf32>, vector<4x8xf32>, vector<512x8xf32> -> vector<512x8xf32>
    %50 = arith.addf %44, %49 : vector<512x8xf32>
    %51 = vector.extract_strided_slice %0 {offsets = [0, 2, 2, 0], sizes = [2, 16, 16, 4], strides = [1, 1, 1, 1]} : vector<2x18x18x4xf32> to vector<2x16x16x4xf32>
    %52 = vector.shape_cast %51 : vector<2x16x16x4xf32> to vector<512x4xf32>
    %53 = vector.extract_strided_slice %1 {offsets = [2, 2, 0, 0], sizes = [1, 1, 4, 8], strides = [1, 1, 1, 1]} : vector<3x3x4x8xf32> to vector<1x1x4x8xf32>
    %54 = vector.shape_cast %53 : vector<1x1x4x8xf32> to vector<4x8xf32>
    %cst_15 = arith.constant dense<0.000000e+00> : vector<512x8xf32>
    %55 = tpu.matmul %52, %54, %cst_15 {dimension_numbers = #tpu.dot_dimension_numbers<[1], [0], [0], [1], [0, 0, 1, 1], [], []>} : vector<512x4xf32>, vector<4x8xf32>, vector<512x8xf32> -> vector<512x8xf32>
    %56 = arith.addf %50, %55 : vector<512x8xf32>
    %c0_16 = arith.constant 0 : index
    %c0_17 = arith.constant 0 : index
    %57 = vector.load %arg3[%c0_16, %c0_17] : memref<1x8xf32, #tpu.memory_space<vmem>>, vector<1x8xf32>
    %58 = vector.broadcast %57 : vector<1x8xf32> to vector<512x8xf32>
    %59 = arith.addf %56, %58 : vector<512x8xf32>
    %cst_18 = arith.constant 0.000000e+00 : f32
    %60 = vector.broadcast %cst_18 : f32 to vector<512x8xf32>
    %61 = arith.maximumf %59, %60 : vector<512x8xf32>
    %62 = vector.shape_cast %61 : vector<512x8xf32> to vector<2x256x8xf32>
    %cst_19 = arith.constant dense<0.000000e+00> : vector<2x8xf32>
    %63 = vector.multi_reduction <add>, %62, %cst_19 [1] : vector<2x256x8xf32> to vector<2x8xf32>
    %cst_20 = arith.constant 2.560000e+02 : f32
    %64 = vector.broadcast %cst_20 : f32 to vector<2x8xf32>
    %65 = arith.divf %63, %64 : vector<2x8xf32>
    %c0_21 = arith.constant 0 : index
    %c0_22 = arith.constant 0 : index
    %66 = vector.load %arg4[%c0_21, %c0_22] : memref<8x16xf32, #tpu.memory_space<vmem>>, vector<8x16xf32>
    %cst_23 = arith.constant dense<0.000000e+00> : vector<2x16xf32>
    %67 = tpu.matmul %65, %66, %cst_23 {dimension_numbers = #tpu.dot_dimension_numbers<[1], [0], [0], [1], [0, 0, 1, 1], [], []>} : vector<2x8xf32>, vector<8x16xf32>, vector<2x16xf32> -> vector<2x16xf32>
    %c0_24 = arith.constant 0 : index
    %c0_25 = arith.constant 0 : index
    %68 = vector.load %arg5[%c0_24, %c0_25] : memref<1x16xf32, #tpu.memory_space<vmem>>, vector<1x16xf32>
    %69 = vector.broadcast %68 : vector<1x16xf32> to vector<2x16xf32>
    %70 = arith.addf %67, %69 : vector<2x16xf32>
    %c0_26 = arith.constant 0 : index
    %c0_27 = arith.constant 0 : index
    %71 = vector.load %arg6[%c0_26, %c0_27] : memref<2x16xf32, #tpu.memory_space<vmem>>, vector<2x16xf32>
    tpu.vector_store %arg6[%c0_26, %c0_27], %70 {strides = array<i32>} : memref<2x16xf32, #tpu.memory_space<vmem>>, vector<2x16xf32>,
    return
  }
  func.func @transform_0(%arg0: i32) -> (i32, i32, i32, i32) {
    %c0_i32 = arith.constant 0 : i32
    %c0_i32_0 = arith.constant 0 : i32
    %c0_i32_1 = arith.constant 0 : i32
    %c0_i32_2 = arith.constant 0 : i32
    return %arg0, %c0_i32, %c0_i32_0, %c0_i32_1 : i32, i32, i32, i32
  }
  func.func @transform_1(%arg0: i32) -> (i32, i32, i32, i32) {
    %c0_i32 = arith.constant 0 : i32
    %c0_i32_0 = arith.constant 0 : i32
    %c0_i32_1 = arith.constant 0 : i32
    %c0_i32_2 = arith.constant 0 : i32
    %c0_i32_3 = arith.constant 0 : i32
    return %c0_i32, %c0_i32_0, %c0_i32_1, %c0_i32_2 : i32, i32, i32, i32
  }
  func.func @transform_2(%arg0: i32) -> (i32, i32) {
    %c0_i32 = arith.constant 0 : i32
    %c0_i32_0 = arith.constant 0 : i32
    %c0_i32_1 = arith.constant 0 : i32
    return %c0_i32, %c0_i32_0 : i32, i32
  }
  func.func @transform_3(%arg0: i32) -> (i32, i32) {
    %c0_i32 = arith.constant 0 : i32
    %c0_i32_0 = arith.constant 0 : i32
    %c0_i32_1 = arith.constant 0 : i32
    return %c0_i32, %c0_i32_0 : i32, i32
  }
  func.func @transform_4(%arg0: i32) -> (i32, i32) {
    %c0_i32 = arith.constant 0 : i32
    %c0_i32_0 = arith.constant 0 : i32
    %c0_i32_1 = arith.constant 0 : i32
    return %c0_i32, %c0_i32_0 : i32, i32
  }
  func.func @transform_5(%arg0: i32) -> (i32, i32) {
    %c0_i32 = arith.constant 0 : i32
    %c0_i32_0 = arith.constant 0 : i32
    return %arg0, %c0_i32 : i32, i32
  }
}

</mosaic_0001>

<bundles_post_ra>
// kernel: feature_extractor_forward.1
= control target key start
LH: loop header
LB: loop body
LE: loop exit
PB: predicated region body
PF: predicated region fallthrough
CT: control target
= control target key end

     0   :  { %vm524_vm0 = vcmask 1043456   ;;  %vm234_vm1 = vcmask 1046528   ;;  %vm395_vm2 = vcmask 31744   ;;  %s7791_s0 = inlined_call_operand.vmem [shape: f32[2,18,18,4], index: 0, kind: input, shape index: {}]   ;;  %s7792_s1 = inlined_call_operand.vmem [shape: f32[3,3,4,8], index: 1, kind: input, shape index: {}]   ;;  %s7793_s2 = inlined_call_operand.vmem [shape: f32[1,8], index: 2, kind: input, shape index: {}]   ;;  %s7794_s3 = inlined_call_operand.vmem [shape: f32[8,16], index: 3, kind: input, shape index: {}]   ;;  %s7795_s4 = inlined_call_operand.vmem [shape: f32[1,16], index: 4, kind: input, shape index: {}]   ;;  %s7796_s5 = inlined_call_operand.hbm [shape: f32[2,16], index: 5, kind: output, shape index: {}]  }
   0x1   :  { %v130_v0 = vld [vmem:[%s7792_s1 + $0x4] sm:$0xf]  ;;  %v4504_v1 = vld [vmem:[%s7791_s0 + $0xc8] sm:$0xff]  ;;  %v47_v2 = vld [vmem:[%s7791_s0 + $0xd0] sm:$0x3] }
   0x2   :  { %4313 = vmatpush.msk.msra.mxu1 %vm524_vm0, %v130_v0  ;;  %4314 = vmatpush.msk.msra.mxu2 %vm524_vm0, %v130_v0  ;;  %v7797_v3 = vrot.slane %v4504_v1, 1  ;;  %v278_v4 = vrot.slane %v47_v2, 1  ;;  %v66_v5 = vld [vmem:[%s7791_s0 + $0x168] sm:$0xff]  ;;  %v67_v6 = vld [vmem:[%s7791_s0 + $0x170] sm:$0xff]  ;;  %v4525_v10 = vld [vmem:[%s7791_s0 + $0x260] sm:$0xff] }
   0x3   :  { %v310_v7 = vrot.slane %v66_v5, 1  ;;  %v311_v8 = vrot.slane %v67_v6, 1  ;;  %v131_v9 = vld [vmem:[%s7792_s1 + $0x8] sm:$0xf]  ;;  %4315 = vmatpush.msk.msra.mxu3 %vm524_vm0, %v130_v0  ;;  %v4530_v11 = vld [vmem:[%s7791_s0 + $0xd8] sm:$0xff]  ;;  %3727 = vmatpush.msk.msra.mxu0 %vm524_vm0, %v130_v0  ;;  %v7798_v14 = vrot.slane %v4525_v10, 1 }
   0x4   :  { %v4536_v12 = vsel %vm234_vm1, %v7797_v3, %v278_v4  ;;  %3857 = vmatpush.msk.msrb.mxu2 %vm524_vm0, %v131_v9  ;;  %v98_v13 = vld [vmem:[%s7791_s0 + $0x268] sm:$0x3]  ;;  %v132_v15 = vld [vmem:[%s7792_s1 + $0xc] sm:$0xf]  ;;  %v4549_v16 = vld [vmem:[%s7791_s0 + $0xe0] sm:$0xff]  ;;  %v280_v21 = vrot.slane %v4530_v11, 1 }
   0x5   :  { %7967 = vst [vmem:[#allocation5_spill] sm:$0xff] %v4536_v12  ;;  %3745 = vmatmul.msk.f32.vlgmr.msra.gmra.mxu1 %vm395_vm2, %v4536_v12  ;;  %v4554_v17 = vsel %vm234_vm1, %v310_v7, %v311_v8  ;;  %v353_v18 = vrot.slane %v98_v13, 1  ;;  %3922 = vmatpush.msk.msrb.mxu3 %vm524_vm0, %v132_v15  ;;  %v68_v19 = vld [vmem:[%s7791_s0 + $0x178] sm:$0x3]  ;;  %v4563_v20 = vld [vmem:[%s7791_s0] sm:$0xff]  ;;  %v281_v22 = vrot.slane %v4549_v16, 1 }
   0x6   :  { %7968 = vst [vmem:[#allocation6_spill] sm:$0xff] %v4554_v17  ;;  %3758 = vmatmul.msk.f32.vlgmr.msra.gmra.mxu2 %vm395_vm2, %v4554_v17  ;;  %v4572_v23 = vld [vmem:[%s7791_s0 + $0x8] sm:$0xff]  ;;  %v235_v24 = vrot.slane %v4563_v20, 1  ;;  %v99_v25 = vld [vmem:[%s7791_s0 + $0x270] sm:$0xff]  ;;  %v100_v26 = vld [vmem:[%s7791_s0 + $0x278] sm:$0xff]  ;;  %v313_v28 = vrot.slane %v68_v19, 1 }
   0x7   :  { %v4584_v27 = vsel %vm234_vm1, %v7798_v14, %v353_v18  ;;  %v236_v29 = vrot.slane %v4572_v23, 1  ;;  %v133_v30 = vld [vmem:[%s7792_s1 + $0x10] sm:$0xf]  ;;  %v355_v33 = vrot.slane %v99_v25, 1  ;;  %v356_v34 = vrot.slane %v100_v26, 1  ;;  %v76_v40 = vld [vmem:[%s7791_s0 + $0x1b8] sm:$0xff] }
   0x8   :  { %7969 = vst [vmem:[#allocation7_spill] sm:$0xff] %v4584_v27  ;;  %3775 = vmatmul.msk.f32.vlgmr.msra.gmra.mxu3 %vm395_vm2, %v4584_v27  ;;  %3987 = vmatpush.msk.msrb.mxu0 %vm524_vm0, %v133_v30  ;;  %v4596_v31 = vld [vmem:[%s7791_s0 + $0x10] sm:$0x3]  ;;  %v4600_v35 = vsel %vm234_vm1, %v280_v21, %v281_v22  ;;  %v4604_v36 = vsel %vm234_vm1, %v311_v8, %v313_v28  ;;  %v4609_v37 = vld [vmem:[%s7791_s0 + $0xe8] sm:$0x3]  ;;  %v316_v45 = vrot.slane %v76_v40, 1 }
   0x9   :  { %v237_v32 = vsel %vm234_vm1, %v235_v24, %v236_v29  ;;  %7970 = vst [vmem:[#allocation8_spill] sm:$0xff] %v4600_v35  ;;  %v238_v38 = vrot.slane %v4596_v31, 1  ;;  %v75_v39 = vld [vmem:[%s7791_s0 + $0x1b0] sm:$0xff]  ;;  %v4621_v41 = vsel %vm234_vm1, %v355_v33, %v356_v34  ;;  %v283_v42 = vrot.slane %v4609_v37, 1  ;;  %v101_v43 = vld [vmem:[%s7791_s0 + $0x280] sm:$0x3] }
   0xa   :  { %3728 = vmatmul.msk.f32.vlgmr.msra.gmra.mxu0 %vm395_vm2, %v237_v32  ;;  %7971 = vst [vmem:[#allocation9_spill] sm:$0xff] %v4604_v36  ;;  %v315_v44 = vrot.slane %v75_v39, 1  ;;  %v129_v47 = vld [vmem:[%s7792_s1] sm:$0xf]  ;;  %v4638_v48 = vld [vmem:[%s7791_s0 + $0x18] sm:$0xff]  ;;  %v358_v50 = vrot.slane %v101_v43, 1 }
   0xb   :  { %7972 = vst [vmem:[#allocation10_spill] sm:$0xff] %v4621_v41  ;;  %v239_v46 = vsel %vm234_vm1, %v236_v29, %v238_v38  ;;  %v4643_v49 = vld [vmem:[%s7791_s0 + $0x20] sm:$0xff]  ;;  %3792 = vmatpush.msk.msrb.mxu1 %vm524_vm0, %v129_v47  ;;  %v4647_v51 = vsel %vm234_vm1, %v281_v22, %v283_v42  ;;  %v4653_v52 = vld [vmem:[%s7791_s0 + $0xf0] sm:$0xff]  ;;  %v4658_v53 = vld [vmem:[%s7791_s0 + $0xf8] sm:$0xff]  ;;  %v240_v55 = vrot.slane %v4638_v48, 1 }
   0xc   :  { %v317_v54 = vsel %vm234_vm1, %v315_v44, %v316_v45  ;;  %v241_v56 = vrot.slane %v4643_v49, 1 }
   0xd   :  { %3746 = vmatmul.msk.f32.gmra.mxu1 %vm395_vm2, %v4600_v35 }
   0xe   :  { %3759 = vmatmul.msk.f32.gmra.mxu2 %vm395_vm2, %v4604_v36 }
  0x10   :  { %3776 = vmatmul.msk.f32.gmra.mxu3 %vm395_vm2, %v4621_v41 }
  0x12   :  { %3729 = vmatmul.msk.f32.gmra.mxu0 %vm395_vm2, %v239_v46 }
  0x13   :  { %10 = vsyncpa [#allocation3], 0  ;;  %v77_v57 = vld [vmem:[%s7791_s0 + $0x1c0] sm:$0x3]  ;;  %v4669_v58 = vsel %vm234_vm1, %v356_v34, %v358_v50  ;;  %v285_v59 = vrot.slane %v4653_v52, 1  ;;  %v286_v60 = vrot.slane %v4658_v53, 1  ;;  %v4681_v0 = vsel %vm234_vm1, %v240_v55, %v241_v56 }
  0x14   :  { %7973 = vst [vmem:[#allocation11_spill] sm:$0xff] %v4669_v58  ;;  %v102_v61 = vld [vmem:[%s7791_s0 + $0x288] sm:$0xff]  ;;  %v103_v62 = vld [vmem:[%s7791_s0 + $0x290] sm:$0xff]  ;;  %v318_v63 = vrot.slane %v77_v57, 1  ;;  %v4699_v8 = vld [vmem:[%s7791_s0 + $0x100] sm:$0x3] }
  0x15   :  { %3747 = vmatmul.msk.f32.gmra.mxu1 %vm395_vm2, %v4647_v51  ;;  %v4688_v2 = vld [vmem:[%s7791_s0 + $0x28] sm:$0x3]  ;;  %v360_v4 = vrot.slane %v102_v61, 1  ;;  %v361_v5 = vrot.slane %v103_v62, 1  ;;  %v4691_v6 = vsel %vm234_vm1, %v285_v59, %v286_v60  ;;  %7974 = vst [vmem:[#allocation12_spill] sm:$0xff] %v4699_v8  ;;  %v79_v15 = vld [vmem:[%s7791_s0 + $0x1d0] sm:$0xff] }
  0x16   :  { %3760 = vmatmul.msk.f32.gmra.mxu2 %vm395_vm2, %v317_v54  ;;  %v319_v7 = vsel %vm234_vm1, %v316_v45, %v318_v63  ;;  %v243_v9 = vrot.slane %v4688_v2, 1  ;;  %v78_v13 = vld [vmem:[%s7791_s0 + $0x1c8] sm:$0xff]  ;;  %v288_v19 = vrot.slane %v4699_v8, 1  ;;  %v104_v21 = vld [vmem:[%s7791_s0 + $0x298] sm:$0x3]  ;;  %v321_v24 = vrot.slane %v79_v15, 1 }
  0x17   :  { %v4711_v18 = vsel %vm234_vm1, %v360_v4, %v361_v5  ;;  %v320_v22 = vrot.slane %v78_v13, 1  ;;  %v4726_v26 = vld [vmem:[%s7791_s0 + $0x30] sm:$0xff]  ;;  %v4731_v28 = vld [vmem:[%s7791_s0 + $0x38] sm:$0xff]  ;;  %v363_v29 = vrot.slane %v104_v21, 1  ;;  %v4744_v33 = vld [vmem:[%s7791_s0 + $0x108] sm:$0xff]  ;;  %vm1077_vm3 = vcmask 1045504  }
  0x18   :  { %3777 = vmatmul.msk.f32.gmra.mxu3 %vm395_vm2, %v4669_v58  ;;  %7975 = vst [vmem:[#allocation13_spill] sm:$0xff] %v4711_v18  ;;  %v4719_v25 = vsel %vm234_vm1, %v241_v56, %v243_v9  ;;  %v4734_v30 = vsel %vm234_vm1, %v286_v60, %v288_v19  ;;  %v4749_v34 = vld [vmem:[%s7791_s0 + $0x110] sm:$0xff]  ;;  %v245_v38 = vrot.slane %v4726_v26, 1  ;;  %v246_v39 = vrot.slane %v4731_v28, 1  ;;  %v80_v40 = vld [vmem:[%s7791_s0 + $0x1d8] sm:$0x3] }
  0x19   :  { %v4739_v32 = vsel %vm234_vm1, %v320_v22, %v321_v24  ;;  %v4759_v42 = vsel %vm234_vm1, %v361_v5, %v363_v29  ;;  %v290_v43 = vrot.slane %v4744_v33, 1  ;;  %v291_v44 = vrot.slane %v4749_v34, 1  ;;  %v105_v45 = vld [vmem:[%s7791_s0 + $0x2a0] sm:$0xff]  ;;  %v106_v46 = vld [vmem:[%s7791_s0 + $0x2a8] sm:$0xff]  ;;  %v4792_v60 = vld [vmem:[%s7791_s0 + $0x118] sm:$0x3] }
  0x1a   :  { %3730 = vmatmul.msk.f32.gmra.mxu0 %vm395_vm2, %v4681_v0  ;;  %7976 = vst [vmem:[#allocation14_spill] sm:$0xff] %v4739_v32  ;;  %v323_v47 = vrot.slane %v80_v40, 1  ;;  %v4772_v50 = vsel %vm234_vm1, %v245_v38, %v246_v39  ;;  %v4779_v54 = vld [vmem:[%s7791_s0 + $0x40] sm:$0x3]  ;;  %v365_v55 = vrot.slane %v105_v45, 1  ;;  %v366_v56 = vrot.slane %v106_v46, 1 }
  0x1b   :  { %7977 = vst [vmem:[#allocation15_spill] sm:$0xff] %v4759_v42  ;;  %v4782_v57 = vsel %vm234_vm1, %v290_v43, %v291_v44  ;;  %v248_v61 = vrot.slane %v4779_v54, 1  ;;  %v81_v62 = vld [vmem:[%s7791_s0 + $0x1e0] sm:$0xff]  ;;  %v82_v63 = vld [vmem:[%s7791_s0 + $0x1e8] sm:$0xff]  ;;  %v293_v5 = vrot.slane %v4792_v60, 1  ;;  %v4825_v21 = vld [vmem:[%s7791_s0 + $0x50] sm:$0xff] }
  0x1c   :  { %7978 = vst [vmem:[#allocation16_spill] sm:$0xff] %v4772_v50  ;;  %v4787_v59 = vsel %vm234_vm1, %v321_v24, %v323_v47  ;;  %v4804_v4 = vsel %vm234_vm1, %v365_v55, %v366_v56  ;;  %v325_v9 = vrot.slane %v81_v62, 1  ;;  %v326_v13 = vrot.slane %v82_v63, 1  ;;  %v4820_v19 = vld [vmem:[%s7791_s0 + $0x48] sm:$0xff]  ;;  %v4838_v38 = vld [vmem:[%s7791_s0 + $0x120] sm:$0xff]  ;;  %v108_v55 = vld [vmem:[%s7791_s0 + $0x2b8] sm:$0xff] }
  0x1d   :  { %3748 = vmatmul.msk.f32.gmra.mxu1 %vm395_vm2, %v4691_v6  ;;  %7979 = vst [vmem:[#allocation17_spill] sm:$0xff] %v4782_v57  ;;  %v4813_v15 = vsel %vm234_vm1, %v246_v39, %v248_v61  ;;  %v4828_v24 = vsel %vm234_vm1, %v291_v44, %v293_v5  ;;  %v4843_v39 = vld [vmem:[%s7791_s0 + $0x128] sm:$0xff]  ;;  %v250_v40 = vrot.slane %v4820_v19, 1  ;;  %v251_v43 = vrot.slane %v4825_v21, 1  ;;  %v83_v44 = vld [vmem:[%s7791_s0 + $0x1f0] sm:$0x3] }
  0x1e   :  { %3761 = vmatmul.msk.f32.gmra.mxu2 %vm395_vm2, %v319_v7  ;;  %7980 = vst [vmem:[#allocation18_spill] sm:$0xff] %v4787_v59  ;;  %v107_v7 = vld [vmem:[%s7791_s0 + $0x2b0] sm:$0x3]  ;;  %v4833_v29 = vsel %vm234_vm1, %v325_v9, %v326_v13  ;;  %v295_v46 = vrot.slane %v4838_v38, 1  ;;  %v296_v47 = vrot.slane %v4843_v39, 1  ;;  %v109_v61 = vld [vmem:[%s7791_s0 + $0x2c0] sm:$0xff] }
  0x1f   :  { %7981 = vst [vmem:[#allocation19_spill] sm:$0xff] %v4792_v60  ;;  %v368_v22 = vrot.slane %v107_v7, 1  ;;  %v328_v62 = vrot.slane %v83_v44, 1  ;;  %v4866_v63 = vsel %vm234_vm1, %v250_v40, %v251_v43  ;;  %v370_v5 = vrot.slane %v108_v55, 1  ;;  %v4886_v40 = vld [vmem:[%s7791_s0 + $0x130] sm:$0x3] }
  0x20   :  { %3778 = vmatmul.msk.f32.gmra.mxu3 %vm395_vm2, %v4711_v18  ;;  %7982 = vst [vmem:[#allocation20_spill] sm:$0xff] %v4804_v4  ;;  %v371_v7 = vrot.slane %v109_v61, 1  ;;  %v4876_v9 = vsel %vm234_vm1, %v295_v46, %v296_v47  ;;  %v84_v55 = vld [vmem:[%s7791_s0 + $0x1f8] sm:$0xff]  ;;  %v85_v46 = vld [vmem:[%s7791_s0 + $0x200] sm:$0xff]  ;;  %v298_v61 = vrot.slane %v4886_v40, 1  ;;  %v111_v58 = vld [vmem:[%s7791_s0 + $0x2d0] sm:$0xff] }
  0x21   :  { %7983 = vst [vmem:[#allocation21_spill] sm:$0xff] %v4813_v15  ;;  %v4853_v45 = vsel %vm234_vm1, %v366_v56, %v368_v22  ;;  %v4873_v56 = vld [vmem:[%s7791_s0 + $0x58] sm:$0x3]  ;;  %v4881_v22 = vsel %vm234_vm1, %v326_v13, %v328_v62  ;;  %v110_v62 = vld [vmem:[%s7791_s0 + $0x2c8] sm:$0x3]  ;;  %v330_v3 = vrot.slane %v84_v55, 1 }
  0x22   :  { %3731 = vmatmul.msk.f32.gmra.mxu0 %vm395_vm2, %v4719_v25  ;;  %7984 = vst [vmem:[#allocation22_spill] sm:$0xff] %v4828_v24  ;;  %v253_v44 = vrot.slane %v4873_v56, 1  ;;  %v4898_v13 = vsel %vm234_vm1, %v370_v5, %v371_v7  ;;  %v331_v14 = vrot.slane %v85_v46, 1  ;;  %v4914_v5 = vld [vmem:[%s7791_s0 + $0x60] sm:$0xff]  ;;  %v4922_v55 = vsel %vm234_vm1, %v296_v47, %v298_v61  ;;  %v86_v61 = vld [vmem:[%s7791_s0 + $0x208] sm:$0x3] }
  0x23   :  { %7985 = vst [vmem:[#allocation23_spill] sm:$0xff] %v4833_v29  ;;  %v4937_v46 = vld [vmem:[%s7791_s0 + $0x140] sm:$0xff]  ;;  %v112_v41 = vld [vmem:[%s7791_s0 + $0x2d8] sm:$0xff]  ;;  %v333_v27 = vrot.slane %v86_v61, 1  ;;  %vm3530_vm4 = vcmask 64512   ;;  %vm3685_vm6 = vcmask 1041409  }
  0x24   :  { %7986 = vst [vmem:[#allocation24_spill] sm:$0xff] %v4843_v39  ;;  %v301_v18 = vrot.slane %v4937_v46, 1  ;;  %s4467_s26 = smov [#allocation2]   ;;  %s3718_s29 = sshll.u32 %s7796_s5, 4  ;;  %vm3709_vm7 = vcmask 123904   ;;  %s3719_s29 = int_to_ptr.hbm [resolvable:$true] %s3718_s29 }
  0x25   :  { %3749 = vmatmul.msk.f32.gmra.mxu1 %vm395_vm2, %v4734_v30  ;;  %7987 = vst [vmem:[#allocation25_spill] sm:$0xff] %v4853_v45  ;;  %v4975_v61 = vsel %vm234_vm1, %v331_v14, %v333_v27  ;;  %s3716_s27 = sshll.u32 %s4467_s26, 4  ;;  %s3717_s27 = int_to_ptr.vmem [resolvable:$true] %s3716_s27 }
  0x26   :  { %3762 = vmatmul.msk.f32.gmra.mxu2 %vm395_vm2, %v4739_v32  ;;  %7988 = vst [vmem:[#allocation26_spill] sm:$0xff] %v4866_v63 }
  0x27   :  { %7989 = vst [vmem:[#allocation27_spill] sm:$0xff] %v4876_v9 }
  0x28   :  { %3779 = vmatmul.msk.f32.gmra.mxu3 %vm395_vm2, %v4759_v42  ;;  %7990 = vst [vmem:[#allocation28_spill] sm:$0xff] %v4881_v22  ;;  %v373_v42 = vrot.slane %v110_v62, 1  ;;  %v255_v62 = vrot.slane %v4914_v5, 1 }
  0x29   :  { %7991 = vst [vmem:[#allocation29_spill] sm:$0xff] %v4886_v40  ;;  %v115_v40 = vld [vmem:[%s7791_s0 + $0x2f0] sm:$0xff] }
  0x2a   :  { %3732 = vmatmul.msk.f32.gmra.mxu0 %vm395_vm2, %v4772_v50  ;;  %7992 = vst [vmem:[#allocation30_spill] sm:$0xff] %v4898_v13 }
  0x2b   :  { %7994 = vst [vmem:[#allocation32_spill] sm:$0xff] %v4922_v55 }
  0x2c   :  { %7997 = vst [vmem:[#allocation35_spill] sm:$0xff] %v4937_v46 }
  0x2d   :  { %3750 = vmatmul.msk.f32.gmra.mxu1 %vm395_vm2, %v4782_v57  ;;  %8001 = vst [vmem:[#allocation39_spill] sm:$0xff] %v4975_v61 }
  0x2e   :  { %3763 = vmatmul.msk.f32.gmra.mxu2 %vm395_vm2, %v4787_v59 }
  0x30   :  { %3780 = vmatmul.msk.f32.gmra.mxu3 %vm395_vm2, %v4804_v4  ;;  %v4919_v4 = vld [vmem:[%s7791_s0 + $0x68] sm:$0xff] }
  0x31   :  { %v256_v47 = vrot.slane %v4919_v4, 1 }
  0x32   :  { %3733 = vmatmul.msk.f32.gmra.mxu0 %vm395_vm2, %v4813_v15 }
  0x35   :  { %3751 = vmatmul.msk.f32.gmra.mxu1 %vm395_vm2, %v4828_v24 }
  0x36   :  { %3764 = vmatmul.msk.f32.gmra.mxu2 %vm395_vm2, %v4833_v29 }
  0x38   :  { %3781 = vmatmul.msk.f32.gmra.mxu3 %vm395_vm2, %v4853_v45  ;;  %v4907_v45 = vsel %vm234_vm1, %v251_v43, %v253_v44  ;;  %v4927_v43 = vsel %vm234_vm1, %v330_v3, %v331_v14  ;;  %v4932_v44 = vld [vmem:[%s7791_s0 + $0x138] sm:$0xff]  ;;  %v4947_v3 = vsel %vm234_vm1, %v371_v7, %v373_v42  ;;  %v4967_v42 = vld [vmem:[%s7791_s0 + $0x70] sm:$0x3]  ;;  %v375_v7 = vrot.slane %v111_v58, 1 }
  0x39   :  { %7993 = vst [vmem:[#allocation31_spill] sm:$0xff] %v4907_v45  ;;  %v88_v58 = vld [vmem:[%s7791_s0 + $0x218] sm:$0xff] }
  0x3a   :  { %3734 = vmatmul.msk.f32.gmra.mxu0 %vm395_vm2, %v4866_v63  ;;  %7995 = vst [vmem:[#allocation33_spill] sm:$0xff] %v4927_v43  ;;  %v336_v32 = vrot.slane %v88_v58, 1  ;;  %v5031_v58 = vld [vmem:[%s7791_s0 + $0x158] sm:$0xff] }
  0x3b   :  { %7996 = vst [vmem:[#allocation34_spill] sm:$0xff] %v4932_v44 }
  0x3c   :  { %7998 = vst [vmem:[#allocation36_spill] sm:$0xff] %v4947_v3 }
  0x3d   :  { %3752 = vmatmul.msk.f32.gmra.mxu1 %vm395_vm2, %v4876_v9  ;;  %8008 = vst [vmem:[#allocation46_spill] sm:$0xff] %v5031_v58 }
  0x3e   :  { %3765 = vmatmul.msk.f32.gmra.mxu2 %vm395_vm2, %v4881_v22  ;;  %v4960_v22 = vsel %vm234_vm1, %v255_v62, %v256_v47  ;;  %v4980_v62 = vld [vmem:[%s7791_s0 + $0x148] sm:$0x3] }
  0x3f   :  { %7999 = vst [vmem:[#allocation37_spill] sm:$0xff] %v4960_v22  ;;  %v303_v27 = vrot.slane %v4980_v62, 1 }
  0x40   :  { %3782 = vmatmul.msk.f32.gmra.mxu3 %vm395_vm2, %v4898_v13  ;;  %v300_v13 = vrot.slane %v4932_v44, 1  ;;  %8002 = vst [vmem:[#allocation40_spill] sm:$0xff] %v4980_v62  ;;  %v306_v62 = vrot.slane %v5031_v58, 1 }
  0x42   :  { %3735 = vmatmul.msk.f32.gmra.mxu0 %vm395_vm2, %v4907_v45  ;;  %v4970_v29 = vsel %vm234_vm1, %v300_v13, %v301_v18  ;;  %v113_v13 = vld [vmem:[%s7791_s0 + $0x2e0] sm:$0x3] }
  0x43   :  { %8000 = vst [vmem:[#allocation38_spill] sm:$0xff] %v4970_v29  ;;  %v378_v17 = vrot.slane %v113_v13, 1 }
  0x45   :  { %3753 = vmatmul.msk.f32.gmra.mxu1 %vm395_vm2, %v4922_v55 }
  0x46   :  { %3766 = vmatmul.msk.f32.gmra.mxu2 %vm395_vm2, %v4927_v43  ;;  %v376_v43 = vrot.slane %v112_v41, 1  ;;  %v87_v41 = vld [vmem:[%s7791_s0 + $0x210] sm:$0xff] }
  0x47   :  { %v335_v59 = vrot.slane %v87_v41, 1  ;;  %v5016_v41 = vsel %vm234_vm1, %v301_v18, %v303_v27  ;;  %v89_v27 = vld [vmem:[%s7791_s0 + $0x220] sm:$0x3] }
  0x48   :  { %3783 = vmatmul.msk.f32.gmra.mxu3 %vm395_vm2, %v4947_v3  ;;  %v258_v3 = vrot.slane %v4967_v42, 1  ;;  %v4992_v14 = vsel %vm234_vm1, %v375_v7, %v376_v43  ;;  %v5008_v7 = vld [vmem:[%s7791_s0 + $0x78] sm:$0xff]  ;;  %8005 = vst [vmem:[#allocation43_spill] sm:$0xff] %v5016_v41  ;;  %v338_v55 = vrot.slane %v89_v27, 1 }
  0x49   :  { %8003 = vst [vmem:[#allocation41_spill] sm:$0xff] %v4992_v14  ;;  %v260_v13 = vrot.slane %v5008_v7, 1 }
  0x4a   :  { %3736 = vmatmul.msk.f32.gmra.mxu0 %vm395_vm2, %v4960_v22  ;;  %v5001_v36 = vsel %vm234_vm1, %v256_v47, %v258_v3  ;;  %v5021_v47 = vsel %vm234_vm1, %v335_v59, %v336_v32  ;;  %v5026_v3 = vld [vmem:[%s7791_s0 + $0x150] sm:$0xff]  ;;  %v5041_v59 = vsel %vm234_vm1, %v376_v43, %v378_v17  ;;  %v5061_v17 = vld [vmem:[%s7791_s0 + $0x88] sm:$0x3]  ;;  %v5069_v27 = vsel %vm234_vm1, %v336_v32, %v338_v55 }
  0x4b   :  { %8004 = vst [vmem:[#allocation42_spill] sm:$0xff] %v5001_v36 }
  0x4c   :  { %8006 = vst [vmem:[#allocation44_spill] sm:$0xff] %v5021_v47 }
  0x4d   :  { %3754 = vmatmul.msk.f32.gmra.mxu1 %vm395_vm2, %v4970_v29  ;;  %8007 = vst [vmem:[#allocation45_spill] sm:$0xff] %v5026_v3  ;;  %v114_v29 = vld [vmem:[%s7791_s0 + $0x2e8] sm:$0xff] }
  0x4e   :  { %3767 = vmatmul.msk.f32.gmra.mxu2 %vm395_vm2, %v4975_v61  ;;  %v5013_v61 = vld [vmem:[%s7791_s0 + $0x80] sm:$0xff]  ;;  %8009 = vst [vmem:[#allocation47_spill] sm:$0xff] %v5041_v59  ;;  %v380_v43 = vrot.slane %v114_v29, 1  ;;  %v90_v29 = vld [vmem:[%s7791_s0 + $0x228] sm:$0xff] }
  0x4f   :  { %v261_v18 = vrot.slane %v5013_v61, 1  ;;  %8012 = vst [vmem:[#allocation50_spill] sm:$0xff] %v5069_v27 }
  0x50   :  { %3784 = vmatmul.msk.f32.gmra.mxu3 %vm395_vm2, %v4992_v14  ;;  %v305_v14 = vrot.slane %v5026_v3, 1  ;;  %v340_v3 = vrot.slane %v90_v29, 1 }
  0x52   :  { %3737 = vmatmul.msk.f32.gmra.mxu0 %vm395_vm2, %v5001_v36  ;;  %v5064_v58 = vsel %vm234_vm1, %v305_v14, %v306_v62  ;;  %v116_v14 = vld [vmem:[%s7791_s0 + $0x2f8] sm:$0x3] }
  0x53   :  { %8011 = vst [vmem:[#allocation49_spill] sm:$0xff] %v5064_v58 }
  0x55   :  { %3755 = vmatmul.msk.f32.gmra.mxu1 %vm395_vm2, %v5016_v41  ;;  %v5054_v41 = vsel %vm234_vm1, %v260_v13, %v261_v18  ;;  %v5074_v13 = vld [vmem:[%s7791_s0 + $0x160] sm:$0x3] }
  0x56   :  { %3768 = vmatmul.msk.f32.gmra.mxu2 %vm395_vm2, %v5021_v47  ;;  %8010 = vst [vmem:[#allocation48_spill] sm:$0xff] %v5054_v41  ;;  %v381_v47 = vrot.slane %v115_v40, 1  ;;  %v91_v40 = vld [vmem:[%s7791_s0 + $0x230] sm:$0xff]  ;;  %v308_v55 = vrot.slane %v5074_v13, 1 }
  0x57   :  { %8013 = vst [vmem:[#allocation51_spill] sm:$0xff] %v5074_v13  ;;  %v341_v46 = vrot.slane %v91_v40, 1  ;;  %v383_v13 = vrot.slane %v116_v14, 1 }
  0x58   :  { %3785 = vmatmul.msk.f32.gmra.mxu3 %vm395_vm2, %v5041_v59  ;;  %v263_v59 = vrot.slane %v5061_v17, 1  ;;  %v5086_v32 = vsel %vm234_vm1, %v380_v43, %v381_v47  ;;  %v5102_v43 = vld [vmem:[%s7791_s0 + $0x90] sm:$0xff]  ;;  %v5110_v29 = vsel %vm234_vm1, %v306_v62, %v308_v55  ;;  %v118_v55 = vld [vmem:[%s7791_s0 + $0x308] sm:$0xff] }
  0x59   :  { %8014 = vst [vmem:[#allocation52_spill] sm:$0xff] %v5086_v32  ;;  %v5125_v62 = vsel %vm234_vm1, %v381_v47, %v383_v13  ;;  %v5143_v47 = vld [vmem:[%s7791_s0 + $0xa0] sm:$0x3] }
  0x5a   :  { %3738 = vmatmul.msk.f32.gmra.mxu0 %vm395_vm2, %v5054_v41  ;;  %v5095_v9 = vsel %vm234_vm1, %v261_v18, %v263_v59  ;;  %8016 = vst [vmem:[#allocation54_spill] sm:$0xff] %v5110_v29  ;;  %v5115_v18 = vsel %vm234_vm1, %v340_v3, %v341_v46  ;;  %v265_v59 = vrot.slane %v5102_v43, 1  ;;  %v117_v3 = vld [vmem:[%s7791_s0 + $0x300] sm:$0xff] }
  0x5b   :  { %8015 = vst [vmem:[#allocation53_spill] sm:$0xff] %v5095_v9  ;;  %v385_v13 = vrot.slane %v117_v3, 1 }
  0x5c   :  { %8017 = vst [vmem:[#allocation55_spill] sm:$0xff] %v5115_v18 }
  0x5d   :  { %3756 = vmatmul.msk.f32.gmra.mxu1 %vm395_vm2, %v5064_v58  ;;  %8018 = vst [vmem:[#allocation56_spill] sm:$0xff] %v5125_v62 }
  0x5e   :  { %3769 = vmatmul.msk.f32.gmra.mxu2 %vm395_vm2, %v5069_v27  ;;  %v5107_v27 = vld [vmem:[%s7791_s0 + $0x98] sm:$0xff] }
  0x5f   :  { %v266_v40 = vrot.slane %v5107_v27, 1 }
  0x60   :  { %3786 = vmatmul.msk.f32.gmra.mxu3 %vm395_vm2, %v5086_v32  ;;  %v92_v32 = vld [vmem:[%s7791_s0 + $0x238] sm:$0x3] }
  0x61   :  { %v343_v14 = vrot.slane %v92_v32, 1  ;;  %v5136_v58 = vsel %vm234_vm1, %v265_v59, %v266_v40  ;;  %v268_v32 = vrot.slane %v5143_v47, 1  ;;  %v93_v59 = vld [vmem:[%s7791_s0 + $0x240] sm:$0xff] }
  0x62   :  { %3739 = vmatmul.msk.f32.gmra.mxu0 %vm395_vm2, %v5095_v9  ;;  %8019 = vst [vmem:[#allocation57_spill] sm:$0xff] %v5136_v58 }
  0x63   :  { %v5171_v44 = vsel %vm234_vm1, %v266_v40, %v268_v32  ;;  %v136_v40 = vld [vmem:[%s7792_s1 + $0x1c] sm:$0xf]  ;;  %v134_v32 = vld [vmem:[%s7792_s1 + $0x14] sm:$0xf] }
  0x64   :  { %8022 = vst [vmem:[#allocation60_spill] sm:$0xff] %v5171_v44  ;;  %4182 = vmatpush.msk.msra.mxu3 %vm524_vm0, %v136_v40  ;;  %4052 = vmatpush.msk.msra.mxu1 %vm524_vm0, %v134_v32  ;;  %v121_v32 = vld [vmem:[%s7791_s0 + $0x320] sm:$0xff] }
  0x65   :  { %3757 = vmatmul.msk.f32.gmra.mxu1 %vm395_vm2, %v5110_v29  ;;  %v5148_v29 = vsel %vm234_vm1, %v341_v46, %v343_v14  ;;  %v119_v46 = vld [vmem:[%s7791_s0 + $0x310] sm:$0x3]  ;;  %v345_v14 = vrot.slane %v93_v59, 1  ;;  %v391_v57 = vrot.slane %v121_v32, 1 }
  0x66   :  { %3770 = vmatmul.msk.f32.gmra.mxu2 %vm395_vm2, %v5115_v18  ;;  %v386_v18 = vrot.slane %v118_v55, 1  ;;  %8020 = vst [vmem:[#allocation58_spill] sm:$0xff] %v5148_v29  ;;  %v135_v55 = vld [vmem:[%s7792_s1 + $0x18] sm:$0xf] }
  0x67   :  { %4117 = vmatpush.msk.msra.mxu2 %vm524_vm0, %v135_v55 }
  0x68   :  { %3787 = vmatmul.msk.f32.gmra.mxu3 %vm395_vm2, %v5125_v62  ;;  %v94_v62 = vld [vmem:[%s7791_s0 + $0x248] sm:$0xff]  ;;  %v5160_v3 = vsel %vm234_vm1, %v385_v13, %v386_v18 }
  0x69   :  { %8021 = vst [vmem:[#allocation59_spill] sm:$0xff] %v5160_v3  ;;  %v346_v60 = vrot.slane %v94_v62, 1  ;;  %v5179_v13 = vld [vmem:[%s7791_s0 + $0xa8] sm:$0xff]  ;;  %v388_v62 = vrot.slane %v119_v46, 1  ;;  %v95_v46 = vld [vmem:[%s7791_s0 + $0x250] sm:$0x3] }
  0x6a   :  { %3740 = vmatmul.msk.f32.gmra.mxu0 %vm395_vm2, %v5136_v58  ;;  %v270_v55 = vrot.slane %v5179_v13, 1  ;;  %v348_v24 = vrot.slane %v95_v46, 1 }
  0x6b   :  { %v5197_v59 = vsel %vm234_vm1, %v345_v14, %v346_v60  ;;  %v5207_v40 = vsel %vm234_vm1, %v386_v18, %v388_v62  ;;  %v120_v14 = vld [vmem:[%s7791_s0 + $0x318] sm:$0xff]  ;;  %v137_v62 = vld [vmem:[%s7792_s1 + $0x20] sm:$0xf] }
  0x6c   :  { %8023 = vst [vmem:[#allocation61_spill] sm:$0xff] %v5197_v59  ;;  %v5225_v18 = vld [vmem:[%s7791_s0 + $0xb8] sm:$0x3]  ;;  %4247 = vmatpush.msk.msra.mxu0 %vm524_vm0, %v137_v62  ;;  %v5258_v62 = vld [vmem:[%s7791_s0 + $0xc0] sm:$0xff] }
  0x6d   :  { %3793 = vmatmul.msk.f32.vlgmr.msrb.gmra.mxu1 %vm395_vm2, %v4563_v20  ;;  %8024 = vst [vmem:[#allocation62_spill] sm:$0xff] %v5207_v40  ;;  %v273_v46 = vrot.slane %v5225_v18, 1 }
  0x6e   :  { %3771 = vmatmul.msk.f32.gmra.mxu2 %vm395_vm2, %v5148_v29  ;;  %v5184_v29 = vld [vmem:[%s7791_s0 + $0xb0] sm:$0xff] }
  0x70   :  { %3788 = vmatmul.msk.f32.gmra.mxu3 %vm395_vm2, %v5160_v3  ;;  %v271_v3 = vrot.slane %v5184_v29, 1 }
  0x72   :  { %3741 = vmatmul.msk.f32.gmra.mxu0 %vm395_vm2, %v5171_v44  ;;  %v5218_v39 = vsel %vm234_vm1, %v270_v55, %v271_v3  ;;  %v5234_v55 = vsel %vm234_vm1, %v346_v60, %v348_v24  ;;  %v122_v60 = vld [vmem:[%s7791_s0 + $0x328] sm:$0x3]  ;;  %v5251_v32 = vsel %vm234_vm1, %v271_v3, %v273_v46  ;;  %v275_v3 = vrot.slane %v5258_v62, 1 }
  0x73   :  { %8025 = vst [vmem:[#allocation63_spill] sm:$0xff] %v5218_v39 }
  0x74   :  { %8026 = vst [vmem:[#allocation64_spill] sm:$0xff] %v5234_v55 }
  0x75   :  { %3794 = vmatmul.msk.f32.gmra.mxu1 %vm395_vm2, %v4572_v23  ;;  %8028 = vst [vmem:[#allocation66_spill] sm:$0xff] %v5251_v32 }
  0x76   :  { %3772 = vmatmul.msk.f32.gmra.mxu2 %vm395_vm2, %v5197_v59  ;;  %v390_v59 = vrot.slane %v120_v14, 1 }
  0x78   :  { %3789 = vmatmul.msk.f32.gmra.mxu3 %vm395_vm2, %v5207_v40  ;;  %v96_v40 = vld [vmem:[%s7791_s0 + $0x258] sm:$0xff]  ;;  %v5243_v14 = vsel %vm234_vm1, %v390_v59, %v391_v57  ;;  %v393_v59 = vrot.slane %v122_v60, 1 }
  0x79   :  { %8027 = vst [vmem:[#allocation65_spill] sm:$0xff] %v5243_v14  ;;  %v350_v24 = vrot.slane %v96_v40, 1 }
  0x7a   :  { %3742 = vmatmul.msk.f32.gmra.mxu0 %vm395_vm2, %v5218_v39  ;;  %v5273_v46 = vsel %vm234_vm1, %v391_v57, %v393_v59 }
  0x7b   :  { %8031 = vst [vmem:[#allocation68_spill] sm:$0xff] %v5273_v46 }
  0x7d   :  { %3795 = vmatmul.msk.f32.gmra.mxu1 %vm395_vm2, %v4638_v48 }
  0x7e   :  { %3773 = vmatmul.msk.f32.gmra.mxu2 %vm395_vm2, %v5234_v55  ;;  %v8029_v55 = vrot.slane %v4525_v10, 1  ;;  %v1079_v10 = vrot.slane %v4572_v23, 2 }
  0x80   :  { %3790 = vmatmul.msk.f32.gmra.mxu3 %vm395_vm2, %v5243_v14  ;;  %v5267_v40 = vsel %vm234_vm1, %v350_v24, %v8029_v55  ;;  %v1078_v14 = vrot.slane %v4563_v20, 2  ;;  %v8032_v55 = vrot.slane %v4504_v1, 1 }
  0x81   :  { %8030 = vst [vmem:[#allocation67_spill] sm:$0xff] %v5267_v40 }
  0x82   :  { %v5260_v8 = vpop.f32.mrf.mxu1  ;;  %3743 = vmatmul.msk.f32.gmra.mxu0 %vm395_vm2, %v5251_v32  ;;  %v5284_v24 = vsel %vm234_vm1, %v275_v3, %v8032_v55  ;;  %v1080_v20 = vsel %vm1077_vm3, %v1078_v14, %v1079_v10  ;;  %v1081_v3 = vrot.slane %v4596_v31, 2 }
  0x83   :  { %8033 = vst [vmem:[#allocation69_spill] sm:$0xff] %v5284_v24 }
  0x85   :  { %3796 = vmatmul.msk.f32.gmra.mxu1 %vm395_vm2, %v4643_v49 }
  0x86   :  { %3774 = vmatmul.msk.f32.gmra.mxu2 %vm395_vm2, %v5267_v40 }
  0x87   :  { %v5277_v60 = vpop.f32.mrf.mxu0 }
  0x88   :  { %3791 = vmatmul.msk.f32.gmra.mxu3 %vm395_vm2, %v5273_v46 }
  0x89   :  { %v5288_v57 = vpop.f32.mrf.mxu2 }
  0x8a   :  { %8034 = vst [vmem:[#allocation70_spill] sm:$0xff] %v5288_v57  ;;  %v5290_v59 = vpop.f32.mrf.mxu1  ;;  %3744 = vmatmul.msk.f32.gmra.mxu0 %vm395_vm2, %v5284_v24 }
  0x8b   :  { %v5294_v40 = vpop.f32.mrf.mxu3 }
  0x8c   :  { %8035 = vst [vmem:[#allocation71_spill] sm:$0xff] %v5294_v40  ;;  %v1082_v40 = vsel %vm1077_vm3, %v1079_v10, %v1081_v3 }
  0x8d   :  { %3797 = vmatmul.msk.f32.gmra.mxu1 %vm395_vm2, %v4726_v26 }
  0x8e   :  { %3858 = vmatmul.msk.f32.vlgmr.msrb.gmra.mxu2 %vm395_vm2, %v1080_v20  ;;  %v1083_v20 = vrot.slane %v4638_v48, 2 }
  0x8f   :  { %v5300_v23 = vpop.f32.mrf.mxu0 }
  0x90   :  { %3923 = vmatmul.msk.f32.vlgmr.msrb.gmra.mxu3 %vm395_vm2, %v4638_v48 }
  0x91   :  { %v5305_v55 = vpop.f32.mrf.mxu2 }
  0x92   :  { %8036 = vst [vmem:[#allocation72_spill] sm:$0xff] %v5305_v55  ;;  %v5307_v46 = vpop.f32.mrf.mxu1  ;;  %3988 = vmatmul.msk.f32.vlgmr.msrb.gmra.mxu0 %vm395_vm2, %v4681_v0  ;;  %v1084_v55 = vrot.slane %v4643_v49, 2 }
  0x93   :  { %v5311_v14 = vpop.f32.mrf.mxu3 }
  0x94   :  { %8037 = vst [vmem:[#allocation73_spill] sm:$0xff] %v5311_v14  ;;  %v1088_v14 = vrot.slane %v4726_v26, 2 }
  0x95   :  { %3798 = vmatmul.msk.f32.gmra.mxu1 %vm395_vm2, %v4731_v28 }
  0x96   :  { %3859 = vmatmul.msk.f32.gmra.mxu2 %vm395_vm2, %v1082_v40  ;;  %v5332_v40 = vsel %vm1077_vm3, %v1083_v20, %v1084_v55 }
  0x97   :  { %v5317_v31 = vpop.f32.mrf.mxu0  ;;  %8039 = vst [vmem:[#allocation75_spill] sm:$0xff] %v5332_v40 }
  0x98   :  { %3924 = vmatmul.msk.f32.gmra.mxu3 %vm395_vm2, %v4643_v49  ;;  %v1086_v49 = vrot.slane %v4688_v2, 2 }
  0x99   :  { %v5323_v57 = vpop.f32.mrf.mxu2 }
  0x9a   :  { %v5325_v0 = vpop.f32.mrf.mxu1  ;;  %3989 = vmatmul.msk.f32.gmra.mxu0 %vm395_vm2, %v4719_v25 }
  0x9b   :  { %v5329_v10 = vpop.f32.mrf.mxu3 }
  0x9c   :  { %8038 = vst [vmem:[#allocation74_spill] sm:$0xff] %v5329_v10  ;;  %v5352_v10 = vsel %vm1077_vm3, %v1084_v55, %v1086_v49 }
  0x9d   :  { %3799 = vmatmul.msk.f32.gmra.mxu1 %vm395_vm2, %v4820_v19  ;;  %8041 = vst [vmem:[#allocation77_spill] sm:$0xff] %v5352_v10 }
  0x9e   :  { %3860 = vmatmul.msk.f32.gmra.mxu2 %vm395_vm2, %v5332_v40  ;;  %v1089_v40 = vrot.slane %v4731_v28, 2 }
  0x9f   :  { %v5338_v48 = vpop.f32.mrf.mxu0 }
  0xa0   :  { %3925 = vmatmul.msk.f32.gmra.mxu3 %vm395_vm2, %v4726_v26  ;;  %v5373_v49 = vsel %vm1077_vm3, %v1088_v14, %v1089_v40 }
  0xa1   :  { %v5343_v3 = vpop.f32.mrf.mxu2  ;;  %8043 = vst [vmem:[#allocation79_spill] sm:$0xff] %v5373_v49 }
  0xa2   :  { %v5345_v25 = vpop.f32.mrf.mxu1  ;;  %3990 = vmatmul.msk.f32.gmra.mxu0 %vm395_vm2, %v4772_v50 }
  0xa3   :  { %v5349_v20 = vpop.f32.mrf.mxu3 }
  0xa4   :  { %8040 = vst [vmem:[#allocation76_spill] sm:$0xff] %v5349_v20 }
  0xa5   :  { %3800 = vmatmul.msk.f32.gmra.mxu1 %vm395_vm2, %v4825_v21 }
  0xa6   :  { %3861 = vmatmul.msk.f32.gmra.mxu2 %vm395_vm2, %v5352_v10 }
  0xa7   :  { %v5358_v2 = vpop.f32.mrf.mxu0 }
  0xa8   :  { %3926 = vmatmul.msk.f32.gmra.mxu3 %vm395_vm2, %v4731_v28  ;;  %v1091_v28 = vrot.slane %v4779_v54, 2 }
  0xa9   :  { %v5364_v50 = vpop.f32.mrf.mxu2 }
  0xaa   :  { %v5366_v20 = vpop.f32.mrf.mxu1  ;;  %3991 = vmatmul.msk.f32.gmra.mxu0 %vm395_vm2, %v4813_v15 }
  0xab   :  { %v5370_v55 = vpop.f32.mrf.mxu3 }
  0xac   :  { %8042 = vst [vmem:[#allocation78_spill] sm:$0xff] %v5370_v55  ;;  %v5393_v55 = vsel %vm1077_vm3, %v1089_v40, %v1091_v28 }
  0xad   :  { %3801 = vmatmul.msk.f32.gmra.mxu1 %vm395_vm2, %v4914_v5  ;;  %8046 = vst [vmem:[#allocation82_spill] sm:$0xff] %v5393_v55 }
  0xae   :  { %3862 = vmatmul.msk.f32.gmra.mxu2 %vm395_vm2, %v5373_v49  ;;  %v1093_v49 = vrot.slane %v4820_v19, 2 }
  0xaf   :  { %v5379_v26 = vpop.f32.mrf.mxu0 }
  0xb0   :  { %3927 = vmatmul.msk.f32.gmra.mxu3 %vm395_vm2, %v4820_v19 }
  0xb1   :  { %v5384_v10 = vpop.f32.mrf.mxu2 }
  0xb2   :  { %8044 = vst [vmem:[#allocation80_spill] sm:$0xff] %v5384_v10  ;;  %v5386_v15 = vpop.f32.mrf.mxu1  ;;  %3992 = vmatmul.msk.f32.gmra.mxu0 %vm395_vm2, %v4866_v63  ;;  %v1094_v10 = vrot.slane %v4825_v21, 2 }
  0xb3   :  { %v5390_v14 = vpop.f32.mrf.mxu3 }
  0xb4   :  { %8045 = vst [vmem:[#allocation81_spill] sm:$0xff] %v5390_v14  ;;  %v5414_v28 = vsel %vm1077_vm3, %v1093_v49, %v1094_v10 }
  0xb5   :  { %3802 = vmatmul.msk.f32.gmra.mxu1 %vm395_vm2, %v4919_v4  ;;  %8048 = vst [vmem:[#allocation84_spill] sm:$0xff] %v5414_v28 }
  0xb6   :  { %3863 = vmatmul.msk.f32.gmra.mxu2 %vm395_vm2, %v5393_v55 }
  0xb7   :  { %v5399_v54 = vpop.f32.mrf.mxu0 }
  0xb8   :  { %3928 = vmatmul.msk.f32.gmra.mxu3 %vm395_vm2, %v4825_v21  ;;  %v1096_v21 = vrot.slane %v4873_v56, 2 }
  0xb9   :  { %v5405_v63 = vpop.f32.mrf.mxu2 }
  0xba   :  { %v5407_v14 = vpop.f32.mrf.mxu1  ;;  %3993 = vmatmul.msk.f32.gmra.mxu0 %vm395_vm2, %v4907_v45 }
  0xbb   :  { %v5411_v40 = vpop.f32.mrf.mxu3 }
  0xbc   :  { %8047 = vst [vmem:[#allocation83_spill] sm:$0xff] %v5411_v40  ;;  %v5434_v40 = vsel %vm1077_vm3, %v1094_v10, %v1096_v21 }
  0xbd   :  { %3803 = vmatmul.msk.f32.gmra.mxu1 %vm395_vm2, %v5008_v7  ;;  %8051 = vst [vmem:[#allocation87_spill] sm:$0xff] %v5434_v40 }
  0xbe   :  { %3864 = vmatmul.msk.f32.gmra.mxu2 %vm395_vm2, %v5414_v28  ;;  %v1098_v28 = vrot.slane %v4914_v5, 2 }
  0xbf   :  { %v5420_v19 = vpop.f32.mrf.mxu0 }
  0xc0   :  { %3929 = vmatmul.msk.f32.gmra.mxu3 %vm395_vm2, %v4914_v5 }
  0xc1   :  { %v5425_v55 = vpop.f32.mrf.mxu2 }
  0xc2   :  { %8049 = vst [vmem:[#allocation85_spill] sm:$0xff] %v5425_v55  ;;  %v5427_v45 = vpop.f32.mrf.mxu1  ;;  %3994 = vmatmul.msk.f32.gmra.mxu0 %vm395_vm2, %v4960_v22  ;;  %v1099_v55 = vrot.slane %v4919_v4, 2 }
  0xc3   :  { %v5431_v49 = vpop.f32.mrf.mxu3 }
  0xc4   :  { %8050 = vst [vmem:[#allocation86_spill] sm:$0xff] %v5431_v49  ;;  %v5455_v21 = vsel %vm1077_vm3, %v1098_v28, %v1099_v55 }
  0xc5   :  { %3804 = vmatmul.msk.f32.gmra.mxu1 %vm395_vm2, %v5013_v61  ;;  %8053 = vst [vmem:[#allocation89_spill] sm:$0xff] %v5455_v21 }
  0xc6   :  { %3865 = vmatmul.msk.f32.gmra.mxu2 %vm395_vm2, %v5434_v40 }
  0xc7   :  { %v5440_v56 = vpop.f32.mrf.mxu0 }
  0xc8   :  { %3930 = vmatmul.msk.f32.gmra.mxu3 %vm395_vm2, %v4919_v4  ;;  %v1101_v4 = vrot.slane %v4967_v42, 2 }
  0xc9   :  { %v5446_v22 = vpop.f32.mrf.mxu2 }
  0xca   :  { %v5448_v49 = vpop.f32.mrf.mxu1  ;;  %3995 = vmatmul.msk.f32.gmra.mxu0 %vm395_vm2, %v5001_v36 }
  0xcb   :  { %v5452_v10 = vpop.f32.mrf.mxu3 }
  0xcc   :  { %8052 = vst [vmem:[#allocation88_spill] sm:$0xff] %v5452_v10  ;;  %v5475_v10 = vsel %vm1077_vm3, %v1099_v55, %v1101_v4 }
  0xcd   :  { %3805 = vmatmul.msk.f32.gmra.mxu1 %vm395_vm2, %v5102_v43  ;;  %8056 = vst [vmem:[#allocation92_spill] sm:$0xff] %v5475_v10 }
  0xce   :  { %3866 = vmatmul.msk.f32.gmra.mxu2 %vm395_vm2, %v5455_v21  ;;  %v1103_v21 = vrot.slane %v5008_v7, 2 }
  0xcf   :  { %v5461_v5 = vpop.f32.mrf.mxu0 }
  0xd0   :  { %3931 = vmatmul.msk.f32.gmra.mxu3 %vm395_vm2, %v5008_v7 }
  0xd1   :  { %v5466_v40 = vpop.f32.mrf.mxu2 }
  0xd2   :  { %8054 = vst [vmem:[#allocation90_spill] sm:$0xff] %v5466_v40  ;;  %v5468_v36 = vpop.f32.mrf.mxu1  ;;  %3996 = vmatmul.msk.f32.gmra.mxu0 %vm395_vm2, %v5054_v41  ;;  %v1104_v40 = vrot.slane %v5013_v61, 2 }
  0xd3   :  { %v5472_v28 = vpop.f32.mrf.mxu3 }
  0xd4   :  { %8055 = vst [vmem:[#allocation91_spill] sm:$0xff] %v5472_v28  ;;  %v5496_v4 = vsel %vm1077_vm3, %v1103_v21, %v1104_v40 }
  0xd5   :  { %3806 = vmatmul.msk.f32.gmra.mxu1 %vm395_vm2, %v5107_v27  ;;  %8058 = vst [vmem:[#allocation94_spill] sm:$0xff] %v5496_v4 }
  0xd6   :  { %3867 = vmatmul.msk.f32.gmra.mxu2 %vm395_vm2, %v5475_v10 }
  0xd7   :  { %v5481_v42 = vpop.f32.mrf.mxu0 }
  0xd8   :  { %3932 = vmatmul.msk.f32.gmra.mxu3 %vm395_vm2, %v5013_v61  ;;  %v1106_v61 = vrot.slane %v5061_v17, 2 }
  0xd9   :  { %v5487_v41 = vpop.f32.mrf.mxu2 }
  0xda   :  { %v5489_v28 = vpop.f32.mrf.mxu1  ;;  %3997 = vmatmul.msk.f32.gmra.mxu0 %vm395_vm2, %v5095_v9 }
  0xdb   :  { %v5493_v55 = vpop.f32.mrf.mxu3 }
  0xdc   :  { %8057 = vst [vmem:[#allocation93_spill] sm:$0xff] %v5493_v55  ;;  %v5516_v55 = vsel %vm1077_vm3, %v1104_v40, %v1106_v61 }
  0xdd   :  { %3807 = vmatmul.msk.f32.gmra.mxu1 %vm395_vm2, %v5179_v13  ;;  %8061 = vst [vmem:[#allocation97_spill] sm:$0xff] %v5516_v55 }
  0xde   :  { %3868 = vmatmul.msk.f32.gmra.mxu2 %vm395_vm2, %v5496_v4  ;;  %v1108_v4 = vrot.slane %v5102_v43, 2 }
  0xdf   :  { %v5502_v7 = vpop.f32.mrf.mxu0 }
  0xe0   :  { %3933 = vmatmul.msk.f32.gmra.mxu3 %vm395_vm2, %v5102_v43 }
  0xe1   :  { %v5507_v10 = vpop.f32.mrf.mxu2 }
  0xe2   :  { %8059 = vst [vmem:[#allocation95_spill] sm:$0xff] %v5507_v10  ;;  %v5509_v9 = vpop.f32.mrf.mxu1  ;;  %3998 = vmatmul.msk.f32.gmra.mxu0 %vm395_vm2, %v5136_v58  ;;  %v1109_v10 = vrot.slane %v5107_v27, 2 }
  0xe3   :  { %v5513_v21 = vpop.f32.mrf.mxu3 }
  0xe4   :  { %8060 = vst [vmem:[#allocation96_spill] sm:$0xff] %v5513_v21  ;;  %v5535_v61 = vsel %vm1077_vm3, %v1108_v4, %v1109_v10 }
  0xe5   :  { %3808 = vmatmul.msk.f32.gmra.mxu1 %vm395_vm2, %v5184_v29  ;;  %8063 = vst [vmem:[#allocation99_spill] sm:$0xff] %v5535_v61 }
  0xe6   :  { %3869 = vmatmul.msk.f32.gmra.mxu2 %vm395_vm2, %v5516_v55 }
  0xe7   :  { %v5522_v17 = vpop.f32.mrf.mxu0 }
  0xe8   :  { %3934 = vmatmul.msk.f32.gmra.mxu3 %vm395_vm2, %v5107_v27  ;;  %v1111_v27 = vrot.slane %v5143_v47, 2 }
  0xe9   :  { %v5528_v58 = vpop.f32.mrf.mxu2 }
  0xea   :  { %v885_v21 = vpop.f32.mrf.mxu1  ;;  %3999 = vmatmul.msk.f32.gmra.mxu0 %vm395_vm2, %v5171_v44 }
  0xeb   :  { %v5532_v40 = vpop.f32.mrf.mxu3 }
  0xec   :  { %8062 = vst [vmem:[#allocation98_spill] sm:$0xff] %v5532_v40  ;;  %v5553_v40 = vsel %vm1077_vm3, %v1109_v10, %v1111_v27 }
  0xed   :  { %3809 = vmatmul.msk.f32.gmra.mxu1 %vm395_vm2, %v5258_v62  ;;  %8066 = vst [vmem:[#allocation102_spill] sm:$0xff] %v5553_v40 }
  0xee   :  { %3870 = vmatmul.msk.f32.gmra.mxu2 %vm395_vm2, %v5535_v61  ;;  %v1113_v61 = vrot.slane %v5179_v13, 2 }
  0xef   :  { %v5541_v43 = vpop.f32.mrf.mxu0 }
  0xf0   :  { %3935 = vmatmul.msk.f32.gmra.mxu3 %vm395_vm2, %v5179_v13 }
  0xf1   :  { %v5546_v55 = vpop.f32.mrf.mxu2 }
  0xf2   :  { %8064 = vst [vmem:[#allocation100_spill] sm:$0xff] %v5546_v55  ;;  %v888_v44 = vpop.f32.mrf.mxu1  ;;  %4000 = vmatmul.msk.f32.gmra.mxu0 %vm395_vm2, %v5218_v39  ;;  %v1114_v55 = vrot.slane %v5184_v29, 2 }
  0xf3   :  { %v5550_v4 = vpop.f32.mrf.mxu3 }
  0xf4   :  { %8065 = vst [vmem:[#allocation101_spill] sm:$0xff] %v5550_v4 }
  0xf5   :  { %3810 = vmatmul.msk.f32.gmra.mxu1 %vm395_vm2, %v4504_v1  ;;  %v5572_v1 = vsel %vm1077_vm3, %v1113_v61, %v1114_v55 }
  0xf6   :  { %3871 = vmatmul.msk.f32.gmra.mxu2 %vm395_vm2, %v5553_v40  ;;  %8069 = vst [vmem:[#allocation105_spill] sm:$0xff] %v5572_v1  ;;  %v886_v40 = vadd.f32 %v885_v21, %v5277_v60 }
  0xf7   :  { %v5559_v47 = vpop.f32.mrf.mxu0 }
  0xf8   :  { %3936 = vmatmul.msk.f32.gmra.mxu3 %vm395_vm2, %v5184_v29  ;;  %v1116_v29 = vrot.slane %v5225_v18, 2 }
  0xf9   :  { %v5565_v39 = vpop.f32.mrf.mxu2 }
  0xfa   :  { %8067 = vst [vmem:[#allocation103_spill] sm:$0xff] %v5565_v39  ;;  %v891_v4 = vpop.f32.mrf.mxu1  ;;  %4001 = vmatmul.msk.f32.gmra.mxu0 %vm395_vm2, %v5251_v32  ;;  %v889_v39 = vadd.f32 %v888_v44, %v5300_v23 }
  0xfb   :  { %v5569_v10 = vpop.f32.mrf.mxu3  ;;  %v892_v23 = vadd.f32 %v891_v4, %v5317_v31  ;;  %v1128_v4 = vrot.slane %v4653_v52, 2 }
  0xfc   :  { %8068 = vst [vmem:[#allocation104_spill] sm:$0xff] %v5569_v10  ;;  %v1118_v10 = vrot.slane %v5258_v62, 2 }
  0xfd   :  { %3811 = vmatmul.msk.f32.gmra.mxu1 %vm395_vm2, %v4530_v11  ;;  %v5592_v11 = vsel %vm1077_vm3, %v1114_v55, %v1116_v29 }
  0xfe   :  { %3872 = vmatmul.msk.f32.gmra.mxu2 %vm395_vm2, %v5572_v1  ;;  %8072 = vst [vmem:[#allocation108_spill] sm:$0xff] %v5592_v11  ;;  %v4322_v1 = vld [vmem:[%s7791_s0 + $0xc8] sm:$0xff] }
  0xff   :  { %v5578_v13 = vpop.f32.mrf.mxu0 }
 0x100   :  { %3937 = vmatmul.msk.f32.gmra.mxu3 %vm395_vm2, %v5258_v62 }
 0x101   :  { %v5583_v27 = vpop.f32.mrf.mxu2 }
 0x102   :  { %8070 = vst [vmem:[#allocation106_spill] sm:$0xff] %v5583_v27  ;;  %v5585_v32 = vpop.f32.mrf.mxu1  ;;  %4002 = vmatmul.msk.f32.gmra.mxu0 %vm395_vm2, %v5284_v24  ;;  %v1119_v24 = vrot.slane %v4322_v1, 2 }
 0x103   :  { %v5589_v61 = vpop.f32.mrf.mxu3 }
 0x104   :  { %8071 = vst [vmem:[#allocation107_spill] sm:$0xff] %v5589_v61  ;;  %v5614_v29 = vsel %vm1077_vm3, %v1118_v10, %v1119_v24 }
 0x105   :  { %3812 = vmatmul.msk.f32.gmra.mxu1 %vm395_vm2, %v4549_v16  ;;  %8075 = vst [vmem:[#allocation111_spill] sm:$0xff] %v5614_v29 }
 0x106   :  { %3873 = vmatmul.msk.f32.gmra.mxu2 %vm395_vm2, %v5592_v11 }
 0x107   :  { %v5598_v18 = vpop.f32.mrf.mxu0 }
 0x108   :  { %3938 = vmatmul.msk.f32.gmra.mxu3 %vm395_vm2, %v4322_v1  ;;  %v4323_v1 = vld [vmem:[%s7791_s0 + $0xd0] sm:$0x3] }
 0x109   :  { %v5605_v61 = vpop.f32.mrf.mxu2  ;;  %v1121_v11 = vrot.slane %v4323_v1, 2 }
 0x10a   :  { %8073 = vst [vmem:[#allocation109_spill] sm:$0xff] %v5605_v61  ;;  %v5607_v55 = vpop.f32.mrf.mxu1  ;;  %4003 = vmatmul.msk.f32.gmra.mxu0 %vm395_vm2, %v4536_v12 }
 0x10b   :  { %v5611_v16 = vpop.f32.mrf.mxu3  ;;  %v5633_v27 = vsel %vm1077_vm3, %v1119_v24, %v1121_v11 }
 0x10c   :  { %8074 = vst [vmem:[#allocation110_spill] sm:$0xff] %v5611_v16  ;;  %v4324_v16 = vld [vmem:[%s7791_s0 + $0xd8] sm:$0xff] }
 0x10d   :  { %3813 = vmatmul.msk.f32.gmra.mxu1 %vm395_vm2, %v4653_v52 }
 0x10e   :  { %3874 = vmatmul.msk.f32.gmra.mxu2 %vm395_vm2, %v5614_v29 }
 0x10f   :  { %v1970_v62 = vpop.f32.mrf.mxu0 }
 0x110   :  { %3939 = vmatmul.msk.f32.gmra.mxu3 %vm395_vm2, %v4324_v16 }
 0x111   :  { %v1386_v10 = vpop.f32.mrf.mxu2 }
 0x112   :  { %v1578_v12 = vadd.f32 %v1386_v10, %v886_v40  ;;  %v5628_v61 = vpop.f32.mrf.mxu1  ;;  %4004 = vmatmul.msk.f32.gmra.mxu0 %vm395_vm2, %v4600_v35  ;;  %v1123_v40 = vrot.slane %v4324_v16, 2  ;;  %v4325_v10 = vld [vmem:[%s7791_s0 + $0xe0] sm:$0xff] }
 0x113   :  { %v1674_v29 = vpop.f32.mrf.mxu3  ;;  %v1124_v35 = vrot.slane %v4325_v10, 2 }
 0x114   :  { %v1866_v1 = vadd.f32 %v1674_v29, %v1578_v12 }
 0x115   :  { %3814 = vmatmul.msk.f32.gmra.mxu1 %vm395_vm2, %v4658_v53 }
 0x116   :  { %v5637_v60 = vadd.f32 %v1970_v62, %v1866_v1  ;;  %3875 = vmatmul.msk.f32.gmra.mxu2 %vm395_vm2, %v5633_v27  ;;  %v5651_v62 = vsel %vm1077_vm3, %v1123_v40, %v1124_v35 }
 0x117   :  { %v1973_v21 = vpop.f32.mrf.mxu0 }
 0x118   :  { %3940 = vmatmul.msk.f32.gmra.mxu3 %vm395_vm2, %v4325_v10 }
 0x119   :  { %v1389_v12 = vpop.f32.mrf.mxu2 }
 0x11a   :  { %v1579_v24 = vadd.f32 %v1389_v12, %v889_v39  ;;  %v5646_v11 = vpop.f32.mrf.mxu1  ;;  %4005 = vmatmul.msk.f32.gmra.mxu0 %vm395_vm2, %v4647_v51  ;;  %v1126_v39 = vrot.slane %v4609_v37, 2 }
 0x11b   :  { %v1677_v29 = vpop.f32.mrf.mxu3 }
 0x11c   :  { %v1867_v16 = vadd.f32 %v1677_v29, %v1579_v24  ;;  %v5668_v24 = vsel %vm1077_vm3, %v1124_v35, %v1126_v39 }
 0x11d   :  { %3815 = vmatmul.msk.f32.gmra.mxu1 %vm395_vm2, %v4744_v33 }
 0x11e   :  { %v5655_v1 = vadd.f32 %v1973_v21, %v1867_v16  ;;  %3876 = vmatmul.msk.f32.gmra.mxu2 %vm395_vm2, %v5651_v62  ;;  %v1129_v16 = vrot.slane %v4658_v53, 2 }
 0x11f   :  { %v1976_v44 = vpop.f32.mrf.mxu0 }
 0x120   :  { %3941 = vmatmul.msk.f32.gmra.mxu3 %vm395_vm2, %v4653_v52 }
 0x121   :  { %v1392_v10 = vpop.f32.mrf.mxu2 }
 0x122   :  { %v1580_v40 = vadd.f32 %v1392_v10, %v892_v23  ;;  %v5663_v12 = vpop.f32.mrf.mxu1  ;;  %4006 = vmatmul.msk.f32.gmra.mxu0 %vm395_vm2, %v4691_v6  ;;  %v895_v23 = vadd.f32 %v5585_v32, %v5338_v48  ;;  %v8077_v32 = vld [vmem:[#allocation12_spill] sm:$0xff] }
 0x123   :  { %v1680_v21 = vpop.f32.mrf.mxu3  ;;  %v1131_v48 = vrot.slane %v8077_v32, 2 }
 0x124   :  { %v1868_v29 = vadd.f32 %v1680_v21, %v1580_v40  ;;  %v5687_v40 = vsel %vm1077_vm3, %v1128_v4, %v1129_v16 }
 0x125   :  { %3816 = vmatmul.msk.f32.gmra.mxu1 %vm395_vm2, %v4749_v34 }
 0x126   :  { %v5672_v37 = vadd.f32 %v1976_v44, %v1868_v29  ;;  %3877 = vmatmul.msk.f32.gmra.mxu2 %vm395_vm2, %v5668_v24  ;;  %v898_v29 = vadd.f32 %v5607_v55, %v5358_v2  ;;  %v1133_v55 = vrot.slane %v4744_v33, 2 }
 0x127   :  { %v1979_v31 = vpop.f32.mrf.mxu0 }
 0x128   :  { %3942 = vmatmul.msk.f32.gmra.mxu3 %vm395_vm2, %v4658_v53 }
 0x129   :  { %v1395_v35 = vpop.f32.mrf.mxu2 }
 0x12a   :  { %v1581_v39 = vadd.f32 %v1395_v35, %v895_v23  ;;  %v5682_v10 = vpop.f32.mrf.mxu1  ;;  %4007 = vmatmul.msk.f32.gmra.mxu0 %vm395_vm2, %v4734_v30 }
 0x12b   :  { %v1683_v44 = vpop.f32.mrf.mxu3 }
 0x12c   :  { %v1869_v52 = vadd.f32 %v1683_v44, %v1581_v39  ;;  %v8078_v39 = vld [vmem:[#allocation17_spill] sm:$0xff]  ;;  %v5705_v44 = vsel %vm1077_vm3, %v1129_v16, %v1131_v48 }
 0x12d   :  { %3817 = vmatmul.msk.f32.gmra.mxu1 %vm395_vm2, %v4838_v38 }
 0x12e   :  { %v5691_v21 = vadd.f32 %v1979_v31, %v1869_v52  ;;  %3878 = vmatmul.msk.f32.gmra.mxu2 %vm395_vm2, %v5687_v40 }
 0x12f   :  { %v1982_v53 = vpop.f32.mrf.mxu0 }
 0x130   :  { %8076 = vst [vmem:[#allocation112_spill] sm:$0xff] %v5691_v21  ;;  %3943 = vmatmul.msk.f32.gmra.mxu3 %vm395_vm2, %v4744_v33  ;;  %v8079_v21 = vld [vmem:[#allocation24_spill] sm:$0xff] }
 0x131   :  { %v1398_v4 = vpop.f32.mrf.mxu2 }
 0x132   :  { %v1582_v23 = vadd.f32 %v1398_v4, %v898_v29  ;;  %v5700_v35 = vpop.f32.mrf.mxu1  ;;  %4008 = vmatmul.msk.f32.gmra.mxu0 %vm395_vm2, %v8078_v39  ;;  %v1134_v29 = vrot.slane %v4749_v34, 2  ;;  %v901_v4 = vadd.f32 %v5628_v61, %v5379_v26  ;;  %v8084_v26 = vld [vmem:[#allocation19_spill] sm:$0xff] }
 0x133   :  { %v1686_v31 = vpop.f32.mrf.mxu3  ;;  %v1136_v61 = vrot.slane %v8084_v26, 2 }
 0x134   :  { %v1870_v52 = vadd.f32 %v1686_v31, %v1582_v23 }
 0x135   :  { %3818 = vmatmul.msk.f32.gmra.mxu1 %vm395_vm2, %v8079_v21 }
 0x136   :  { %v5709_v32 = vadd.f32 %v1982_v53, %v1870_v52  ;;  %3879 = vmatmul.msk.f32.gmra.mxu2 %vm395_vm2, %v5705_v44  ;;  %v8081_v53 = vld [vmem:[#allocation22_spill] sm:$0xff]  ;;  %v5724_v52 = vsel %vm1077_vm3, %v1133_v55, %v1134_v29 }
 0x137   :  { %v1985_v2 = vpop.f32.mrf.mxu0 }
 0x138   :  { %8080 = vst [vmem:[#allocation12_spill] sm:$0xff] %v5709_v32  ;;  %3944 = vmatmul.msk.f32.gmra.mxu3 %vm395_vm2, %v4749_v34  ;;  %v8082_v32 = vld [vmem:[#allocation34_spill] sm:$0xff] }
 0x139   :  { %v1401_v16 = vpop.f32.mrf.mxu2 }
 0x13a   :  { %v1583_v48 = vadd.f32 %v1401_v16, %v901_v4  ;;  %v5719_v23 = vpop.f32.mrf.mxu1  ;;  %4009 = vmatmul.msk.f32.gmra.mxu0 %vm395_vm2, %v8081_v53  ;;  %v904_v4 = vadd.f32 %v5646_v11, %v5399_v54  ;;  %v8086_v53 = vld [vmem:[#allocation35_spill] sm:$0xff]  ;;  %v1138_v11 = vrot.slane %v4838_v38, 2 }
 0x13b   :  { %v1689_v31 = vpop.f32.mrf.mxu3 }
 0x13c   :  { %v1871_v33 = vadd.f32 %v1689_v31, %v1583_v48  ;;  %v8085_v31 = vld [vmem:[#allocation27_spill] sm:$0xff] }
 0x13d   :  { %3819 = vmatmul.msk.f32.gmra.mxu1 %vm395_vm2, %v8082_v32 }
 0x13e   :  { %v5728_v39 = vadd.f32 %v1985_v2, %v1871_v33  ;;  %3880 = vmatmul.msk.f32.gmra.mxu2 %vm395_vm2, %v5724_v52  ;;  %v5742_v33 = vsel %vm1077_vm3, %v1134_v29, %v1136_v61 }
 0x13f   :  { %v1988_v34 = vpop.f32.mrf.mxu0 }
 0x140   :  { %8083 = vst [vmem:[#allocation24_spill] sm:$0xff] %v5728_v39  ;;  %3945 = vmatmul.msk.f32.gmra.mxu3 %vm395_vm2, %v4838_v38 }
 0x141   :  { %v1404_v55 = vpop.f32.mrf.mxu2 }
 0x142   :  { %v1584_v16 = vadd.f32 %v1404_v55, %v904_v4  ;;  %v5737_v48 = vpop.f32.mrf.mxu1  ;;  %4010 = vmatmul.msk.f32.gmra.mxu0 %vm395_vm2, %v8085_v31  ;;  %v1139_v4 = vrot.slane %v8079_v21, 2  ;;  %v907_v55 = vadd.f32 %v5663_v12, %v5420_v19  ;;  %v8091_v12 = vld [vmem:[#allocation29_spill] sm:$0xff] }
 0x143   :  { %v1692_v2 = vpop.f32.mrf.mxu3 }
 0x144   :  { %v1872_v39 = vadd.f32 %v1692_v2, %v1584_v16  ;;  %v5761_v2 = vsel %vm1077_vm3, %v1138_v11, %v1139_v4 }
 0x145   :  { %3820 = vmatmul.msk.f32.gmra.mxu1 %vm395_vm2, %v8086_v53 }
 0x146   :  { %v5746_v26 = vadd.f32 %v1988_v34, %v1872_v39  ;;  %3881 = vmatmul.msk.f32.gmra.mxu2 %vm395_vm2, %v5742_v33  ;;  %v8088_v39 = vld [vmem:[#allocation32_spill] sm:$0xff] }
 0x147   :  { %v1991_v54 = vpop.f32.mrf.mxu0 }
 0x148   :  { %8087 = vst [vmem:[#allocation34_spill] sm:$0xff] %v5746_v26  ;;  %3946 = vmatmul.msk.f32.gmra.mxu3 %vm395_vm2, %v8079_v21  ;;  %v8089_v26 = vld [vmem:[#allocation45_spill] sm:$0xff]  ;;  %v1141_v21 = vrot.slane %v8091_v12, 2 }
 0x149   :  { %v1407_v29 = vpop.f32.mrf.mxu2 }
 0x14a   :  { %v1585_v61 = vadd.f32 %v1407_v29, %v907_v55  ;;  %v5756_v16 = vpop.f32.mrf.mxu1  ;;  %4011 = vmatmul.msk.f32.gmra.mxu0 %vm395_vm2, %v8088_v39  ;;  %v910_v55 = vadd.f32 %v5682_v10, %v5440_v56  ;;  %v8093_v39 = vld [vmem:[#allocation46_spill] sm:$0xff]  ;;  %v1143_v10 = vrot.slane %v8082_v32, 2 }
 0x14b   :  { %v1695_v34 = vpop.f32.mrf.mxu3 }
 0x14c   :  { %v1873_v38 = vadd.f32 %v1695_v34, %v1585_v61  ;;  %v8092_v34 = vld [vmem:[#allocation38_spill] sm:$0xff] }
 0x14d   :  { %3821 = vmatmul.msk.f32.gmra.mxu1 %vm395_vm2, %v8089_v26 }
 0x14e   :  { %v5765_v31 = vadd.f32 %v1991_v54, %v1873_v38  ;;  %3882 = vmatmul.msk.f32.gmra.mxu2 %vm395_vm2, %v5761_v2  ;;  %v5779_v38 = vsel %vm1077_vm3, %v1139_v4, %v1141_v21 }
 0x14f   :  { %v1994_v19 = vpop.f32.mrf.mxu0 }
 0x150   :  { %8090 = vst [vmem:[#allocation19_spill] sm:$0xff] %v5765_v31  ;;  %3947 = vmatmul.msk.f32.gmra.mxu3 %vm395_vm2, %v8082_v32 }
 0x151   :  { %v1410_v11 = vpop.f32.mrf.mxu2 }
 0x152   :  { %v1586_v29 = vadd.f32 %v1410_v11, %v910_v55  ;;  %v5774_v61 = vpop.f32.mrf.mxu1  ;;  %4012 = vmatmul.msk.f32.gmra.mxu0 %vm395_vm2, %v8092_v34  ;;  %v1144_v55 = vrot.slane %v8086_v53, 2  ;;  %v913_v11 = vadd.f32 %v5700_v35, %v5461_v5 }
 0x153   :  { %v1698_v54 = vpop.f32.mrf.mxu3 }
 0x154   :  { %v1874_v31 = vadd.f32 %v1698_v54, %v1586_v29  ;;  %v5798_v54 = vsel %vm1077_vm3, %v1143_v10, %v1144_v55  ;;  %v916_v10 = vadd.f32 %v5719_v23, %v5481_v42 }
 0x155   :  { %3822 = vmatmul.msk.f32.gmra.mxu1 %vm395_vm2, %v8093_v39 }
 0x156   :  { %v5783_v12 = vadd.f32 %v1994_v19, %v1874_v31  ;;  %3883 = vmatmul.msk.f32.gmra.mxu2 %vm395_vm2, %v5779_v38  ;;  %v8095_v31 = vld [vmem:[#allocation43_spill] sm:$0xff] }
 0x157   :  { %v1997_v56 = vpop.f32.mrf.mxu0 }
 0x158   :  { %8094 = vst [vmem:[#allocation35_spill] sm:$0xff] %v5783_v12  ;;  %3948 = vmatmul.msk.f32.gmra.mxu3 %vm395_vm2, %v8086_v53  ;;  %v5803_v12 = vld [vmem:[%s7791_s0 + $0x168] sm:$0xff]  ;;  %v8097_v53 = vld [vmem:[#allocation40_spill] sm:$0xff] }
 0x159   :  { %v1413_v4 = vpop.f32.mrf.mxu2 }
 0x15a   :  { %v1587_v21 = vadd.f32 %v1413_v4, %v913_v11  ;;  %v5793_v29 = vpop.f32.mrf.mxu1  ;;  %4013 = vmatmul.msk.f32.gmra.mxu0 %vm395_vm2, %v8095_v31  ;;  %v1146_v11 = vrot.slane %v8097_v53, 2  ;;  %v8098_v31 = vld [vmem:[#allocation49_spill] sm:$0xff]  ;;  %v5826_v53 = vld [vmem:[%s7791_s0 + $0x170] sm:$0xff] }
 0x15b   :  { %v1701_v19 = vpop.f32.mrf.mxu3 }
 0x15c   :  { %v1875_v32 = vadd.f32 %v1701_v19, %v1587_v21 }
 0x15d   :  { %3823 = vmatmul.msk.f32.gmra.mxu1 %vm395_vm2, %v5803_v12 }
 0x15e   :  { %v5807_v5 = vadd.f32 %v1997_v56, %v1875_v32  ;;  %3884 = vmatmul.msk.f32.gmra.mxu2 %vm395_vm2, %v5798_v54  ;;  %v5821_v32 = vsel %vm1077_vm3, %v1144_v55, %v1146_v11  ;;  %v1149_v55 = vrot.slane %v8093_v39, 2  ;;  %v919_v11 = vadd.f32 %v5737_v48, %v5502_v7 }
 0x15f   :  { %v2000_v35 = vpop.f32.mrf.mxu0 }
 0x160   :  { %8096 = vst [vmem:[#allocation45_spill] sm:$0xff] %v5807_v5  ;;  %3949 = vmatmul.msk.f32.gmra.mxu3 %vm395_vm2, %v8089_v26 }
 0x161   :  { %v1416_v4 = vpop.f32.mrf.mxu2 }
 0x162   :  { %v1588_v21 = vadd.f32 %v1416_v4, %v916_v10  ;;  %v5816_v19 = vpop.f32.mrf.mxu1  ;;  %4014 = vmatmul.msk.f32.gmra.mxu0 %vm395_vm2, %v8098_v31  ;;  %v1148_v10 = vrot.slane %v8089_v26, 2  ;;  %v5850_v31 = vld [vmem:[%s7791_s0 + $0x1b0] sm:$0xff] }
 0x163   :  { %v1704_v56 = vpop.f32.mrf.mxu3 }
 0x164   :  { %v1876_v5 = vadd.f32 %v1704_v56, %v1588_v21 }
 0x165   :  { %3824 = vmatmul.msk.f32.gmra.mxu1 %vm395_vm2, %v5826_v53 }
 0x166   :  { %v5830_v42 = vadd.f32 %v2000_v35, %v1876_v5  ;;  %3885 = vmatmul.msk.f32.gmra.mxu2 %vm395_vm2, %v5821_v32  ;;  %v8100_v5 = vld [vmem:[#allocation54_spill] sm:$0xff] }
 0x167   :  { %v2003_v23 = vpop.f32.mrf.mxu0 }
 0x168   :  { %8099 = vst [vmem:[#allocation29_spill] sm:$0xff] %v5830_v42  ;;  %3950 = vmatmul.msk.f32.gmra.mxu3 %vm395_vm2, %v8093_v39  ;;  %v5845_v42 = vsel %vm1077_vm3, %v1148_v10, %v1149_v55  ;;  %v8103_v39 = vld [vmem:[#allocation51_spill] sm:$0xff]  ;;  %v922_v10 = vadd.f32 %v5756_v16, %v5522_v17 }
 0x169   :  { %v1419_v4 = vpop.f32.mrf.mxu2  ;;  %8101 = vst [vmem:[#allocation46_spill] sm:$0xff] %v5845_v42 }
 0x16a   :  { %v1589_v21 = vadd.f32 %v1419_v4, %v919_v11  ;;  %v5840_v56 = vpop.f32.mrf.mxu1  ;;  %4015 = vmatmul.msk.f32.gmra.mxu0 %vm395_vm2, %v8100_v5  ;;  %v1151_v11 = vrot.slane %v8103_v39, 2  ;;  %v8104_v5 = vld [vmem:[#allocation6_spill] sm:$0xff]  ;;  %v5873_v39 = vld [vmem:[%s7791_s0 + $0x1b8] sm:$0xff] }
 0x16b   :  { %v1707_v35 = vpop.f32.mrf.mxu3 }
 0x16c   :  { %v1877_v26 = vadd.f32 %v1707_v35, %v1589_v21 }
 0x16d   :  { %3825 = vmatmul.msk.f32.gmra.mxu1 %vm395_vm2, %v5850_v31 }
 0x16e   :  { %v5854_v7 = vadd.f32 %v2003_v23, %v1877_v26  ;;  %3886 = vmatmul.msk.f32.gmra.mxu2 %vm395_vm2, %v5845_v42  ;;  %v5868_v26 = vsel %vm1077_vm3, %v1149_v55, %v1151_v11  ;;  %v1154_v55 = vrot.slane %v5826_v53, 2  ;;  %v925_v11 = vadd.f32 %v5774_v61, %v5541_v43 }
 0x16f   :  { %v2006_v48 = vpop.f32.mrf.mxu0  ;;  %8105 = vst [vmem:[#allocation51_spill] sm:$0xff] %v5868_v26 }
 0x170   :  { %8102 = vst [vmem:[#allocation40_spill] sm:$0xff] %v5854_v7  ;;  %3951 = vmatmul.msk.f32.gmra.mxu3 %vm395_vm2, %v5803_v12 }
 0x171   :  { %v1422_v4 = vpop.f32.mrf.mxu2 }
 0x172   :  { %v1590_v21 = vadd.f32 %v1422_v4, %v922_v10  ;;  %v5863_v35 = vpop.f32.mrf.mxu1  ;;  %4016 = vmatmul.msk.f32.gmra.mxu0 %vm395_vm2, %v8104_v5  ;;  %v1153_v10 = vrot.slane %v5803_v12, 2  ;;  %v70_v4 = vld [vmem:[%s7791_s0 + $0x188] sm:$0xff]  ;;  %v69_v12 = vld [vmem:[%s7791_s0 + $0x180] sm:$0xff] }
 0x173   :  { %v1710_v23 = vpop.f32.mrf.mxu3  ;;  %v1932_v61 = vrot.slane %v69_v12, 1 }
 0x174   :  { %v1878_v7 = vadd.f32 %v1710_v23, %v1590_v21  ;;  %v8107_v23 = vld [vmem:[#allocation9_spill] sm:$0xff]  ;;  %v5898_v43 = vsel %vm1077_vm3, %v1153_v10, %v1154_v55  ;;  %v4331_v10 = vld [vmem:[%s7791_s0 + $0x178] sm:$0x3] }
 0x175   :  { %3826 = vmatmul.msk.f32.gmra.mxu1 %vm395_vm2, %v5873_v39  ;;  %8108 = vst [vmem:[#allocation114_spill] sm:$0xff] %v5898_v43 }
 0x176   :  { %v5877_v17 = vadd.f32 %v2006_v48, %v1878_v7  ;;  %3887 = vmatmul.msk.f32.gmra.mxu2 %vm395_vm2, %v5868_v26  ;;  %v1156_v26 = vrot.slane %v4331_v10, 2 }
 0x177   :  { %v2009_v16 = vpop.f32.mrf.mxu0 }
 0x178   :  { %8106 = vst [vmem:[#allocation113_spill] sm:$0xff] %v5877_v17  ;;  %3952 = vmatmul.msk.f32.gmra.mxu3 %vm395_vm2, %v5826_v53  ;;  %v1933_v53 = vrot.slane %v70_v4, 1 }
 0x179   :  { %v1425_v7 = vpop.f32.mrf.mxu2 }
 0x17a   :  { %v1591_v48 = vadd.f32 %v1425_v7, %v925_v11  ;;  %v5890_v21 = vpop.f32.mrf.mxu1  ;;  %4017 = vmatmul.msk.f32.gmra.mxu0 %vm395_vm2, %v8107_v23  ;;  %v5903_v11 = vld [vmem:[%s7791_s0 + $0x1c8] sm:$0xff] }
 0x17b   :  { %v1713_v17 = vpop.f32.mrf.mxu3 }
 0x17c   :  { %v1879_v5 = vadd.f32 %v1713_v17, %v1591_v48  ;;  %v5915_v17 = vsel %vm234_vm1, %v1932_v61, %v1933_v53  ;;  %v928_v48 = vadd.f32 %v5793_v29, %v5559_v47  ;;  %v5928_v61 = vsel %vm1077_vm3, %v1154_v55, %v1156_v26  ;;  %v5933_v47 = vld [vmem:[%s7791_s0 + $0x1d0] sm:$0xff] }
 0x17d   :  { %3827 = vmatmul.msk.f32.gmra.mxu1 %vm395_vm2, %v5903_v11  ;;  %v1159_v26 = vrot.slane %v5873_v39, 2  ;;  %v4334_v39 = vld [vmem:[%s7791_s0 + $0x1c0] sm:$0x3] }
 0x17e   :  { %v5907_v7 = vadd.f32 %v2009_v16, %v1879_v5  ;;  %3888 = vmatmul.msk.f32.gmra.mxu2 %vm395_vm2, %v5898_v43  ;;  %v71_v5 = vld [vmem:[%s7791_s0 + $0x190] sm:$0x3] }
 0x17f   :  { %v2012_v23 = vpop.f32.mrf.mxu0  ;;  %v1935_v34 = vrot.slane %v71_v5, 1 }
 0x180   :  { %8109 = vst [vmem:[#allocation115_spill] sm:$0xff] %v5907_v7  ;;  %3953 = vmatmul.msk.f32.gmra.mxu3 %vm395_vm2, %v69_v12 }
 0x181   :  { %v1428_v16 = vpop.f32.mrf.mxu2  ;;  %v5944_v55 = vsel %vm234_vm1, %v1933_v53, %v1935_v34  ;;  %v5957_v34 = vld [vmem:[%s7791_s0 + $0x1e0] sm:$0xff]  ;;  %v934_v53 = vadd.f32 %v5840_v56, %v5598_v18 }
 0x182   :  { %v1592_v7 = vadd.f32 %v1428_v16, %v928_v48  ;;  %v5923_v43 = vpop.f32.mrf.mxu1  ;;  %4018 = vmatmul.msk.f32.gmra.mxu0 %vm395_vm2, %v5915_v17  ;;  %v1158_v48 = vrot.slane %v5850_v31, 2 }
 0x183   :  { %v1716_v10 = vpop.f32.mrf.mxu3 }
 0x184   :  { %v1880_v42 = vadd.f32 %v1716_v10, %v1592_v7  ;;  %v931_v7 = vadd.f32 %v5816_v19, %v5578_v13  ;;  %v1160_v31 = vsel %vm1077_vm3, %v1158_v48, %v1159_v26 }
 0x185   :  { %3828 = vmatmul.msk.f32.gmra.mxu1 %vm395_vm2, %v5933_v47 }
 0x186   :  { %v5937_v29 = vadd.f32 %v2012_v23, %v1880_v42  ;;  %3889 = vmatmul.msk.f32.gmra.mxu2 %vm395_vm2, %v5928_v61 }
 0x187   :  { %v2015_v12 = vpop.f32.mrf.mxu0 }
 0x188   :  { %3954 = vmatmul.msk.f32.gmra.mxu3 %vm395_vm2, %v70_v4  ;;  %v1161_v4 = vrot.slane %v4334_v39, 2  ;;  %v1163_v39 = vrot.slane %v5903_v11, 2 }
 0x189   :  { %v1431_v5 = vpop.f32.mrf.mxu2 }
 0x18a   :  { %v1593_v16 = vadd.f32 %v1431_v5, %v931_v7  ;;  %v5949_v42 = vpop.f32.mrf.mxu1  ;;  %4019 = vmatmul.msk.f32.gmra.mxu0 %vm395_vm2, %v5944_v55 }
 0x18b   :  { %v1719_v23 = vpop.f32.mrf.mxu3 }
 0x18c   :  { %v1881_v10 = vadd.f32 %v1719_v23, %v1593_v16  ;;  %v1162_v23 = vsel %vm1077_vm3, %v1159_v26, %v1161_v4  ;;  %v937_v26 = vadd.f32 %v5863_v35, %v5260_v8 }
 0x18d   :  { %3829 = vmatmul.msk.f32.gmra.mxu1 %vm395_vm2, %v5957_v34 }
 0x18e   :  { %v5961_v13 = vadd.f32 %v2015_v12, %v1881_v10  ;;  %3890 = vmatmul.msk.f32.gmra.mxu2 %vm395_vm2, %v1160_v31  ;;  %v8110_v12 = vld [vmem:[#allocation14_spill] sm:$0xff] }
 0x18f   :  { %v2018_v19 = vpop.f32.mrf.mxu0  ;;  %v5979_v10 = vld [vmem:[%s7791_s0 + $0x1e8] sm:$0xff] }
 0x190   :  { %3955 = vmatmul.msk.f32.gmra.mxu3 %vm395_vm2, %v5903_v11 }
 0x191   :  { %v1434_v48 = vpop.f32.mrf.mxu2 }
 0x192   :  { %v1594_v7 = vadd.f32 %v1434_v48, %v934_v53  ;;  %v5971_v5 = vpop.f32.mrf.mxu1  ;;  %4020 = vmatmul.msk.f32.gmra.mxu0 %vm395_vm2, %v8110_v12  ;;  %v1164_v53 = vrot.slane %v5933_v47, 2  ;;  %v8111_v12 = vld [vmem:[#allocation18_spill] sm:$0xff] }
 0x193   :  { %v1722_v16 = vpop.f32.mrf.mxu3 }
 0x194   :  { %v1882_v31 = vadd.f32 %v1722_v16, %v1594_v7  ;;  %v5997_v16 = vsel %vm1077_vm3, %v1163_v39, %v1164_v53  ;;  %v940_v39 = vadd.f32 %v5890_v21, %v5290_v59 }
 0x195   :  { %3830 = vmatmul.msk.f32.gmra.mxu1 %vm395_vm2, %v5979_v10 }
 0x196   :  { %v5983_v18 = vadd.f32 %v2018_v19, %v1882_v31  ;;  %3891 = vmatmul.msk.f32.gmra.mxu2 %vm395_vm2, %v1162_v23  ;;  %v6002_v23 = vld [vmem:[%s7791_s0 + $0x1f8] sm:$0xff] }
 0x197   :  { %v2021_v56 = vpop.f32.mrf.mxu0 }
 0x198   :  { %3956 = vmatmul.msk.f32.gmra.mxu3 %vm395_vm2, %v5933_v47  ;;  %v4337_v47 = vld [vmem:[%s7791_s0 + $0x1d8] sm:$0x3] }
 0x199   :  { %v1437_v4 = vpop.f32.mrf.mxu2  ;;  %v1166_v31 = vrot.slane %v4337_v47, 2  ;;  %v6027_v47 = vld [vmem:[%s7791_s0 + $0x200] sm:$0xff] }
 0x19a   :  { %v1595_v48 = vadd.f32 %v1437_v4, %v937_v26  ;;  %v5992_v7 = vpop.f32.mrf.mxu1  ;;  %4021 = vmatmul.msk.f32.gmra.mxu0 %vm395_vm2, %v8111_v12 }
 0x19b   :  { %v1725_v19 = vpop.f32.mrf.mxu3 }
 0x19c   :  { %v1883_v11 = vadd.f32 %v1725_v19, %v1595_v48  ;;  %v6022_v19 = vsel %vm1077_vm3, %v1164_v53, %v1166_v31  ;;  %v1169_v53 = vrot.slane %v5979_v10, 2  ;;  %v943_v31 = vadd.f32 %v5923_v43, %v5307_v46 }
 0x19d   :  { %3831 = vmatmul.msk.f32.gmra.mxu1 %vm395_vm2, %v6002_v23 }
 0x19e   :  { %v6006_v8 = vadd.f32 %v2021_v56, %v1883_v11  ;;  %3892 = vmatmul.msk.f32.gmra.mxu2 %vm395_vm2, %v5997_v16  ;;  %v8113_v56 = vld [vmem:[#allocation23_spill] sm:$0xff] }
 0x19f   :  { %v2024_v35 = vpop.f32.mrf.mxu0 }
 0x1a0   :  { %8112 = vst [vmem:[#allocation14_spill] sm:$0xff] %v6006_v8  ;;  %3957 = vmatmul.msk.f32.gmra.mxu3 %vm395_vm2, %v5957_v34  ;;  %v6051_v8 = vld [vmem:[%s7791_s0 + $0x210] sm:$0xff] }
 0x1a1   :  { %v1440_v26 = vpop.f32.mrf.mxu2 }
 0x1a2   :  { %v1596_v4 = vadd.f32 %v1440_v26, %v940_v39  ;;  %v6017_v48 = vpop.f32.mrf.mxu1  ;;  %4022 = vmatmul.msk.f32.gmra.mxu0 %vm395_vm2, %v8113_v56  ;;  %v1168_v39 = vrot.slane %v5957_v34, 2 }
 0x1a3   :  { %v1728_v12 = vpop.f32.mrf.mxu3 }
 0x1a4   :  { %v1884_v11 = vadd.f32 %v1728_v12, %v1596_v4 }
 0x1a5   :  { %3832 = vmatmul.msk.f32.gmra.mxu1 %vm395_vm2, %v6027_v47 }
 0x1a6   :  { %v6031_v59 = vadd.f32 %v2024_v35, %v1884_v11  ;;  %3893 = vmatmul.msk.f32.gmra.mxu2 %vm395_vm2, %v6022_v19  ;;  %v8115_v35 = vld [vmem:[#allocation28_spill] sm:$0xff] }
 0x1a7   :  { %v2027_v21 = vpop.f32.mrf.mxu0 }
 0x1a8   :  { %8114 = vst [vmem:[#allocation18_spill] sm:$0xff] %v6031_v59  ;;  %3958 = vmatmul.msk.f32.gmra.mxu3 %vm395_vm2, %v5979_v10  ;;  %v6046_v59 = vsel %vm1077_vm3, %v1168_v39, %v1169_v53  ;;  %v4340_v10 = vld [vmem:[%s7791_s0 + $0x1f0] sm:$0x3] }
 0x1a9   :  { %v1443_v26 = vpop.f32.mrf.mxu2  ;;  %v1171_v39 = vrot.slane %v4340_v10, 2  ;;  %v6076_v10 = vld [vmem:[%s7791_s0 + $0x218] sm:$0xff] }
 0x1aa   :  { %v1597_v4 = vadd.f32 %v1443_v26, %v943_v31  ;;  %v6041_v12 = vpop.f32.mrf.mxu1  ;;  %4023 = vmatmul.msk.f32.gmra.mxu0 %vm395_vm2, %v8115_v35  ;;  %v946_v31 = vadd.f32 %v5949_v42, %v5325_v0 }
 0x1ab   :  { %v1731_v11 = vpop.f32.mrf.mxu3 }
 0x1ac   :  { %v1885_v34 = vadd.f32 %v1731_v11, %v1597_v4 }
 0x1ad   :  { %3833 = vmatmul.msk.f32.gmra.mxu1 %vm395_vm2, %v6051_v8 }
 0x1ae   :  { %v6055_v46 = vadd.f32 %v2027_v21, %v1885_v34  ;;  %3894 = vmatmul.msk.f32.gmra.mxu2 %vm395_vm2, %v6046_v59  ;;  %v8117_v21 = vld [vmem:[#allocation33_spill] sm:$0xff] }
 0x1af   :  { %v2030_v43 = vpop.f32.mrf.mxu0 }
 0x1b0   :  { %8116 = vst [vmem:[#allocation23_spill] sm:$0xff] %v6055_v46  ;;  %3959 = vmatmul.msk.f32.gmra.mxu3 %vm395_vm2, %v6002_v23  ;;  %v6071_v46 = vsel %vm1077_vm3, %v1169_v53, %v1171_v39  ;;  %v1174_v53 = vrot.slane %v6027_v47, 2  ;;  %v949_v39 = vadd.f32 %v5971_v5, %v5345_v25 }
 0x1b1   :  { %v1446_v26 = vpop.f32.mrf.mxu2 }
 0x1b2   :  { %v1598_v4 = vadd.f32 %v1446_v26, %v946_v31  ;;  %v6066_v11 = vpop.f32.mrf.mxu1  ;;  %4024 = vmatmul.msk.f32.gmra.mxu0 %vm395_vm2, %v8117_v21  ;;  %v1173_v31 = vrot.slane %v6002_v23, 2  ;;  %v6100_v21 = vld [vmem:[%s7791_s0 + $0x228] sm:$0xff] }
 0x1b3   :  { %v1734_v34 = vpop.f32.mrf.mxu3 }
 0x1b4   :  { %v1886_v35 = vadd.f32 %v1734_v34, %v1598_v4 }
 0x1b5   :  { %3834 = vmatmul.msk.f32.gmra.mxu1 %vm395_vm2, %v6076_v10 }
 0x1b6   :  { %v6080_v0 = vadd.f32 %v2030_v43, %v1886_v35  ;;  %3895 = vmatmul.msk.f32.gmra.mxu2 %vm395_vm2, %v6071_v46  ;;  %v8119_v35 = vld [vmem:[#allocation39_spill] sm:$0xff] }
 0x1b7   :  { %v2033_v42 = vpop.f32.mrf.mxu0 }
 0x1b8   :  { %8118 = vst [vmem:[#allocation116_spill] sm:$0xff] %v6080_v0  ;;  %3960 = vmatmul.msk.f32.gmra.mxu3 %vm395_vm2, %v6027_v47  ;;  %v6095_v0 = vsel %vm1077_vm3, %v1173_v31, %v1174_v53  ;;  %v4343_v47 = vld [vmem:[%s7791_s0 + $0x208] sm:$0x3] }
 0x1b9   :  { %v1449_v26 = vpop.f32.mrf.mxu2  ;;  %v1176_v31 = vrot.slane %v4343_v47, 2  ;;  %v6125_v47 = vld [vmem:[%s7791_s0 + $0x230] sm:$0xff] }
 0x1ba   :  { %v1599_v4 = vadd.f32 %v1449_v26, %v949_v39  ;;  %v6090_v34 = vpop.f32.mrf.mxu1  ;;  %4025 = vmatmul.msk.f32.gmra.mxu0 %vm395_vm2, %v8119_v35  ;;  %v952_v39 = vadd.f32 %v5992_v7, %v5366_v20 }
 0x1bb   :  { %v1737_v43 = vpop.f32.mrf.mxu3 }
 0x1bc   :  { %v1887_v23 = vadd.f32 %v1737_v43, %v1599_v4 }
 0x1bd   :  { %3835 = vmatmul.msk.f32.gmra.mxu1 %vm395_vm2, %v6100_v21 }
 0x1be   :  { %v6104_v25 = vadd.f32 %v2033_v42, %v1887_v23  ;;  %3896 = vmatmul.msk.f32.gmra.mxu2 %vm395_vm2, %v6095_v0  ;;  %v8121_v42 = vld [vmem:[#allocation44_spill] sm:$0xff] }
 0x1bf   :  { %v2036_v5 = vpop.f32.mrf.mxu0 }
 0x1c0   :  { %8120 = vst [vmem:[#allocation117_spill] sm:$0xff] %v6104_v25  ;;  %3961 = vmatmul.msk.f32.gmra.mxu3 %vm395_vm2, %v6051_v8  ;;  %v6120_v25 = vsel %vm1077_vm3, %v1174_v53, %v1176_v31  ;;  %v1179_v53 = vrot.slane %v6076_v10, 2  ;;  %v955_v31 = vadd.f32 %v6017_v48, %v5386_v15 }
 0x1c1   :  { %v1452_v26 = vpop.f32.mrf.mxu2 }
 0x1c2   :  { %v1600_v4 = vadd.f32 %v1452_v26, %v952_v39  ;;  %v6115_v43 = vpop.f32.mrf.mxu1  ;;  %4026 = vmatmul.msk.f32.gmra.mxu0 %vm395_vm2, %v8121_v42  ;;  %v1178_v39 = vrot.slane %v6051_v8, 2  ;;  %v6149_v42 = vld [vmem:[%s7791_s0 + $0x240] sm:$0xff] }
 0x1c3   :  { %v1740_v23 = vpop.f32.mrf.mxu3 }
 0x1c4   :  { %v1888_v35 = vadd.f32 %v1740_v23, %v1600_v4 }
 0x1c5   :  { %3836 = vmatmul.msk.f32.gmra.mxu1 %vm395_vm2, %v6125_v47 }
 0x1c6   :  { %v6129_v20 = vadd.f32 %v2036_v5, %v1888_v35  ;;  %3897 = vmatmul.msk.f32.gmra.mxu2 %vm395_vm2, %v6120_v25  ;;  %v8123_v35 = vld [vmem:[#allocation50_spill] sm:$0xff] }
 0x1c7   :  { %v2039_v7 = vpop.f32.mrf.mxu0 }
 0x1c8   :  { %8122 = vst [vmem:[#allocation118_spill] sm:$0xff] %v6129_v20  ;;  %3962 = vmatmul.msk.f32.gmra.mxu3 %vm395_vm2, %v6076_v10  ;;  %v6144_v20 = vsel %vm1077_vm3, %v1178_v39, %v1179_v53  ;;  %v4346_v10 = vld [vmem:[%s7791_s0 + $0x220] sm:$0x3] }
 0x1c9   :  { %v1455_v26 = vpop.f32.mrf.mxu2  ;;  %v1181_v39 = vrot.slane %v4346_v10, 2  ;;  %v6174_v10 = vld [vmem:[%s7791_s0 + $0x248] sm:$0xff] }
 0x1ca   :  { %v1601_v4 = vadd.f32 %v1455_v26, %v955_v31  ;;  %v6139_v23 = vpop.f32.mrf.mxu1  ;;  %4027 = vmatmul.msk.f32.gmra.mxu0 %vm395_vm2, %v8123_v35  ;;  %v958_v31 = vadd.f32 %v6041_v12, %v5407_v14 }
 0x1cb   :  { %v1743_v5 = vpop.f32.mrf.mxu3 }
 0x1cc   :  { %v1889_v8 = vadd.f32 %v1743_v5, %v1601_v4 }
 0x1cd   :  { %3837 = vmatmul.msk.f32.gmra.mxu1 %vm395_vm2, %v6149_v42 }
 0x1ce   :  { %v6153_v15 = vadd.f32 %v2039_v7, %v1889_v8  ;;  %3898 = vmatmul.msk.f32.gmra.mxu2 %vm395_vm2, %v6144_v20  ;;  %v8125_v7 = vld [vmem:[#allocation55_spill] sm:$0xff] }
 0x1cf   :  { %v2042_v48 = vpop.f32.mrf.mxu0 }
 0x1d0   :  { %8124 = vst [vmem:[#allocation119_spill] sm:$0xff] %v6153_v15  ;;  %3963 = vmatmul.msk.f32.gmra.mxu3 %vm395_vm2, %v6100_v21  ;;  %v6169_v15 = vsel %vm1077_vm3, %v1179_v53, %v1181_v39  ;;  %v1184_v53 = vrot.slane %v6125_v47, 2  ;;  %v961_v39 = vadd.f32 %v6066_v11, %v5427_v45 }
 0x1d1   :  { %v1458_v26 = vpop.f32.mrf.mxu2 }
 0x1d2   :  { %v1602_v4 = vadd.f32 %v1458_v26, %v958_v31  ;;  %v6164_v5 = vpop.f32.mrf.mxu1  ;;  %4028 = vmatmul.msk.f32.gmra.mxu0 %vm395_vm2, %v8125_v7  ;;  %v1183_v31 = vrot.slane %v6100_v21, 2  ;;  %v6198_v7 = vld [vmem:[%s7791_s0 + $0x258] sm:$0xff] }
 0x1d3   :  { %v1746_v8 = vpop.f32.mrf.mxu3 }
 0x1d4   :  { %v1890_v35 = vadd.f32 %v1746_v8, %v1602_v4 }
 0x1d5   :  { %3838 = vmatmul.msk.f32.gmra.mxu1 %vm395_vm2, %v6174_v10 }
 0x1d6   :  { %v6178_v14 = vadd.f32 %v2042_v48, %v1890_v35  ;;  %3899 = vmatmul.msk.f32.gmra.mxu2 %vm395_vm2, %v6169_v15  ;;  %v8127_v35 = vld [vmem:[#allocation58_spill] sm:$0xff] }
 0x1d7   :  { %v2045_v12 = vpop.f32.mrf.mxu0 }
 0x1d8   :  { %8126 = vst [vmem:[#allocation120_spill] sm:$0xff] %v6178_v14  ;;  %3964 = vmatmul.msk.f32.gmra.mxu3 %vm395_vm2, %v6125_v47  ;;  %v6193_v14 = vsel %vm1077_vm3, %v1183_v31, %v1184_v53  ;;  %v4349_v47 = vld [vmem:[%s7791_s0 + $0x238] sm:$0x3] }
 0x1d9   :  { %v1461_v26 = vpop.f32.mrf.mxu2  ;;  %v1186_v31 = vrot.slane %v4349_v47, 2  ;;  %v6223_v47 = vld [vmem:[%s7791_s0 + $0x260] sm:$0xff] }
 0x1da   :  { %v1603_v4 = vadd.f32 %v1461_v26, %v961_v39  ;;  %v6188_v8 = vpop.f32.mrf.mxu1  ;;  %4029 = vmatmul.msk.f32.gmra.mxu0 %vm395_vm2, %v8127_v35  ;;  %v964_v39 = vadd.f32 %v6090_v34, %v5448_v49 }
 0x1db   :  { %v1749_v48 = vpop.f32.mrf.mxu3 }
 0x1dc   :  { %v1891_v21 = vadd.f32 %v1749_v48, %v1603_v4 }
 0x1dd   :  { %3839 = vmatmul.msk.f32.gmra.mxu1 %vm395_vm2, %v6198_v7 }
 0x1de   :  { %v6202_v45 = vadd.f32 %v2045_v12, %v1891_v21  ;;  %3900 = vmatmul.msk.f32.gmra.mxu2 %vm395_vm2, %v6193_v14  ;;  %v8129_v12 = vld [vmem:[#allocation61_spill] sm:$0xff] }
 0x1df   :  { %v2048_v11 = vpop.f32.mrf.mxu0 }
 0x1e0   :  { %8128 = vst [vmem:[#allocation121_spill] sm:$0xff] %v6202_v45  ;;  %3965 = vmatmul.msk.f32.gmra.mxu3 %vm395_vm2, %v6149_v42  ;;  %v6218_v45 = vsel %vm1077_vm3, %v1184_v53, %v1186_v31  ;;  %v1189_v53 = vrot.slane %v6174_v10, 2  ;;  %v967_v31 = vadd.f32 %v6115_v43, %v5468_v36 }
 0x1e1   :  { %v1464_v26 = vpop.f32.mrf.mxu2 }
 0x1e2   :  { %v1604_v4 = vadd.f32 %v1464_v26, %v964_v39  ;;  %v6213_v48 = vpop.f32.mrf.mxu1  ;;  %4030 = vmatmul.msk.f32.gmra.mxu0 %vm395_vm2, %v8129_v12  ;;  %v1188_v39 = vrot.slane %v6149_v42, 2  ;;  %v6247_v12 = vld [vmem:[%s7791_s0 + $0x270] sm:$0xff] }
 0x1e3   :  { %v1752_v21 = vpop.f32.mrf.mxu3 }
 0x1e4   :  { %v1892_v35 = vadd.f32 %v1752_v21, %v1604_v4 }
 0x1e5   :  { %3840 = vmatmul.msk.f32.gmra.mxu1 %vm395_vm2, %v6223_v47 }
 0x1e6   :  { %v6227_v49 = vadd.f32 %v2048_v11, %v1892_v35  ;;  %3901 = vmatmul.msk.f32.gmra.mxu2 %vm395_vm2, %v6218_v45  ;;  %v8131_v35 = vld [vmem:[#allocation64_spill] sm:$0xff] }
 0x1e7   :  { %v2051_v34 = vpop.f32.mrf.mxu0 }
 0x1e8   :  { %8130 = vst [vmem:[#allocation122_spill] sm:$0xff] %v6227_v49  ;;  %3966 = vmatmul.msk.f32.gmra.mxu3 %vm395_vm2, %v6174_v10  ;;  %v6242_v49 = vsel %vm1077_vm3, %v1188_v39, %v1189_v53  ;;  %v4352_v10 = vld [vmem:[%s7791_s0 + $0x250] sm:$0x3] }
 0x1e9   :  { %v1467_v26 = vpop.f32.mrf.mxu2  ;;  %v1191_v39 = vrot.slane %v4352_v10, 2  ;;  %v6272_v10 = vld [vmem:[%s7791_s0 + $0x278] sm:$0xff] }
 0x1ea   :  { %v1605_v4 = vadd.f32 %v1467_v26, %v967_v31  ;;  %v6237_v21 = vpop.f32.mrf.mxu1  ;;  %4031 = vmatmul.msk.f32.gmra.mxu0 %vm395_vm2, %v8131_v35  ;;  %v970_v31 = vadd.f32 %v6139_v23, %v5489_v28 }
 0x1eb   :  { %v1755_v11 = vpop.f32.mrf.mxu3 }
 0x1ec   :  { %v1893_v42 = vadd.f32 %v1755_v11, %v1605_v4 }
 0x1ed   :  { %3841 = vmatmul.msk.f32.gmra.mxu1 %vm395_vm2, %v6247_v12 }
 0x1ee   :  { %v6251_v36 = vadd.f32 %v2051_v34, %v1893_v42  ;;  %3902 = vmatmul.msk.f32.gmra.mxu2 %vm395_vm2, %v6242_v49  ;;  %v8133_v34 = vld [vmem:[#allocation67_spill] sm:$0xff] }
 0x1ef   :  { %v2054_v43 = vpop.f32.mrf.mxu0 }
 0x1f0   :  { %8132 = vst [vmem:[#allocation123_spill] sm:$0xff] %v6251_v36  ;;  %3967 = vmatmul.msk.f32.gmra.mxu3 %vm395_vm2, %v6198_v7  ;;  %v6267_v36 = vsel %vm1077_vm3, %v1189_v53, %v1191_v39  ;;  %v1194_v53 = vrot.slane %v6223_v47, 2  ;;  %v973_v39 = vadd.f32 %v6164_v5, %v5509_v9 }
 0x1f1   :  { %v1470_v26 = vpop.f32.mrf.mxu2 }
 0x1f2   :  { %v1606_v4 = vadd.f32 %v1470_v26, %v970_v31  ;;  %v6262_v11 = vpop.f32.mrf.mxu1  ;;  %4032 = vmatmul.msk.f32.gmra.mxu0 %vm395_vm2, %v8133_v34  ;;  %v1193_v31 = vrot.slane %v6198_v7, 2  ;;  %v6296_v34 = vld [vmem:[%s7791_s0 + $0x288] sm:$0xff] }
 0x1f3   :  { %v1758_v42 = vpop.f32.mrf.mxu3 }
 0x1f4   :  { %v1894_v35 = vadd.f32 %v1758_v42, %v1606_v4 }
 0x1f5   :  { %3842 = vmatmul.msk.f32.gmra.mxu1 %vm395_vm2, %v6272_v10 }
 0x1f6   :  { %v6276_v28 = vadd.f32 %v2054_v43, %v1894_v35  ;;  %3903 = vmatmul.msk.f32.gmra.mxu2 %vm395_vm2, %v6267_v36  ;;  %v8135_v35 = vld [vmem:[#allocation7_spill] sm:$0xff] }
 0x1f7   :  { %v2057_v23 = vpop.f32.mrf.mxu0 }
 0x1f8   :  { %8134 = vst [vmem:[#allocation124_spill] sm:$0xff] %v6276_v28  ;;  %3968 = vmatmul.msk.f32.gmra.mxu3 %vm395_vm2, %v6223_v47  ;;  %v6291_v28 = vsel %vm1077_vm3, %v1193_v31, %v1194_v53  ;;  %v4355_v47 = vld [vmem:[%s7791_s0 + $0x268] sm:$0x3] }
 0x1f9   :  { %v1473_v26 = vpop.f32.mrf.mxu2  ;;  %8136 = vst [vmem:[#allocation125_spill] sm:$0xff] %v6291_v28  ;;  %v1196_v31 = vrot.slane %v4355_v47, 2  ;;  %v6321_v47 = vld [vmem:[%s7791_s0 + $0x290] sm:$0xff] }
 0x1fa   :  { %v1607_v4 = vadd.f32 %v1473_v26, %v973_v39  ;;  %v6286_v42 = vpop.f32.mrf.mxu1  ;;  %4033 = vmatmul.msk.f32.gmra.mxu0 %vm395_vm2, %v8135_v35  ;;  %v8138_v39 = vld [vmem:[#allocation70_spill] sm:$0xff] }
 0x1fb   :  { %v1761_v43 = vpop.f32.mrf.mxu3  ;;  %v976_v26 = vadd.f32 %v6188_v8, %v8138_v39 }
 0x1fc   :  { %v1895_v7 = vadd.f32 %v1761_v43, %v1607_v4 }
 0x1fd   :  { %3843 = vmatmul.msk.f32.gmra.mxu1 %vm395_vm2, %v6296_v34 }
 0x1fe   :  { %v6300_v9 = vadd.f32 %v2057_v23, %v1895_v7  ;;  %3904 = vmatmul.msk.f32.gmra.mxu2 %vm395_vm2, %v6291_v28  ;;  %v8139_v23 = vld [vmem:[#allocation10_spill] sm:$0xff] }
 0x1ff   :  { %v2060_v5 = vpop.f32.mrf.mxu0 }
 0x200   :  { %8137 = vst [vmem:[#allocation126_spill] sm:$0xff] %v6300_v9  ;;  %3969 = vmatmul.msk.f32.gmra.mxu3 %vm395_vm2, %v6247_v12  ;;  %v6316_v9 = vsel %vm1077_vm3, %v1194_v53, %v1196_v31  ;;  %v1199_v53 = vrot.slane %v6272_v10, 2  ;;  %v8142_v31 = vld [vmem:[#allocation72_spill] sm:$0xff] }
 0x201   :  { %v1476_v4 = vpop.f32.mrf.mxu2  ;;  %8140 = vst [vmem:[#allocation70_spill] sm:$0xff] %v6316_v9 }
 0x202   :  { %v1608_v43 = vadd.f32 %v1476_v4, %v976_v26  ;;  %v6311_v35 = vpop.f32.mrf.mxu1  ;;  %4034 = vmatmul.msk.f32.gmra.mxu0 %vm395_vm2, %v8139_v23  ;;  %v1198_v26 = vrot.slane %v6247_v12, 2  ;;  %v979_v4 = vadd.f32 %v6213_v48, %v8142_v31 }
 0x203   :  { %v1764_v7 = vpop.f32.mrf.mxu3 }
 0x204   :  { %v1896_v28 = vadd.f32 %v1764_v7, %v1608_v43 }
 0x205   :  { %3844 = vmatmul.msk.f32.gmra.mxu1 %vm395_vm2, %v6321_v47 }
 0x206   :  { %v6325_v8 = vadd.f32 %v2060_v5, %v1896_v28  ;;  %3905 = vmatmul.msk.f32.gmra.mxu2 %vm395_vm2, %v6316_v9  ;;  %v8143_v28 = vld [vmem:[#allocation11_spill] sm:$0xff]  ;;  %v6345_v9 = vld [vmem:[%s7791_s0 + $0x2a0] sm:$0xff] }
 0x207   :  { %v2063_v39 = vpop.f32.mrf.mxu0 }
 0x208   :  { %8141 = vst [vmem:[#allocation127_spill] sm:$0xff] %v6325_v8  ;;  %3970 = vmatmul.msk.f32.gmra.mxu3 %vm395_vm2, %v6272_v10  ;;  %v6340_v8 = vsel %vm1077_vm3, %v1198_v26, %v1199_v53  ;;  %v4358_v26 = vld [vmem:[%s7791_s0 + $0x280] sm:$0x3] }
 0x209   :  { %v1479_v43 = vpop.f32.mrf.mxu2  ;;  %v1201_v31 = vrot.slane %v4358_v26, 2  ;;  %v6370_v26 = vld [vmem:[%s7791_s0 + $0x2a8] sm:$0xff] }
 0x20a   :  { %v1609_v7 = vadd.f32 %v1479_v43, %v979_v4  ;;  %v6335_v23 = vpop.f32.mrf.mxu1  ;;  %4035 = vmatmul.msk.f32.gmra.mxu0 %vm395_vm2, %v8143_v28  ;;  %v982_v4 = vadd.f32 %v6237_v21, %v5323_v57 }
 0x20b   :  { %v1767_v5 = vpop.f32.mrf.mxu3 }
 0x20c   :  { %v1897_v12 = vadd.f32 %v1767_v5, %v1609_v7 }
 0x20d   :  { %3845 = vmatmul.msk.f32.gmra.mxu1 %vm395_vm2, %v6345_v9 }
 0x20e   :  { %v6349_v48 = vadd.f32 %v2063_v39, %v1897_v12  ;;  %3906 = vmatmul.msk.f32.gmra.mxu2 %vm395_vm2, %v6340_v8  ;;  %v8145_v39 = vld [vmem:[#allocation13_spill] sm:$0xff] }
 0x20f   :  { %v2066_v10 = vpop.f32.mrf.mxu0 }
 0x210   :  { %8144 = vst [vmem:[#allocation72_spill] sm:$0xff] %v6349_v48  ;;  %3971 = vmatmul.msk.f32.gmra.mxu3 %vm395_vm2, %v6296_v34  ;;  %v6365_v48 = vsel %vm1077_vm3, %v1199_v53, %v1201_v31  ;;  %v1204_v53 = vrot.slane %v6321_v47, 2  ;;  %v985_v31 = vadd.f32 %v6262_v11, %v5343_v3 }
 0x211   :  { %v1482_v43 = vpop.f32.mrf.mxu2 }
 0x212   :  { %v1610_v7 = vadd.f32 %v1482_v43, %v982_v4  ;;  %v6360_v5 = vpop.f32.mrf.mxu1  ;;  %4036 = vmatmul.msk.f32.gmra.mxu0 %vm395_vm2, %v8145_v39  ;;  %v1203_v4 = vrot.slane %v6296_v34, 2  ;;  %v6394_v39 = vld [vmem:[%s7791_s0 + $0x2b8] sm:$0xff] }
 0x213   :  { %v1770_v12 = vpop.f32.mrf.mxu3 }
 0x214   :  { %v1898_v28 = vadd.f32 %v1770_v12, %v1610_v7 }
 0x215   :  { %3846 = vmatmul.msk.f32.gmra.mxu1 %vm395_vm2, %v6370_v26 }
 0x216   :  { %v6374_v57 = vadd.f32 %v2066_v10, %v1898_v28  ;;  %3907 = vmatmul.msk.f32.gmra.mxu2 %vm395_vm2, %v6365_v48  ;;  %v8147_v28 = vld [vmem:[#allocation15_spill] sm:$0xff] }
 0x217   :  { %v2069_v21 = vpop.f32.mrf.mxu0 }
 0x218   :  { %8146 = vst [vmem:[#allocation128_spill] sm:$0xff] %v6374_v57  ;;  %3972 = vmatmul.msk.f32.gmra.mxu3 %vm395_vm2, %v6321_v47  ;;  %v6389_v57 = vsel %vm1077_vm3, %v1203_v4, %v1204_v53  ;;  %v4361_v47 = vld [vmem:[%s7791_s0 + $0x298] sm:$0x3] }
 0x219   :  { %v1485_v43 = vpop.f32.mrf.mxu2  ;;  %v1206_v4 = vrot.slane %v4361_v47, 2  ;;  %v6419_v47 = vld [vmem:[%s7791_s0 + $0x2c0] sm:$0xff] }
 0x21a   :  { %v1611_v7 = vadd.f32 %v1485_v43, %v985_v31  ;;  %v6384_v12 = vpop.f32.mrf.mxu1  ;;  %4037 = vmatmul.msk.f32.gmra.mxu0 %vm395_vm2, %v8147_v28  ;;  %v988_v31 = vadd.f32 %v6286_v42, %v5364_v50 }
 0x21b   :  { %v1773_v10 = vpop.f32.mrf.mxu3 }
 0x21c   :  { %v1899_v34 = vadd.f32 %v1773_v10, %v1611_v7 }
 0x21d   :  { %3847 = vmatmul.msk.f32.gmra.mxu1 %vm395_vm2, %v6394_v39 }
 0x21e   :  { %v6398_v3 = vadd.f32 %v2069_v21, %v1899_v34  ;;  %3908 = vmatmul.msk.f32.gmra.mxu2 %vm395_vm2, %v6389_v57  ;;  %v8149_v21 = vld [vmem:[#allocation20_spill] sm:$0xff] }
 0x21f   :  { %v2072_v11 = vpop.f32.mrf.mxu0 }
 0x220   :  { %8148 = vst [vmem:[#allocation129_spill] sm:$0xff] %v6398_v3  ;;  %3973 = vmatmul.msk.f32.gmra.mxu3 %vm395_vm2, %v6345_v9  ;;  %v6414_v3 = vsel %vm1077_vm3, %v1204_v53, %v1206_v4  ;;  %v1209_v53 = vrot.slane %v6370_v26, 2  ;;  %v8152_v4 = vld [vmem:[#allocation80_spill] sm:$0xff] }
 0x221   :  { %v1488_v43 = vpop.f32.mrf.mxu2  ;;  %8150 = vst [vmem:[#allocation130_spill] sm:$0xff] %v6414_v3 }
 0x222   :  { %v1612_v7 = vadd.f32 %v1488_v43, %v988_v31  ;;  %v6409_v10 = vpop.f32.mrf.mxu1  ;;  %4038 = vmatmul.msk.f32.gmra.mxu0 %vm395_vm2, %v8149_v21  ;;  %v1208_v31 = vrot.slane %v6345_v9, 2  ;;  %v991_v43 = vadd.f32 %v6311_v35, %v8152_v4 }
 0x223   :  { %v1776_v34 = vpop.f32.mrf.mxu3 }
 0x224   :  { %v1900_v28 = vadd.f32 %v1776_v34, %v1612_v7 }
 0x225   :  { %3848 = vmatmul.msk.f32.gmra.mxu1 %vm395_vm2, %v6419_v47 }
 0x226   :  { %v6423_v50 = vadd.f32 %v2072_v11, %v1900_v28  ;;  %3909 = vmatmul.msk.f32.gmra.mxu2 %vm395_vm2, %v6414_v3  ;;  %v8153_v28 = vld [vmem:[#allocation25_spill] sm:$0xff]  ;;  %v6443_v3 = vld [vmem:[%s7791_s0 + $0x2d0] sm:$0xff] }
 0x227   :  { %v2075_v42 = vpop.f32.mrf.mxu0 }
 0x228   :  { %8151 = vst [vmem:[#allocation131_spill] sm:$0xff] %v6423_v50  ;;  %3974 = vmatmul.msk.f32.gmra.mxu3 %vm395_vm2, %v6370_v26  ;;  %v6438_v50 = vsel %vm1077_vm3, %v1208_v31, %v1209_v53  ;;  %v4364_v31 = vld [vmem:[%s7791_s0 + $0x2b0] sm:$0x3] }
 0x229   :  { %v1491_v7 = vpop.f32.mrf.mxu2  ;;  %v1211_v4 = vrot.slane %v4364_v31, 2  ;;  %v6468_v31 = vld [vmem:[%s7791_s0 + $0x2d8] sm:$0xff] }
 0x22a   :  { %v1613_v34 = vadd.f32 %v1491_v7, %v991_v43  ;;  %v6433_v21 = vpop.f32.mrf.mxu1  ;;  %4039 = vmatmul.msk.f32.gmra.mxu0 %vm395_vm2, %v8153_v28  ;;  %v994_v43 = vadd.f32 %v6335_v23, %v5405_v63 }
 0x22b   :  { %v1779_v11 = vpop.f32.mrf.mxu3 }
 0x22c   :  { %v1901_v9 = vadd.f32 %v1779_v11, %v1613_v34 }
 0x22d   :  { %3849 = vmatmul.msk.f32.gmra.mxu1 %vm395_vm2, %v6443_v3 }
 0x22e   :  { %v6447_v35 = vadd.f32 %v2075_v42, %v1901_v9  ;;  %3910 = vmatmul.msk.f32.gmra.mxu2 %vm395_vm2, %v6438_v50  ;;  %v8155_v42 = vld [vmem:[#allocation30_spill] sm:$0xff] }
 0x22f   :  { %v2078_v26 = vpop.f32.mrf.mxu0 }
 0x230   :  { %8154 = vst [vmem:[#allocation80_spill] sm:$0xff] %v6447_v35  ;;  %3975 = vmatmul.msk.f32.gmra.mxu3 %vm395_vm2, %v6394_v39  ;;  %v6463_v35 = vsel %vm1077_vm3, %v1209_v53, %v1211_v4  ;;  %v1214_v53 = vrot.slane %v6419_v47, 2  ;;  %v8158_v4 = vld [vmem:[#allocation85_spill] sm:$0xff] }
 0x231   :  { %v1494_v7 = vpop.f32.mrf.mxu2  ;;  %8156 = vst [vmem:[#allocation132_spill] sm:$0xff] %v6463_v35 }
 0x232   :  { %v1614_v34 = vadd.f32 %v1494_v7, %v994_v43  ;;  %v6458_v11 = vpop.f32.mrf.mxu1  ;;  %4040 = vmatmul.msk.f32.gmra.mxu0 %vm395_vm2, %v8155_v42  ;;  %v1213_v43 = vrot.slane %v6394_v39, 2  ;;  %v997_v7 = vadd.f32 %v6360_v5, %v8158_v4 }
 0x233   :  { %v1782_v9 = vpop.f32.mrf.mxu3 }
 0x234   :  { %v1902_v28 = vadd.f32 %v1782_v9, %v1614_v34 }
 0x235   :  { %3850 = vmatmul.msk.f32.gmra.mxu1 %vm395_vm2, %v6468_v31 }
 0x236   :  { %v6472_v63 = vadd.f32 %v2078_v26, %v1902_v28  ;;  %3911 = vmatmul.msk.f32.gmra.mxu2 %vm395_vm2, %v6463_v35  ;;  %v8159_v28 = vld [vmem:[#allocation36_spill] sm:$0xff]  ;;  %v6492_v35 = vld [vmem:[%s7791_s0 + $0x2e8] sm:$0xff] }
 0x237   :  { %v2081_v23 = vpop.f32.mrf.mxu0 }
 0x238   :  { %8157 = vst [vmem:[#allocation133_spill] sm:$0xff] %v6472_v63  ;;  %3976 = vmatmul.msk.f32.gmra.mxu3 %vm395_vm2, %v6419_v47  ;;  %v6487_v63 = vsel %vm1077_vm3, %v1213_v43, %v1214_v53  ;;  %v4367_v43 = vld [vmem:[%s7791_s0 + $0x2c8] sm:$0x3] }
 0x239   :  { %v1497_v34 = vpop.f32.mrf.mxu2  ;;  %v1216_v4 = vrot.slane %v4367_v43, 2  ;;  %v6517_v43 = vld [vmem:[%s7791_s0 + $0x2f0] sm:$0xff] }
 0x23a   :  { %v1615_v9 = vadd.f32 %v1497_v34, %v997_v7  ;;  %v6482_v42 = vpop.f32.mrf.mxu1  ;;  %4041 = vmatmul.msk.f32.gmra.mxu0 %vm395_vm2, %v8159_v28  ;;  %v1000_v7 = vadd.f32 %v6384_v12, %v5446_v22 }
 0x23b   :  { %v1785_v26 = vpop.f32.mrf.mxu3 }
 0x23c   :  { %v1903_v39 = vadd.f32 %v1785_v26, %v1615_v9 }
 0x23d   :  { %3851 = vmatmul.msk.f32.gmra.mxu1 %vm395_vm2, %v6492_v35 }
 0x23e   :  { %v6496_v5 = vadd.f32 %v2081_v23, %v1903_v39  ;;  %3912 = vmatmul.msk.f32.gmra.mxu2 %vm395_vm2, %v6487_v63  ;;  %v8161_v23 = vld [vmem:[#allocation41_spill] sm:$0xff] }
 0x23f   :  { %v2084_v47 = vpop.f32.mrf.mxu0 }
 0x240   :  { %8160 = vst [vmem:[#allocation85_spill] sm:$0xff] %v6496_v5  ;;  %3977 = vmatmul.msk.f32.gmra.mxu3 %vm395_vm2, %v6443_v3  ;;  %v6512_v5 = vsel %vm1077_vm3, %v1214_v53, %v1216_v4  ;;  %v1219_v53 = vrot.slane %v6468_v31, 2  ;;  %v8164_v4 = vld [vmem:[#allocation90_spill] sm:$0xff] }
 0x241   :  { %v1500_v34 = vpop.f32.mrf.mxu2  ;;  %8162 = vst [vmem:[#allocation134_spill] sm:$0xff] %v6512_v5 }
 0x242   :  { %v1616_v9 = vadd.f32 %v1500_v34, %v1000_v7  ;;  %v6507_v26 = vpop.f32.mrf.mxu1  ;;  %4042 = vmatmul.msk.f32.gmra.mxu0 %vm395_vm2, %v8161_v23  ;;  %v1218_v7 = vrot.slane %v6443_v3, 2  ;;  %v1003_v34 = vadd.f32 %v6409_v10, %v8164_v4 }
 0x243   :  { %v1788_v39 = vpop.f32.mrf.mxu3 }
 0x244   :  { %v1904_v28 = vadd.f32 %v1788_v39, %v1616_v9 }
 0x245   :  { %3852 = vmatmul.msk.f32.gmra.mxu1 %vm395_vm2, %v6517_v43 }
 0x246   :  { %v6521_v22 = vadd.f32 %v2084_v47, %v1904_v28  ;;  %3913 = vmatmul.msk.f32.gmra.mxu2 %vm395_vm2, %v6512_v5  ;;  %v8165_v28 = vld [vmem:[#allocation47_spill] sm:$0xff]  ;;  %v6541_v5 = vld [vmem:[%s7791_s0 + $0x300] sm:$0xff] }
 0x247   :  { %v2087_v12 = vpop.f32.mrf.mxu0 }
 0x248   :  { %8163 = vst [vmem:[#allocation135_spill] sm:$0xff] %v6521_v22  ;;  %3978 = vmatmul.msk.f32.gmra.mxu3 %vm395_vm2, %v6468_v31  ;;  %v6536_v22 = vsel %vm1077_vm3, %v1218_v7, %v1219_v53  ;;  %v4370_v7 = vld [vmem:[%s7791_s0 + $0x2e0] sm:$0x3] }
 0x249   :  { %v1503_v9 = vpop.f32.mrf.mxu2  ;;  %8166 = vst [vmem:[#allocation90_spill] sm:$0xff] %v6536_v22  ;;  %v1221_v4 = vrot.slane %v4370_v7, 2  ;;  %v6566_v7 = vld [vmem:[%s7791_s0 + $0x308] sm:$0xff] }
 0x24a   :  { %v1617_v39 = vadd.f32 %v1503_v9, %v1003_v34  ;;  %v6531_v23 = vpop.f32.mrf.mxu1  ;;  %4043 = vmatmul.msk.f32.gmra.mxu0 %vm395_vm2, %v8165_v28  ;;  %v1006_v34 = vadd.f32 %v6433_v21, %v5487_v41 }
 0x24b   :  { %v1791_v47 = vpop.f32.mrf.mxu3 }
 0x24c   :  { %v1905_v3 = vadd.f32 %v1791_v47, %v1617_v39 }
 0x24d   :  { %3853 = vmatmul.msk.f32.gmra.mxu1 %vm395_vm2, %v6541_v5 }
 0x24e   :  { %v6545_v10 = vadd.f32 %v2087_v12, %v1905_v3  ;;  %3914 = vmatmul.msk.f32.gmra.mxu2 %vm395_vm2, %v6536_v22  ;;  %v8168_v12 = vld [vmem:[#allocation52_spill] sm:$0xff] }
 0x24f   :  { %v2090_v31 = vpop.f32.mrf.mxu0 }
 0x250   :  { %8167 = vst [vmem:[#allocation136_spill] sm:$0xff] %v6545_v10  ;;  %3979 = vmatmul.msk.f32.gmra.mxu3 %vm395_vm2, %v6492_v35  ;;  %v6561_v10 = vsel %vm1077_vm3, %v1219_v53, %v1221_v4  ;;  %v1224_v53 = vrot.slane %v6517_v43, 2  ;;  %v8171_v4 = vld [vmem:[#allocation95_spill] sm:$0xff] }
 0x251   :  { %v1506_v9 = vpop.f32.mrf.mxu2  ;;  %8169 = vst [vmem:[#allocation137_spill] sm:$0xff] %v6561_v10 }
 0x252   :  { %v1618_v39 = vadd.f32 %v1506_v9, %v1006_v34  ;;  %v6556_v47 = vpop.f32.mrf.mxu1  ;;  %4044 = vmatmul.msk.f32.gmra.mxu0 %vm395_vm2, %v8168_v12  ;;  %v1223_v34 = vrot.slane %v6492_v35, 2  ;;  %v1009_v9 = vadd.f32 %v6458_v11, %v8171_v4 }
 0x253   :  { %v1794_v3 = vpop.f32.mrf.mxu3 }
 0x254   :  { %v1906_v28 = vadd.f32 %v1794_v3, %v1618_v39 }
 0x255   :  { %3854 = vmatmul.msk.f32.gmra.mxu1 %vm395_vm2, %v6566_v7 }
 0x256   :  { %v6570_v41 = vadd.f32 %v2090_v31, %v1906_v28  ;;  %3915 = vmatmul.msk.f32.gmra.mxu2 %vm395_vm2, %v6561_v10  ;;  %v8172_v28 = vld [vmem:[#allocation56_spill] sm:$0xff] }
 0x257   :  { %v2093_v21 = vpop.f32.mrf.mxu0  ;;  %v6590_v10 = vld [vmem:[%s7791_s0 + $0x318] sm:$0xff] }
 0x258   :  { %8170 = vst [vmem:[#allocation138_spill] sm:$0xff] %v6570_v41  ;;  %3980 = vmatmul.msk.f32.gmra.mxu3 %vm395_vm2, %v6517_v43  ;;  %v6585_v41 = vsel %vm1077_vm3, %v1223_v34, %v1224_v53  ;;  %v4373_v34 = vld [vmem:[%s7791_s0 + $0x2f8] sm:$0x3] }
 0x259   :  { %v1509_v39 = vpop.f32.mrf.mxu2  ;;  %8173 = vst [vmem:[#allocation95_spill] sm:$0xff] %v6585_v41  ;;  %v1226_v4 = vrot.slane %v4373_v34, 2  ;;  %v6615_v34 = vld [vmem:[%s7791_s0 + $0x320] sm:$0xff] }
 0x25a   :  { %v1619_v3 = vadd.f32 %v1509_v39, %v1009_v9  ;;  %v6580_v12 = vpop.f32.mrf.mxu1  ;;  %4045 = vmatmul.msk.f32.gmra.mxu0 %vm395_vm2, %v8172_v28  ;;  %v1012_v9 = vadd.f32 %v6482_v42, %v5528_v58 }
 0x25b   :  { %v1797_v31 = vpop.f32.mrf.mxu3  ;;  %v6610_v28 = vsel %vm1077_vm3, %v1224_v53, %v1226_v4  ;;  %v1229_v53 = vrot.slane %v6566_v7, 2  ;;  %v8178_v4 = vld [vmem:[#allocation100_spill] sm:$0xff] }
 0x25c   :  { %v1907_v35 = vadd.f32 %v1797_v31, %v1619_v3  ;;  %8176 = vst [vmem:[#allocation140_spill] sm:$0xff] %v6610_v28 }
 0x25d   :  { %3855 = vmatmul.msk.f32.gmra.mxu1 %vm395_vm2, %v6590_v10 }
 0x25e   :  { %v6594_v11 = vadd.f32 %v2093_v21, %v1907_v35  ;;  %3916 = vmatmul.msk.f32.gmra.mxu2 %vm395_vm2, %v6585_v41  ;;  %v8175_v21 = vld [vmem:[#allocation59_spill] sm:$0xff] }
 0x25f   :  { %v2096_v43 = vpop.f32.mrf.mxu0 }
 0x260   :  { %8174 = vst [vmem:[#allocation139_spill] sm:$0xff] %v6594_v11  ;;  %3981 = vmatmul.msk.f32.gmra.mxu3 %vm395_vm2, %v6541_v5 }
 0x261   :  { %v1512_v39 = vpop.f32.mrf.mxu2 }
 0x262   :  { %v1620_v3 = vadd.f32 %v1512_v39, %v1012_v9  ;;  %v6605_v31 = vpop.f32.mrf.mxu1  ;;  %4046 = vmatmul.msk.f32.gmra.mxu0 %vm395_vm2, %v8175_v21  ;;  %v1228_v9 = vrot.slane %v6541_v5, 2  ;;  %v1015_v39 = vadd.f32 %v6507_v26, %v8178_v4 }
 0x263   :  { %v1800_v35 = vpop.f32.mrf.mxu3 }
 0x264   :  { %v1908_v11 = vadd.f32 %v1800_v35, %v1620_v3 }
 0x265   :  { %3856 = vmatmul.msk.f32.gmra.mxu1 %vm395_vm2, %v6615_v34 }
 0x266   :  { %v6619_v58 = vadd.f32 %v2096_v43, %v1908_v11  ;;  %3917 = vmatmul.msk.f32.gmra.mxu2 %vm395_vm2, %v6610_v28  ;;  %v8179_v11 = vld [vmem:[#allocation62_spill] sm:$0xff]  ;;  %v8181_v28 = vld [vmem:[#allocation75_spill] sm:$0xff] }
 0x267   :  { %v2099_v42 = vpop.f32.mrf.mxu0 }
 0x268   :  { %8177 = vst [vmem:[#allocation141_spill] sm:$0xff] %v6619_v58  ;;  %3982 = vmatmul.msk.f32.gmra.mxu3 %vm395_vm2, %v6566_v7  ;;  %v6634_v58 = vsel %vm1077_vm3, %v1228_v9, %v1229_v53  ;;  %v4375_v7 = vld [vmem:[%s7791_s0 + $0x310] sm:$0x3] }
 0x269   :  { %v1515_v3 = vpop.f32.mrf.mxu2  ;;  %8180 = vst [vmem:[#allocation100_spill] sm:$0xff] %v6634_v58  ;;  %v1231_v4 = vrot.slane %v4375_v7, 2 }
 0x26a   :  { %v1621_v35 = vadd.f32 %v1515_v3, %v1015_v39  ;;  %v6629_v21 = vpop.f32.mrf.mxu1  ;;  %4047 = vmatmul.msk.f32.gmra.mxu0 %vm395_vm2, %v8179_v11  ;;  %v8183_v39 = vld [vmem:[#allocation103_spill] sm:$0xff] }
 0x26b   :  { %v1803_v43 = vpop.f32.mrf.mxu3  ;;  %v1018_v3 = vadd.f32 %v6531_v23, %v8183_v39  ;;  %v1233_v39 = vrot.slane %v6590_v10, 2 }
 0x26c   :  { %v1909_v5 = vadd.f32 %v1803_v43, %v1621_v35 }
 0x26d   :  { %4053 = vmatmul.msk.f32.vlgmr.msra.gmra.mxu1 %vm395_vm2, %v8181_v28 }
 0x26e   :  { %v6638_v41 = vadd.f32 %v2099_v42, %v1909_v5  ;;  %3918 = vmatmul.msk.f32.gmra.mxu2 %vm395_vm2, %v6634_v58  ;;  %v8184_v42 = vld [vmem:[#allocation65_spill] sm:$0xff]  ;;  %v6654_v5 = vsel %vm1077_vm3, %v1229_v53, %v1231_v4  ;;  %v8189_v4 = vld [vmem:[#allocation68_spill] sm:$0xff] }
 0x26f   :  { %v2102_v26 = vpop.f32.mrf.mxu0  ;;  %8185 = vst [vmem:[#allocation103_spill] sm:$0xff] %v6654_v5  ;;  %v8194_v58 = vld [vmem:[#allocation109_spill] sm:$0xff] }
 0x270   :  { %8182 = vst [vmem:[#allocation75_spill] sm:$0xff] %v6638_v41  ;;  %3983 = vmatmul.msk.f32.gmra.mxu3 %vm395_vm2, %v6590_v10  ;;  %v8186_v41 = vld [vmem:[#allocation77_spill] sm:$0xff]  ;;  %v123_v10 = vld [vmem:[%s7791_s0 + $0x330] sm:$0xff] }
 0x271   :  { %v1518_v9 = vpop.f32.mrf.mxu2 }
 0x272   :  { %v1622_v35 = vadd.f32 %v1518_v9, %v1018_v3  ;;  %v6649_v28 = vpop.f32.mrf.mxu1  ;;  %4048 = vmatmul.msk.f32.gmra.mxu0 %vm395_vm2, %v8184_v42  ;;  %v1234_v3 = vrot.slane %v6615_v34, 2  ;;  %v8188_v9 = vld [vmem:[#allocation106_spill] sm:$0xff] }
 0x273   :  { %v1806_v43 = vpop.f32.mrf.mxu3  ;;  %v1021_v42 = vadd.f32 %v6556_v47, %v8188_v9 }
 0x274   :  { %v1910_v11 = vadd.f32 %v1806_v43, %v1622_v35  ;;  %v6679_v47 = vsel %vm1077_vm3, %v1233_v39, %v1234_v3 }
 0x275   :  { %4054 = vmatmul.msk.f32.gmra.mxu1 %vm395_vm2, %v8186_v41  ;;  %v124_v41 = vld [vmem:[%s7791_s0 + $0x338] sm:$0xff]  ;;  %8190 = vst [vmem:[#allocation106_spill] sm:$0xff] %v6679_v47 }
 0x276   :  { %v6658_v7 = vadd.f32 %v2102_v26, %v1910_v11  ;;  %3919 = vmatmul.msk.f32.gmra.mxu2 %vm395_vm2, %v6654_v5  ;;  %v1938_v43 = vrot.slane %v124_v41, 1 }
 0x277   :  { %v2105_v23 = vpop.f32.mrf.mxu0 }
 0x278   :  { %8187 = vst [vmem:[#allocation77_spill] sm:$0xff] %v6658_v7  ;;  %3984 = vmatmul.msk.f32.gmra.mxu3 %vm395_vm2, %v6615_v34  ;;  %v1937_v34 = vrot.slane %v123_v10, 1  ;;  %v8191_v7 = vld [vmem:[#allocation79_spill] sm:$0xff] }
 0x279   :  { %v1521_v53 = vpop.f32.mrf.mxu2 }
 0x27a   :  { %v1623_v11 = vadd.f32 %v1521_v53, %v1021_v42  ;;  %v6671_v26 = vpop.f32.mrf.mxu1  ;;  %4049 = vmatmul.msk.f32.gmra.mxu0 %vm395_vm2, %v8189_v4  ;;  %v4376_v4 = vld [vmem:[%s7791_s0 + $0x328] sm:$0x3]  ;;  %v6691_v39 = vsel %vm234_vm1, %v1937_v34, %v1938_v43 }
 0x27b   :  { %v1809_v35 = vpop.f32.mrf.mxu3  ;;  %v1236_v5 = vrot.slane %v4376_v4, 2  ;;  %8193 = vst [vmem:[#allocation142_spill] sm:$0xff] %v6691_v39 }
 0x27c   :  { %v1911_v9 = vadd.f32 %v1809_v35, %v1623_v11  ;;  %v1024_v11 = vadd.f32 %v6580_v12, %v8194_v58  ;;  %v8195_v12 = vld [vmem:[#allocation82_spill] sm:$0xff] }
 0x27d   :  { %4055 = vmatmul.msk.f32.gmra.mxu1 %vm395_vm2, %v8191_v7  ;;  %v6704_v34 = vsel %vm1077_vm3, %v1234_v3, %v1236_v5 }
 0x27e   :  { %v6683_v42 = vadd.f32 %v2105_v23, %v1911_v9  ;;  %3920 = vmatmul.msk.f32.gmra.mxu2 %vm395_vm2, %v6679_v47  ;;  %v125_v23 = vld [vmem:[%s7791_s0 + $0x340] sm:$0x3] }
 0x27f   :  { %v2108_v53 = vpop.f32.mrf.mxu0  ;;  %v1940_v47 = vrot.slane %v125_v23, 1 }
 0x280   :  { %8192 = vst [vmem:[#allocation79_spill] sm:$0xff] %v6683_v42  ;;  %3985 = vmatmul.msk.f32.gmra.mxu3 %vm395_vm2, %v123_v10 }
 0x281   :  { %v1524_v35 = vpop.f32.mrf.mxu2 }
 0x282   :  { %v1624_v9 = vadd.f32 %v1524_v35, %v1024_v11  ;;  %v6699_v42 = vpop.f32.mrf.mxu1  ;;  %4050 = vmatmul.msk.f32.gmra.mxu0 %vm395_vm2, %v6691_v39  ;;  %v6713_v11 = vsel %vm234_vm1, %v1938_v43, %v1940_v47  ;;  %v8197_v35 = vld [vmem:[#allocation71_spill] sm:$0xff] }
 0x283   :  { %v1812_v4 = vpop.f32.mrf.mxu3  ;;  %8196 = vst [vmem:[#allocation109_spill] sm:$0xff] %v6713_v11  ;;  %v1027_v39 = vadd.f32 %v6605_v31, %v8197_v35  ;;  %v4377_v47 = vld [vmem:[%s7791_s0 + $0x30] sm:$0xff] }
 0x284   :  { %v1912_v22 = vadd.f32 %v1812_v4, %v1624_v9  ;;  %v8198_v9 = vld [vmem:[#allocation84_spill] sm:$0xff] }
 0x285   :  { %4056 = vmatmul.msk.f32.gmra.mxu1 %vm395_vm2, %v8195_v12 }
 0x286   :  { %v6708_v58 = vadd.f32 %v2108_v53, %v1912_v22  ;;  %3921 = vmatmul.msk.f32.gmra.mxu2 %vm395_vm2, %v6704_v34 }
 0x287   :  { %v2111_v10 = vpop.f32.mrf.mxu0 }
 0x288   :  { %3986 = vmatmul.msk.f32.gmra.mxu3 %vm395_vm2, %v124_v41  ;;  %v8199_v41 = vld [vmem:[#allocation73_spill] sm:$0xff] }
 0x289   :  { %v1527_v5 = vpop.f32.mrf.mxu2  ;;  %v1030_v43 = vadd.f32 %v6629_v21, %v8199_v41  ;;  %v4378_v21 = vld [vmem:[%s7791_s0 + $0x38] sm:$0xff]  ;;  %v8203_v41 = vld [vmem:[#allocation74_spill] sm:$0xff] }
 0x28a   :  { %v1625_v3 = vadd.f32 %v1527_v5, %v1027_v39  ;;  %v1041_v23 = vpop.f32.mrf.mxu1  ;;  %4051 = vmatmul.msk.f32.gmra.mxu0 %vm395_vm2, %v6713_v11  ;;  %v8200_v39 = vld [vmem:[#allocation16_spill] sm:$0xff] }
 0x28b   :  { %v1815_v22 = vpop.f32.mrf.mxu3 }
 0x28c   :  { %v1913_v53 = vadd.f32 %v1815_v22, %v1625_v3 }
 0x28d   :  { %4057 = vmatmul.msk.f32.gmra.mxu1 %vm395_vm2, %v8198_v9 }
 0x28e   :  { %v6722_v4 = vadd.f32 %v2111_v10, %v1913_v53  ;;  %4118 = vmatmul.msk.f32.vlgmr.msra.gmra.mxu2 %vm395_vm2, %v4377_v47  ;;  %v8201_v53 = vld [vmem:[#allocation87_spill] sm:$0xff] }
 0x28f   :  { %v2114_v31 = vpop.f32.mrf.mxu0 }
 0x290   :  { %4183 = vmatmul.msk.f32.vlgmr.msra.gmra.mxu3 %vm395_vm2, %v8200_v39  ;;  %v8204_v39 = vld [vmem:[#allocation21_spill] sm:$0xff] }
 0x291   :  { %v1530_v35 = vpop.f32.mrf.mxu2 }
 0x292   :  { %v1626_v5 = vadd.f32 %v1530_v35, %v1030_v43  ;;  %v1044_v3 = vpop.f32.mrf.mxu1  ;;  %4248 = vmatmul.msk.f32.vlgmr.msra.gmra.mxu0 %vm395_vm2, %v8191_v7  ;;  %v1033_v43 = vadd.f32 %v6649_v28, %v8203_v41  ;;  %v4379_v28 = vld [vmem:[%s7791_s0 + $0x48] sm:$0xff]  ;;  %v8207_v41 = vld [vmem:[#allocation76_spill] sm:$0xff] }
 0x293   :  { %v1818_v10 = vpop.f32.mrf.mxu3 }
 0x294   :  { %v1914_v22 = vadd.f32 %v1818_v10, %v1626_v5 }
 0x295   :  { %4058 = vmatmul.msk.f32.gmra.mxu1 %vm395_vm2, %v8201_v53 }
 0x296   :  { %v6736_v11 = vadd.f32 %v2114_v31, %v1914_v22  ;;  %4119 = vmatmul.msk.f32.gmra.mxu2 %vm395_vm2, %v4378_v21  ;;  %v8205_v22 = vld [vmem:[#allocation89_spill] sm:$0xff] }
 0x297   :  { %v2117_v47 = vpop.f32.mrf.mxu0 }
 0x298   :  { %8202 = vst [vmem:[#allocation82_spill] sm:$0xff] %v6736_v11  ;;  %4184 = vmatmul.msk.f32.gmra.mxu3 %vm395_vm2, %v8204_v39  ;;  %v8208_v39 = vld [vmem:[#allocation26_spill] sm:$0xff] }
 0x299   :  { %v1533_v7 = vpop.f32.mrf.mxu2 }
 0x29a   :  { %v1627_v35 = vadd.f32 %v1533_v7, %v1033_v43  ;;  %v1047_v5 = vpop.f32.mrf.mxu1  ;;  %4249 = vmatmul.msk.f32.gmra.mxu0 %vm395_vm2, %v8195_v12  ;;  %v1036_v43 = vadd.f32 %v6671_v26, %v8207_v41  ;;  %v4380_v26 = vld [vmem:[%s7791_s0 + $0x50] sm:$0xff] }
 0x29b   :  { %v1821_v31 = vpop.f32.mrf.mxu3  ;;  %v8211_v41 = vld [vmem:[#allocation78_spill] sm:$0xff] }
 0x29c   :  { %v1915_v10 = vadd.f32 %v1821_v31, %v1627_v35 }
 0x29d   :  { %4059 = vmatmul.msk.f32.gmra.mxu1 %vm395_vm2, %v8205_v22 }
 0x29e   :  { %v6750_v11 = vadd.f32 %v2117_v47, %v1915_v10  ;;  %4120 = vmatmul.msk.f32.gmra.mxu2 %vm395_vm2, %v4379_v28  ;;  %v8209_v10 = vld [vmem:[#allocation92_spill] sm:$0xff] }
 0x29f   :  { %v2120_v21 = vpop.f32.mrf.mxu0 }
 0x2a0   :  { %8206 = vst [vmem:[#allocation71_spill] sm:$0xff] %v6750_v11  ;;  %4185 = vmatmul.msk.f32.gmra.mxu3 %vm395_vm2, %v8208_v39  ;;  %v8212_v39 = vld [vmem:[#allocation31_spill] sm:$0xff] }
 0x2a1   :  { %v1536_v12 = vpop.f32.mrf.mxu2 }
 0x2a2   :  { %v1628_v7 = vadd.f32 %v1536_v12, %v1036_v43  ;;  %v1050_v35 = vpop.f32.mrf.mxu1  ;;  %4250 = vmatmul.msk.f32.gmra.mxu0 %vm395_vm2, %v8198_v9  ;;  %v1039_v43 = vadd.f32 %v6699_v42, %v8211_v41  ;;  %v4381_v42 = vld [vmem:[%s7791_s0 + $0x60] sm:$0xff] }
 0x2a3   :  { %v1824_v47 = vpop.f32.mrf.mxu3  ;;  %v8215_v41 = vld [vmem:[#allocation81_spill] sm:$0xff] }
 0x2a4   :  { %v1916_v31 = vadd.f32 %v1824_v47, %v1628_v7 }
 0x2a5   :  { %4060 = vmatmul.msk.f32.gmra.mxu1 %vm395_vm2, %v8209_v10 }
 0x2a6   :  { %v6764_v11 = vadd.f32 %v2120_v21, %v1916_v31  ;;  %4121 = vmatmul.msk.f32.gmra.mxu2 %vm395_vm2, %v4380_v26  ;;  %v8213_v31 = vld [vmem:[#allocation94_spill] sm:$0xff] }
 0x2a7   :  { %v2123_v28 = vpop.f32.mrf.mxu0 }
 0x2a8   :  { %8210 = vst [vmem:[#allocation84_spill] sm:$0xff] %v6764_v11  ;;  %4186 = vmatmul.msk.f32.gmra.mxu3 %vm395_vm2, %v8212_v39  ;;  %v8216_v39 = vld [vmem:[#allocation37_spill] sm:$0xff] }
 0x2a9   :  { %v1539_v9 = vpop.f32.mrf.mxu2 }
 0x2aa   :  { %v1629_v12 = vadd.f32 %v1539_v9, %v1039_v43  ;;  %v1053_v7 = vpop.f32.mrf.mxu1  ;;  %4251 = vmatmul.msk.f32.gmra.mxu0 %vm395_vm2, %v8201_v53  ;;  %v1042_v43 = vadd.f32 %v1041_v23, %v8215_v41  ;;  %v4382_v23 = vld [vmem:[%s7791_s0 + $0x68] sm:$0xff]  ;;  %v8219_v41 = vld [vmem:[#allocation83_spill] sm:$0xff] }
 0x2ab   :  { %v1827_v21 = vpop.f32.mrf.mxu3 }
 0x2ac   :  { %v1917_v47 = vadd.f32 %v1827_v21, %v1629_v12 }
 0x2ad   :  { %4061 = vmatmul.msk.f32.gmra.mxu1 %vm395_vm2, %v8213_v31 }
 0x2ae   :  { %v6778_v11 = vadd.f32 %v2123_v28, %v1917_v47  ;;  %4122 = vmatmul.msk.f32.gmra.mxu2 %vm395_vm2, %v4381_v42  ;;  %v8217_v47 = vld [vmem:[#allocation97_spill] sm:$0xff] }
 0x2af   :  { %v2126_v26 = vpop.f32.mrf.mxu0 }
 0x2b0   :  { %8214 = vst [vmem:[#allocation73_spill] sm:$0xff] %v6778_v11  ;;  %4187 = vmatmul.msk.f32.gmra.mxu3 %vm395_vm2, %v8216_v39  ;;  %v8220_v39 = vld [vmem:[#allocation42_spill] sm:$0xff] }
 0x2b1   :  { %v1542_v53 = vpop.f32.mrf.mxu2 }
 0x2b2   :  { %v1630_v9 = vadd.f32 %v1542_v53, %v1042_v43  ;;  %v1056_v12 = vpop.f32.mrf.mxu1  ;;  %4252 = vmatmul.msk.f32.gmra.mxu0 %vm395_vm2, %v8205_v22  ;;  %v1045_v43 = vadd.f32 %v1044_v3, %v8219_v41  ;;  %v4383_v3 = vld [vmem:[%s7791_s0 + $0x78] sm:$0xff]  ;;  %v8223_v41 = vld [vmem:[#allocation86_spill] sm:$0xff] }
 0x2b3   :  { %v1830_v28 = vpop.f32.mrf.mxu3 }
 0x2b4   :  { %v1918_v21 = vadd.f32 %v1830_v28, %v1630_v9 }
 0x2b5   :  { %4062 = vmatmul.msk.f32.gmra.mxu1 %vm395_vm2, %v8217_v47 }
 0x2b6   :  { %v6791_v11 = vadd.f32 %v2126_v26, %v1918_v21  ;;  %4123 = vmatmul.msk.f32.gmra.mxu2 %vm395_vm2, %v4382_v23  ;;  %v8221_v21 = vld [vmem:[#allocation99_spill] sm:$0xff] }
 0x2b7   :  { %v2129_v42 = vpop.f32.mrf.mxu0 }
 0x2b8   :  { %8218 = vst [vmem:[#allocation16_spill] sm:$0xff] %v6791_v11  ;;  %4188 = vmatmul.msk.f32.gmra.mxu3 %vm395_vm2, %v8220_v39  ;;  %v8224_v39 = vld [vmem:[#allocation48_spill] sm:$0xff] }
 0x2b9   :  { %v1545_v22 = vpop.f32.mrf.mxu2 }
 0x2ba   :  { %v1631_v53 = vadd.f32 %v1545_v22, %v1045_v43  ;;  %v1059_v9 = vpop.f32.mrf.mxu1  ;;  %4253 = vmatmul.msk.f32.gmra.mxu0 %vm395_vm2, %v8209_v10  ;;  %v1048_v43 = vadd.f32 %v1047_v5, %v8223_v41  ;;  %v4384_v5 = vld [vmem:[%s7791_s0 + $0x80] sm:$0xff] }
 0x2bb   :  { %v1833_v26 = vpop.f32.mrf.mxu3  ;;  %v8227_v41 = vld [vmem:[#allocation88_spill] sm:$0xff] }
 0x2bc   :  { %v1919_v28 = vadd.f32 %v1833_v26, %v1631_v53 }
 0x2bd   :  { %4063 = vmatmul.msk.f32.gmra.mxu1 %vm395_vm2, %v8221_v21 }
 0x2be   :  { %v6804_v11 = vadd.f32 %v2129_v42, %v1919_v28  ;;  %4124 = vmatmul.msk.f32.gmra.mxu2 %vm395_vm2, %v4383_v3  ;;  %v8225_v28 = vld [vmem:[#allocation102_spill] sm:$0xff] }
 0x2bf   :  { %v2132_v23 = vpop.f32.mrf.mxu0 }
 0x2c0   :  { %8222 = vst [vmem:[#allocation87_spill] sm:$0xff] %v6804_v11  ;;  %4189 = vmatmul.msk.f32.gmra.mxu3 %vm395_vm2, %v8224_v39  ;;  %v8228_v39 = vld [vmem:[#allocation53_spill] sm:$0xff] }
 0x2c1   :  { %v1548_v10 = vpop.f32.mrf.mxu2 }
 0x2c2   :  { %v1632_v22 = vadd.f32 %v1548_v10, %v1048_v43  ;;  %v1062_v53 = vpop.f32.mrf.mxu1  ;;  %4254 = vmatmul.msk.f32.gmra.mxu0 %vm395_vm2, %v8213_v31  ;;  %v1051_v43 = vadd.f32 %v1050_v35, %v8227_v41  ;;  %v4385_v35 = vld [vmem:[%s7791_s0 + $0x90] sm:$0xff] }
 0x2c3   :  { %v1836_v42 = vpop.f32.mrf.mxu3  ;;  %v8231_v41 = vld [vmem:[#allocation91_spill] sm:$0xff] }
 0x2c4   :  { %v1920_v26 = vadd.f32 %v1836_v42, %v1632_v22 }
 0x2c5   :  { %4064 = vmatmul.msk.f32.gmra.mxu1 %vm395_vm2, %v8225_v28 }
 0x2c6   :  { %v6817_v11 = vadd.f32 %v2132_v23, %v1920_v26  ;;  %4125 = vmatmul.msk.f32.gmra.mxu2 %vm395_vm2, %v4384_v5  ;;  %v8229_v26 = vld [vmem:[#allocation105_spill] sm:$0xff] }
 0x2c7   :  { %v2135_v3 = vpop.f32.mrf.mxu0 }
 0x2c8   :  { %8226 = vst [vmem:[#allocation74_spill] sm:$0xff] %v6817_v11  ;;  %4190 = vmatmul.msk.f32.gmra.mxu3 %vm395_vm2, %v8228_v39  ;;  %v8232_v39 = vld [vmem:[#allocation57_spill] sm:$0xff] }
 0x2c9   :  { %v1551_v31 = vpop.f32.mrf.mxu2 }
 0x2ca   :  { %v1633_v10 = vadd.f32 %v1551_v31, %v1051_v43  ;;  %v1065_v22 = vpop.f32.mrf.mxu1  ;;  %4255 = vmatmul.msk.f32.gmra.mxu0 %vm395_vm2, %v8217_v47  ;;  %v1054_v43 = vadd.f32 %v1053_v7, %v8231_v41  ;;  %v4386_v7 = vld [vmem:[%s7791_s0 + $0x98] sm:$0xff]  ;;  %v8235_v41 = vld [vmem:[#allocation93_spill] sm:$0xff] }
 0x2cb   :  { %v1839_v23 = vpop.f32.mrf.mxu3 }
 0x2cc   :  { %v1921_v42 = vadd.f32 %v1839_v23, %v1633_v10 }
 0x2cd   :  { %4065 = vmatmul.msk.f32.gmra.mxu1 %vm395_vm2, %v8229_v26 }
 0x2ce   :  { %v6830_v11 = vadd.f32 %v2135_v3, %v1921_v42  ;;  %4126 = vmatmul.msk.f32.gmra.mxu2 %vm395_vm2, %v4385_v35  ;;  %v8233_v42 = vld [vmem:[#allocation108_spill] sm:$0xff] }
 0x2cf   :  { %v2138_v5 = vpop.f32.mrf.mxu0 }
 0x2d0   :  { %8230 = vst [vmem:[#allocation21_spill] sm:$0xff] %v6830_v11  ;;  %4191 = vmatmul.msk.f32.gmra.mxu3 %vm395_vm2, %v8232_v39  ;;  %v8236_v39 = vld [vmem:[#allocation60_spill] sm:$0xff] }
 0x2d1   :  { %v1554_v47 = vpop.f32.mrf.mxu2 }
 0x2d2   :  { %v1634_v31 = vadd.f32 %v1554_v47, %v1054_v43  ;;  %v1068_v10 = vpop.f32.mrf.mxu1  ;;  %4256 = vmatmul.msk.f32.gmra.mxu0 %vm395_vm2, %v8221_v21  ;;  %v1057_v43 = vadd.f32 %v1056_v12, %v8235_v41  ;;  %v4387_v12 = vld [vmem:[%s7791_s0 + $0xa8] sm:$0xff]  ;;  %v8238_v41 = vld [vmem:[#allocation96_spill] sm:$0xff] }
 0x2d3   :  { %v1842_v3 = vpop.f32.mrf.mxu3 }
 0x2d4   :  { %v1922_v23 = vadd.f32 %v1842_v3, %v1634_v31 }
 0x2d5   :  { %4066 = vmatmul.msk.f32.gmra.mxu1 %vm395_vm2, %v8233_v42 }
 0x2d6   :  { %v6843_v11 = vadd.f32 %v2138_v5, %v1922_v23  ;;  %4127 = vmatmul.msk.f32.gmra.mxu2 %vm395_vm2, %v4386_v7  ;;  %v8237_v23 = vld [vmem:[#allocation111_spill] sm:$0xff] }
 0x2d7   :  { %v2141_v35 = vpop.f32.mrf.mxu0 }
 0x2d8   :  { %8234 = vst [vmem:[#allocation89_spill] sm:$0xff] %v6843_v11  ;;  %4192 = vmatmul.msk.f32.gmra.mxu3 %vm395_vm2, %v8236_v39  ;;  %v8239_v39 = vld [vmem:[#allocation63_spill] sm:$0xff] }
 0x2d9   :  { %v1557_v21 = vpop.f32.mrf.mxu2 }
 0x2da   :  { %v1635_v47 = vadd.f32 %v1557_v21, %v1057_v43  ;;  %v1071_v31 = vpop.f32.mrf.mxu1  ;;  %4257 = vmatmul.msk.f32.gmra.mxu0 %vm395_vm2, %v8225_v28  ;;  %v1060_v43 = vadd.f32 %v1059_v9, %v8238_v41  ;;  %v4388_v9 = vld [vmem:[%s7791_s0 + $0xb0] sm:$0xff] }
 0x2db   :  { %v1845_v5 = vpop.f32.mrf.mxu3  ;;  %v8240_v41 = vld [vmem:[#allocation98_spill] sm:$0xff] }
 0x2dc   :  { %v1923_v3 = vadd.f32 %v1845_v5, %v1635_v47 }
 0x2dd   :  { %4067 = vmatmul.msk.f32.gmra.mxu1 %vm395_vm2, %v8237_v23 }
 0x2de   :  { %v6856_v11 = vadd.f32 %v2141_v35, %v1923_v3  ;;  %4128 = vmatmul.msk.f32.gmra.mxu2 %vm395_vm2, %v4387_v12 }
 0x2df   :  { %v2144_v7 = vpop.f32.mrf.mxu0 }
 0x2e0   :  { %4193 = vmatmul.msk.f32.gmra.mxu3 %vm395_vm2, %v8239_v39  ;;  %v8241_v39 = vld [vmem:[#allocation66_spill] sm:$0xff] }
 0x2e1   :  { %v1560_v28 = vpop.f32.mrf.mxu2 }
 0x2e2   :  { %v1636_v21 = vadd.f32 %v1560_v28, %v1060_v43  ;;  %v1074_v47 = vpop.f32.mrf.mxu1  ;;  %4258 = vmatmul.msk.f32.gmra.mxu0 %vm395_vm2, %v8229_v26  ;;  %v1063_v43 = vadd.f32 %v1062_v53, %v8240_v41  ;;  %v4389_v53 = vld [vmem:[%s7791_s0 + $0xc0] sm:$0xff] }
 0x2e3   :  { %v1848_v35 = vpop.f32.mrf.mxu3  ;;  %v8242_v41 = vld [vmem:[#allocation101_spill] sm:$0xff] }
 0x2e4   :  { %v1924_v5 = vadd.f32 %v1848_v35, %v1636_v21 }
 0x2e5   :  { %4068 = vmatmul.msk.f32.gmra.mxu1 %vm395_vm2, %v5633_v27 }
 0x2e6   :  { %v6869_v3 = vadd.f32 %v2144_v7, %v1924_v5  ;;  %4129 = vmatmul.msk.f32.gmra.mxu2 %vm395_vm2, %v4388_v9 }
 0x2e7   :  { %v2147_v12 = vpop.f32.mrf.mxu0 }
 0x2e8   :  { %4194 = vmatmul.msk.f32.gmra.mxu3 %vm395_vm2, %v8241_v39  ;;  %v8243_v39 = vld [vmem:[#allocation69_spill] sm:$0xff] }
 0x2e9   :  { %v1563_v26 = vpop.f32.mrf.mxu2 }
 0x2ea   :  { %v1637_v28 = vadd.f32 %v1563_v26, %v1063_v43  ;;  %v6878_v21 = vpop.f32.mrf.mxu1  ;;  %4259 = vmatmul.msk.f32.gmra.mxu0 %vm395_vm2, %v8233_v42  ;;  %v1066_v43 = vadd.f32 %v1065_v22, %v8242_v41  ;;  %v4390_v22 = vld [vmem:[%s7791_s0 + $0xc8] sm:$0xff]  ;;  %v8244_v41 = vld [vmem:[#allocation104_spill] sm:$0xff] }
 0x2eb   :  { %v1851_v7 = vpop.f32.mrf.mxu3 }
 0x2ec   :  { %v1925_v35 = vadd.f32 %v1851_v7, %v1637_v28 }
 0x2ed   :  { %4069 = vmatmul.msk.f32.gmra.mxu1 %vm395_vm2, %v5651_v62 }
 0x2ee   :  { %v6884_v5 = vadd.f32 %v2147_v12, %v1925_v35  ;;  %4130 = vmatmul.msk.f32.gmra.mxu2 %vm395_vm2, %v4389_v53 }
 0x2ef   :  { %v2150_v9 = vpop.f32.mrf.mxu0 }
 0x2f0   :  { %4195 = vmatmul.msk.f32.gmra.mxu3 %vm395_vm2, %v8243_v39  ;;  %v8245_v39 = vld [vmem:[#allocation5_spill] sm:$0xff] }
 0x2f1   :  { %v1566_v42 = vpop.f32.mrf.mxu2 }
 0x2f2   :  { %v1638_v26 = vadd.f32 %v1566_v42, %v1066_v43  ;;  %v6893_v28 = vpop.f32.mrf.mxu1  ;;  %4260 = vmatmul.msk.f32.gmra.mxu0 %vm395_vm2, %v8237_v23  ;;  %v1069_v43 = vadd.f32 %v1068_v10, %v8244_v41  ;;  %v4391_v10 = vld [vmem:[%s7791_s0 + $0xd8] sm:$0xff] }
 0x2f3   :  { %v1854_v12 = vpop.f32.mrf.mxu3  ;;  %v8246_v41 = vld [vmem:[#allocation107_spill] sm:$0xff] }
 0x2f4   :  { %v1926_v7 = vadd.f32 %v1854_v12, %v1638_v26 }
 0x2f5   :  { %4070 = vmatmul.msk.f32.gmra.mxu1 %vm395_vm2, %v5668_v24 }
 0x2f6   :  { %v6899_v35 = vadd.f32 %v2150_v9, %v1926_v7  ;;  %4131 = vmatmul.msk.f32.gmra.mxu2 %vm395_vm2, %v4390_v22 }
 0x2f7   :  { %v2153_v53 = vpop.f32.mrf.mxu0 }
 0x2f8   :  { %4196 = vmatmul.msk.f32.gmra.mxu3 %vm395_vm2, %v8245_v39  ;;  %v8247_v39 = vld [vmem:[#allocation8_spill] sm:$0xff] }
 0x2f9   :  { %v1569_v23 = vpop.f32.mrf.mxu2 }
 0x2fa   :  { %v1639_v42 = vadd.f32 %v1569_v23, %v1069_v43  ;;  %v6908_v26 = vpop.f32.mrf.mxu1  ;;  %4261 = vmatmul.msk.f32.gmra.mxu0 %vm395_vm2, %v5633_v27  ;;  %v1072_v43 = vadd.f32 %v1071_v31, %v8246_v41  ;;  %v4392_v31 = vld [vmem:[%s7791_s0 + $0xe0] sm:$0xff]  ;;  %v8248_v41 = vld [vmem:[#allocation110_spill] sm:$0xff] }
 0x2fb   :  { %v1857_v9 = vpop.f32.mrf.mxu3 }
 0x2fc   :  { %v1927_v12 = vadd.f32 %v1857_v9, %v1639_v42 }
 0x2fd   :  { %4071 = vmatmul.msk.f32.gmra.mxu1 %vm395_vm2, %v5687_v40 }
 0x2fe   :  { %v6914_v7 = vadd.f32 %v2153_v53, %v1927_v12  ;;  %4132 = vmatmul.msk.f32.gmra.mxu2 %vm395_vm2, %v4391_v10 }
 0x2ff   :  { %v2156_v22 = vpop.f32.mrf.mxu0 }
 0x300   :  { %4197 = vmatmul.msk.f32.gmra.mxu3 %vm395_vm2, %v8247_v39 }
 0x301   :  { %v1572_v27 = vpop.f32.mrf.mxu2 }
 0x302   :  { %v1640_v23 = vadd.f32 %v1572_v27, %v1072_v43  ;;  %v6923_v42 = vpop.f32.mrf.mxu1  ;;  %4262 = vmatmul.msk.f32.gmra.mxu0 %vm395_vm2, %v5651_v62  ;;  %v1075_v43 = vadd.f32 %v1074_v47, %v8248_v41 }
 0x303   :  { %v1860_v53 = vpop.f32.mrf.mxu3 }
 0x304   :  { %v1928_v9 = vadd.f32 %v1860_v53, %v1640_v23  ;;  %v3678_v53 = vld [vmem:[%s7794_s3] sm:$0xff] }
 0x305   :  { %4072 = vmatmul.msk.f32.gmra.mxu1 %vm395_vm2, %v5705_v44 }
 0x306   :  { %v6929_v12 = vadd.f32 %v2156_v22, %v1928_v9  ;;  %4133 = vmatmul.msk.f32.gmra.mxu2 %vm395_vm2, %v4392_v31  ;;  %3704 = vmatpush.msrb.mxu1 %v3678_v53 }
 0x307   :  { %v2159_v10 = vpop.f32.mrf.mxu0 }
 0x308   :  { %4198 = vmatmul.msk.f32.gmra.mxu3 %vm395_vm2, %v4647_v51  ;;  %v4393_v51 = vld [vmem:[%s7791_s0 + $0xf0] sm:$0xff] }
 0x309   :  { %v1575_v62 = vpop.f32.mrf.mxu2 }
 0x30a   :  { %v1641_v39 = vadd.f32 %v1575_v62, %v1075_v43  ;;  %v6938_v27 = vpop.f32.mrf.mxu1  ;;  %4263 = vmatmul.msk.f32.gmra.mxu0 %vm395_vm2, %v5668_v24  ;;  %v2456_v24 = vadd.f32 %v6878_v21, %v5637_v60  ;;  %v4394_v60 = vld [vmem:[%s7791_s0 + $0xf8] sm:$0xff]  ;;  %v2457_v21 = vadd.f32 %v6893_v28, %v5655_v1  ;;  %v4395_v28 = vld [vmem:[%s7791_s0 + $0x108] sm:$0xff] }
 0x30b   :  { %v1863_v22 = vpop.f32.mrf.mxu3 }
 0x30c   :  { %v1929_v23 = vadd.f32 %v1863_v22, %v1641_v39 }
 0x30d   :  { %4073 = vmatmul.msk.f32.gmra.mxu1 %vm395_vm2, %v5724_v52 }
 0x30e   :  { %v6947_v47 = vadd.f32 %v2159_v10, %v1929_v23  ;;  %4134 = vmatmul.msk.f32.gmra.mxu2 %vm395_vm2, %v4393_v51 }
 0x30f   :  { %v3142_v9 = vpop.f32.mrf.mxu0 }
 0x310   :  { %4199 = vmatmul.msk.f32.gmra.mxu3 %vm395_vm2, %v4691_v6 }
 0x311   :  { %v2552_v31 = vpop.f32.mrf.mxu2 }
 0x312   :  { %v2744_v41 = vadd.f32 %v2552_v31, %v2456_v24  ;;  %v6957_v43 = vpop.f32.mrf.mxu1  ;;  %4264 = vmatmul.msk.f32.gmra.mxu0 %vm395_vm2, %v5687_v40  ;;  %v6972_v40 = vld [vmem:[%s7793_s2] ss:$0 sm:$0xff]  ;;  %v2458_v31 = vadd.f32 %v6908_v26, %v5672_v37 }
 0x313   :  { %v2848_v10 = vpop.f32.mrf.mxu3 }
 0x314   :  { %v3040_v62 = vadd.f32 %v2848_v10, %v2744_v41  ;;  %v8249_v10 = vld [vmem:[#allocation17_spill] sm:$0xff] }
 0x315   :  { %4074 = vmatmul.msk.f32.gmra.mxu1 %vm395_vm2, %v5742_v33 }
 0x316   :  { %v3334_v39 = vadd.f32 %v3142_v9, %v3040_v62  ;;  %4135 = vmatmul.msk.f32.gmra.mxu2 %vm395_vm2, %v4394_v60 }
 0x317   :  { %v3145_v6 = vpop.f32.mrf.mxu0 }
 0x318   :  { %4200 = vmatmul.msk.f32.gmra.mxu3 %vm395_vm2, %v4734_v30  ;;  %v3402_v9 = vadd.f32 %v6972_v40, %v3334_v39 }
 0x319   :  { %v2555_v22 = vpop.f32.mrf.mxu2 }
 0x31a   :  { %v2745_v23 = vadd.f32 %v2555_v22, %v2457_v21  ;;  %v6976_v53 = vpop.f32.mrf.mxu1  ;;  %4265 = vmatmul.msk.f32.gmra.mxu0 %vm395_vm2, %v5705_v44  ;;  %v3466_v41 = vmax.f32 %v3402_v9, 0.0  ;;  %v4396_v9 = vld [vmem:[%s7791_s0 + $0x110] sm:$0xff] }
 0x31b   :  { %v2851_v51 = vpop.f32.mrf.mxu3 }
 0x31c   :  { %v3041_v24 = vadd.f32 %v2851_v51, %v2745_v23  ;;  %v3531_v22 = vsel %vm3530_vm4, %v3466_v41, 0.0 }
 0x31d   :  { %4075 = vmatmul.msk.f32.gmra.mxu1 %vm395_vm2, %v5761_v2 }
 0x31e   :  { %v3335_v1 = vadd.f32 %v3145_v6, %v3041_v24  ;;  %4136 = vmatmul.msk.f32.gmra.mxu2 %vm395_vm2, %v4395_v28 }
 0x31f   :  { %v3148_v30 = vpop.f32.mrf.mxu0 }
 0x320   :  { %v3403_v44 = vadd.f32 %v6972_v40, %v3335_v1  ;;  %4201 = vmatmul.msk.f32.gmra.mxu3 %vm395_vm2, %v8249_v10  ;;  %v8250_v1 = vld [vmem:[#allocation112_spill] sm:$0xff] }
 0x321   :  { %v2558_v62 = vpop.f32.mrf.mxu2 }
 0x322   :  { %v3467_v39 = vmax.f32 %v3403_v44, 0.0  ;;  %v2746_v60 = vadd.f32 %v2558_v62, %v2458_v31  ;;  %v6992_v6 = vpop.f32.mrf.mxu1  ;;  %4266 = vmatmul.msk.f32.gmra.mxu0 %vm395_vm2, %v5724_v52  ;;  %v2459_v52 = vadd.f32 %v6923_v42, %v8250_v1  ;;  %v8251_v31 = vld [vmem:[#allocation22_spill] sm:$0xff] }
 0x323   :  { %v2854_v21 = vpop.f32.mrf.mxu3 }
 0x324   :  { %v3532_v37 = vsel %vm3530_vm4, %v3467_v39, 0.0  ;;  %v3042_v26 = vadd.f32 %v2854_v21, %v2746_v60 }
 0x325   :  { %v3533_v23 = vadd.f32 %v3532_v37, %v3531_v22  ;;  %4076 = vmatmul.msk.f32.gmra.mxu1 %vm395_vm2, %v5779_v38  ;;  %v4397_v22 = vld [vmem:[%s7791_s0 + $0x120] sm:$0xff] }
 0x326   :  { %v3336_v51 = vadd.f32 %v3148_v30, %v3042_v26  ;;  %4137 = vmatmul.msk.f32.gmra.mxu2 %vm395_vm2, %v4396_v9  ;;  %v8252_v26 = vld [vmem:[#allocation12_spill] sm:$0xff]  ;;  %v8253_v9 = vld [vmem:[#allocation27_spill] sm:$0xff] }
 0x327   :  { %v3151_v24 = vpop.f32.mrf.mxu0 }
 0x328   :  { %v3404_v28 = vadd.f32 %v6972_v40, %v3336_v51  ;;  %4202 = vmatmul.msk.f32.gmra.mxu3 %vm395_vm2, %v8251_v31  ;;  %v2460_v51 = vadd.f32 %v6938_v27, %v8252_v26 }
 0x329   :  { %v2561_v41 = vpop.f32.mrf.mxu2 }
 0x32a   :  { %v3468_v44 = vmax.f32 %v3404_v28, 0.0  ;;  %v2747_v10 = vadd.f32 %v2561_v41, %v2459_v52  ;;  %v7009_v62 = vpop.f32.mrf.mxu1  ;;  %4267 = vmatmul.msk.f32.gmra.mxu0 %vm395_vm2, %v5742_v33 }
 0x32b   :  { %v2857_v30 = vpop.f32.mrf.mxu3 }
 0x32c   :  { %v3534_v39 = vsel %vm3530_vm4, %v3468_v44, 0.0  ;;  %v3043_v60 = vadd.f32 %v2857_v30, %v2747_v10  ;;  %v4398_v10 = vld [vmem:[%s7791_s0 + $0x128] sm:$0xff] }
 0x32d   :  { %v3535_v21 = vadd.f32 %v3534_v39, %v3533_v23  ;;  %4077 = vmatmul.msk.f32.gmra.mxu1 %vm395_vm2, %v5798_v54  ;;  %v8254_v39 = vld [vmem:[#allocation24_spill] sm:$0xff] }
 0x32e   :  { %v3337_v42 = vadd.f32 %v3151_v24, %v3043_v60  ;;  %4138 = vmatmul.msk.f32.gmra.mxu2 %vm395_vm2, %v4397_v22  ;;  %v2461_v60 = vadd.f32 %v6957_v43, %v8254_v39 }
 0x32f   :  { %v3154_v37 = vpop.f32.mrf.mxu0 }
 0x330   :  { %v3405_v33 = vadd.f32 %v6972_v40, %v3337_v42  ;;  %4203 = vmatmul.msk.f32.gmra.mxu3 %vm395_vm2, %v8253_v9  ;;  %v8255_v42 = vld [vmem:[#allocation32_spill] sm:$0xff] }
 0x331   :  { %v2564_v23 = vpop.f32.mrf.mxu2 }
 0x332   :  { %v3469_v1 = vmax.f32 %v3405_v33, 0.0  ;;  %v2748_v52 = vadd.f32 %v2564_v23, %v2460_v51  ;;  %v7025_v28 = vpop.f32.mrf.mxu1  ;;  %4268 = vmatmul.msk.f32.gmra.mxu0 %vm395_vm2, %v5761_v2 }
 0x333   :  { %v2860_v24 = vpop.f32.mrf.mxu3 }
 0x334   :  { %v3536_v31 = vsel %vm3530_vm4, %v3469_v1, 0.0  ;;  %v3044_v41 = vadd.f32 %v2860_v24, %v2748_v52  ;;  %v8256_v1 = vld [vmem:[#allocation46_spill] sm:$0xff]  ;;  %v4399_v52 = vld [vmem:[%s7791_s0 + $0x138] sm:$0xff] }
 0x335   :  { %v3537_v44 = vadd.f32 %v3536_v31, %v3535_v21  ;;  %4078 = vmatmul.msk.f32.gmra.mxu1 %vm395_vm2, %v5821_v32  ;;  %v8257_v31 = vld [vmem:[#allocation34_spill] sm:$0xff] }
 0x336   :  { %v3338_v27 = vadd.f32 %v3154_v37, %v3044_v41  ;;  %4139 = vmatmul.msk.f32.gmra.mxu2 %vm395_vm2, %v4398_v10  ;;  %v2462_v41 = vadd.f32 %v6976_v53, %v8257_v31 }
 0x337   :  { %v3157_v30 = vpop.f32.mrf.mxu0 }
 0x338   :  { %v3406_v2 = vadd.f32 %v6972_v40, %v3338_v27  ;;  %4204 = vmatmul.msk.f32.gmra.mxu3 %vm395_vm2, %v8255_v42  ;;  %v8258_v27 = vld [vmem:[#allocation38_spill] sm:$0xff] }
 0x339   :  { %v2567_v21 = vpop.f32.mrf.mxu2 }
 0x33a   :  { %v3470_v22 = vmax.f32 %v3406_v2, 0.0  ;;  %v2749_v26 = vadd.f32 %v2567_v21, %v2461_v60  ;;  %v7041_v51 = vpop.f32.mrf.mxu1  ;;  %4269 = vmatmul.msk.f32.gmra.mxu0 %vm395_vm2, %v5779_v38 }
 0x33b   :  { %v2863_v37 = vpop.f32.mrf.mxu3 }
 0x33c   :  { %v3538_v33 = vsel %vm3530_vm4, %v3470_v22, 0.0  ;;  %v3045_v9 = vadd.f32 %v2863_v37, %v2749_v26  ;;  %v8259_v22 = vld [vmem:[#allocation51_spill] sm:$0xff]  ;;  %v4400_v26 = vld [vmem:[%s7791_s0 + $0x140] sm:$0xff] }
 0x33d   :  { %v3539_v23 = vadd.f32 %v3538_v33, %v3537_v44  ;;  %4079 = vmatmul.msk.f32.gmra.mxu1 %vm395_vm2, %v8256_v1  ;;  %v8260_v33 = vld [vmem:[#allocation19_spill] sm:$0xff] }
 0x33e   :  { %v3339_v43 = vadd.f32 %v3157_v30, %v3045_v9  ;;  %4140 = vmatmul.msk.f32.gmra.mxu2 %vm395_vm2, %v4399_v52  ;;  %v2463_v9 = vadd.f32 %v6992_v6, %v8260_v33 }
 0x33f   :  { %v3160_v24 = vpop.f32.mrf.mxu0 }
 0x340   :  { %v3407_v38 = vadd.f32 %v6972_v40, %v3339_v43  ;;  %4205 = vmatmul.msk.f32.gmra.mxu3 %vm395_vm2, %v8258_v27  ;;  %v8261_v43 = vld [vmem:[#allocation43_spill] sm:$0xff] }
 0x341   :  { %v2570_v44 = vpop.f32.mrf.mxu2 }
 0x342   :  { %v3471_v10 = vmax.f32 %v3407_v38, 0.0  ;;  %v2750_v39 = vadd.f32 %v2570_v44, %v2462_v41  ;;  %v7057_v60 = vpop.f32.mrf.mxu1  ;;  %4270 = vmatmul.msk.f32.gmra.mxu0 %vm395_vm2, %v5798_v54 }
 0x343   :  { %v2866_v30 = vpop.f32.mrf.mxu3 }
 0x344   :  { %v3540_v2 = vsel %vm3530_vm4, %v3471_v10, 0.0  ;;  %v3046_v42 = vadd.f32 %v2866_v30, %v2750_v39  ;;  %v8262_v10 = vld [vmem:[#allocation114_spill] sm:$0xff] }
 0x345   :  { %v3541_v21 = vadd.f32 %v3540_v2, %v3539_v23  ;;  %4080 = vmatmul.msk.f32.gmra.mxu1 %vm395_vm2, %v8259_v22  ;;  %v4401_v39 = vld [vmem:[%s7791_s0 + $0x150] sm:$0xff] }
 0x346   :  { %v3340_v53 = vadd.f32 %v3160_v24, %v3046_v42  ;;  %4141 = vmatmul.msk.f32.gmra.mxu2 %vm395_vm2, %v4400_v26  ;;  %v8263_v2 = vld [vmem:[#allocation35_spill] sm:$0xff] }
 0x347   :  { %v3163_v37 = vpop.f32.mrf.mxu0  ;;  %v2464_v42 = vadd.f32 %v7009_v62, %v8263_v2  ;;  %v4402_v62 = vld [vmem:[%s7791_s0 + $0x180] sm:$0xff]  ;;  %v8266_v2 = vld [vmem:[#allocation54_spill] sm:$0xff] }
 0x348   :  { %v3408_v54 = vadd.f32 %v6972_v40, %v3340_v53  ;;  %4206 = vmatmul.msk.f32.gmra.mxu3 %vm395_vm2, %v8261_v43  ;;  %v8264_v53 = vld [vmem:[#allocation49_spill] sm:$0xff] }
 0x349   :  { %v2573_v23 = vpop.f32.mrf.mxu2 }
 0x34a   :  { %v3472_v52 = vmax.f32 %v3408_v54, 0.0  ;;  %v2751_v31 = vadd.f32 %v2573_v23, %v2463_v9  ;;  %v7073_v41 = vpop.f32.mrf.mxu1  ;;  %4271 = vmatmul.msk.f32.gmra.mxu0 %vm395_vm2, %v5821_v32 }
 0x34b   :  { %v2869_v24 = vpop.f32.mrf.mxu3 }
 0x34c   :  { %v3542_v38 = vsel %vm3530_vm4, %v3472_v52, 0.0  ;;  %v3047_v27 = vadd.f32 %v2869_v24, %v2751_v31  ;;  %v2226_v52 = vrot.slane %v4402_v62, 2  ;;  %v7102_v31 = vld [vmem:[%s7791_s0 + $0x188] sm:$0xff] }
 0x34d   :  { %v3543_v44 = vadd.f32 %v3542_v38, %v3541_v21  ;;  %4081 = vmatmul.msk.f32.gmra.mxu1 %vm395_vm2, %v8262_v10  ;;  %v4404_v38 = vld [vmem:[%s7791_s0 + $0x158] sm:$0xff] }
 0x34e   :  { %v3341_v6 = vadd.f32 %v3163_v37, %v3047_v27  ;;  %4142 = vmatmul.msk.f32.gmra.mxu2 %vm395_vm2, %v4401_v39 }
 0x34f   :  { %v3166_v30 = vpop.f32.mrf.mxu0 }
 0x350   :  { %v3409_v32 = vadd.f32 %v6972_v40, %v3341_v6  ;;  %4207 = vmatmul.msk.f32.gmra.mxu3 %vm395_vm2, %v8264_v53 }
 0x351   :  { %v2576_v21 = vpop.f32.mrf.mxu2 }
 0x352   :  { %v3473_v26 = vmax.f32 %v3409_v32, 0.0  ;;  %v2752_v33 = vadd.f32 %v2576_v21, %v2464_v42  ;;  %v7089_v9 = vpop.f32.mrf.mxu1  ;;  %4272 = vmatmul.msk.f32.gmra.mxu0 %vm395_vm2, %v8256_v1  ;;  %v2227_v1 = vrot.slane %v7102_v31, 2 }
 0x353   :  { %v2872_v37 = vpop.f32.mrf.mxu3 }
 0x354   :  { %v3544_v54 = vsel %vm3530_vm4, %v3473_v26, 0.0  ;;  %v3048_v43 = vadd.f32 %v2872_v37, %v2752_v33 }
 0x355   :  { %v3545_v23 = vadd.f32 %v3544_v54, %v3543_v44  ;;  %4082 = vmatmul.msk.f32.gmra.mxu1 %vm395_vm2, %v5928_v61  ;;  %v8265_v44 = vld [vmem:[#allocation45_spill] sm:$0xff] }
 0x356   :  { %v3342_v24 = vadd.f32 %v3166_v30, %v3048_v43  ;;  %4143 = vmatmul.msk.f32.gmra.mxu2 %vm395_vm2, %v4404_v38  ;;  %v2465_v6 = vadd.f32 %v7025_v28, %v8265_v44  ;;  %v2228_v30 = vsel %vm1077_vm3, %v2226_v52, %v2227_v1  ;;  %v4405_v43 = vld [vmem:[%s7791_s0 + $0x168] sm:$0xff]  ;;  %v4406_v52 = vld [vmem:[%s7791_s0 + $0x190] sm:$0x3] }
 0x357   :  { %v3169_v27 = vpop.f32.mrf.mxu0  ;;  %v8267_v38 = vld [vmem:[#allocation29_spill] sm:$0xff] }
 0x358   :  { %v3410_v39 = vadd.f32 %v6972_v40, %v3342_v24  ;;  %4208 = vmatmul.msk.f32.gmra.mxu3 %vm395_vm2, %v8266_v2  ;;  %v2229_v24 = vrot.slane %v4406_v52, 2  ;;  %v2466_v44 = vadd.f32 %v7041_v51, %v8267_v38  ;;  %v8269_v52 = vld [vmem:[#allocation40_spill] sm:$0xff] }
 0x359   :  { %v2579_v42 = vpop.f32.mrf.mxu2 }
 0x35a   :  { %v3474_v32 = vmax.f32 %v3410_v39, 0.0  ;;  %v2753_v53 = vadd.f32 %v2579_v42, %v2465_v6  ;;  %v7114_v21 = vpop.f32.mrf.mxu1  ;;  %4273 = vmatmul.msk.f32.gmra.mxu0 %vm395_vm2, %v8259_v22  ;;  %v8268_v6 = vld [vmem:[#allocation6_spill] sm:$0xff] }
 0x35b   :  { %v2875_v26 = vpop.f32.mrf.mxu3 }
 0x35c   :  { %v3546_v33 = vsel %vm3530_vm4, %v3474_v32, 0.0  ;;  %v3049_v37 = vadd.f32 %v2875_v26, %v2753_v53  ;;  %v2230_v32 = vsel %vm1077_vm3, %v2227_v1, %v2229_v24  ;;  %v2467_v1 = vadd.f32 %v7057_v60, %v8269_v52  ;;  %v8270_v24 = vld [vmem:[#allocation9_spill] sm:$0xff] }
 0x35d   :  { %v3547_v28 = vadd.f32 %v3546_v33, %v3545_v23  ;;  %4083 = vmatmul.msk.f32.gmra.mxu1 %vm395_vm2, %v2228_v30 }
 0x35e   :  { %v3343_v54 = vadd.f32 %v3169_v27, %v3049_v37  ;;  %4144 = vmatmul.msk.f32.gmra.mxu2 %vm395_vm2, %v4405_v43 }
 0x35f   :  { %v3172_v22 = vpop.f32.mrf.mxu0 }
 0x360   :  { %v3411_v23 = vadd.f32 %v6972_v40, %v3343_v54  ;;  %4209 = vmatmul.msk.f32.gmra.mxu3 %vm395_vm2, %v8268_v6  ;;  %v4407_v54 = vld [vmem:[%s7791_s0 + $0x170] sm:$0xff] }
 0x361   :  { %v2582_v27 = vpop.f32.mrf.mxu2 }
 0x362   :  { %v3475_v39 = vmax.f32 %v3411_v23, 0.0  ;;  %v2754_v2 = vadd.f32 %v2582_v27, %v2466_v44  ;;  %v7133_v42 = vpop.f32.mrf.mxu1  ;;  %4274 = vmatmul.msk.f32.gmra.mxu0 %vm395_vm2, %v8262_v10 }
 0x363   :  { %v2878_v53 = vpop.f32.mrf.mxu3 }
 0x364   :  { %v3548_v26 = vsel %vm3530_vm4, %v3475_v39, 0.0  ;;  %v3050_v33 = vadd.f32 %v2878_v53, %v2754_v2  ;;  %v8271_v53 = vld [vmem:[#allocation113_spill] sm:$0xff] }
 0x365   :  { %v3549_v51 = vadd.f32 %v3548_v26, %v3547_v28  ;;  %4084 = vmatmul.msk.f32.gmra.mxu1 %vm395_vm2, %v2230_v32  ;;  %v2468_v26 = vadd.f32 %v7073_v41, %v8271_v53 }
 0x366   :  { %v3344_v37 = vadd.f32 %v3172_v22, %v3050_v33  ;;  %4145 = vmatmul.msk.f32.gmra.mxu2 %vm395_vm2, %v4407_v54 }
 0x367   :  { %v3175_v43 = vpop.f32.mrf.mxu0 }
 0x368   :  { %v3412_v10 = vadd.f32 %v6972_v40, %v3344_v37  ;;  %4210 = vmatmul.msk.f32.gmra.mxu3 %vm395_vm2, %v8270_v24 }
 0x369   :  { %v2585_v38 = vpop.f32.mrf.mxu2 }
 0x36a   :  { %v3476_v28 = vmax.f32 %v3412_v10, 0.0  ;;  %v2755_v44 = vadd.f32 %v2585_v38, %v2467_v1  ;;  %v7149_v23 = vpop.f32.mrf.mxu1  ;;  %4275 = vmatmul.msk.f32.gmra.mxu0 %vm395_vm2, %v5928_v61  ;;  %v8272_v10 = vld [vmem:[#allocation115_spill] sm:$0xff] }
 0x36b   :  { %v2881_v22 = vpop.f32.mrf.mxu3  ;;  %v2469_v24 = vadd.f32 %v7089_v9, %v8272_v10 }
 0x36c   :  { %v3550_v6 = vsel %vm3530_vm4, %v3476_v28, 0.0  ;;  %v3051_v27 = vadd.f32 %v2881_v22, %v2755_v44 }
 0x36d   :  { %v3551_v39 = vadd.f32 %v3550_v6, %v3549_v51  ;;  %4085 = vmatmul.msk.f32.gmra.mxu1 %vm395_vm2, %v5997_v16 }
 0x36e   :  { %v3345_v60 = vadd.f32 %v3175_v43, %v3051_v27  ;;  %4146 = vmatmul.msk.f32.gmra.mxu2 %vm395_vm2, %v4402_v62 }
 0x36f   :  { %v3178_v2 = vpop.f32.mrf.mxu0 }
 0x370   :  { %v3413_v33 = vadd.f32 %v6972_v40, %v3345_v60  ;;  %4211 = vmatmul.msk.f32.gmra.mxu3 %vm395_vm2, %v5915_v17  ;;  %v72_v17 = vld [vmem:[%s7791_s0 + $0x198] sm:$0xff] }
 0x371   :  { %v2588_v61 = vpop.f32.mrf.mxu2  ;;  %v2810_v28 = vrot.slane %v72_v17, 1 }
 0x372   :  { %v3477_v37 = vmax.f32 %v3413_v33, 0.0  ;;  %v2756_v54 = vadd.f32 %v2588_v61, %v2468_v26  ;;  %v7162_v52 = vpop.f32.mrf.mxu1  ;;  %4276 = vmatmul.msk.f32.gmra.mxu0 %vm395_vm2, %v2228_v30  ;;  %v73_v30 = vld [vmem:[%s7791_s0 + $0x1a0] sm:$0xff]  ;;  %v74_v33 = vld [vmem:[%s7791_s0 + $0x1a8] sm:$0x3] }
 0x373   :  { %v2884_v16 = vpop.f32.mrf.mxu3  ;;  %v3105_v60 = vrot.slane %v73_v30, 2 }
 0x374   :  { %v3552_v51 = vsel %vm3530_vm4, %v3477_v37, 0.0  ;;  %v3052_v62 = vadd.f32 %v2884_v16, %v2756_v54  ;;  %v2470_v37 = vadd.f32 %v7114_v21, %v5937_v29 }
 0x375   :  { %v3553_v43 = vadd.f32 %v3552_v51, %v3551_v39  ;;  %4086 = vmatmul.msk.f32.gmra.mxu1 %vm395_vm2, %v6022_v19  ;;  %v3104_v39 = vrot.slane %v72_v17, 2  ;;  %v2813_v51 = vrot.slane %v74_v33, 1 }
 0x376   :  { %v3346_v41 = vadd.f32 %v3178_v2, %v3052_v62  ;;  %4147 = vmatmul.msk.f32.gmra.mxu2 %vm395_vm2, %v7102_v31  ;;  %v2811_v31 = vrot.slane %v73_v30, 1 }
 0x377   :  { %v3181_v1 = vpop.f32.mrf.mxu0  ;;  %v3106_v61 = vsel %vm1077_vm3, %v3104_v39, %v3105_v60 }
 0x378   :  { %v3414_v38 = vadd.f32 %v6972_v40, %v3346_v41  ;;  %4212 = vmatmul.msk.f32.gmra.mxu3 %vm395_vm2, %v5944_v55  ;;  %v2812_v55 = vsel %vm234_vm1, %v2810_v28, %v2811_v31  ;;  %v2814_v29 = vsel %vm234_vm1, %v2811_v31, %v2813_v51 }
 0x379   :  { %v2591_v19 = vpop.f32.mrf.mxu2 }
 0x37a   :  { %v3478_v44 = vmax.f32 %v3414_v38, 0.0  ;;  %v2757_v22 = vadd.f32 %v2591_v19, %v2469_v24  ;;  %v7181_v6 = vpop.f32.mrf.mxu1  ;;  %4277 = vmatmul.msk.f32.gmra.mxu0 %vm395_vm2, %v2230_v32 }
 0x37b   :  { %v2887_v27 = vpop.f32.mrf.mxu3 }
 0x37c   :  { %v3554_v2 = vsel %vm3530_vm4, %v3478_v44, 0.0  ;;  %v3053_v9 = vadd.f32 %v2887_v27, %v2757_v22  ;;  %v2471_v44 = vadd.f32 %v7133_v42, %v5961_v13  ;;  %v4408_v42 = vld [vmem:[%s7791_s0 + $0x1e0] sm:$0xff] }
 0x37d   :  { %v3555_v53 = vadd.f32 %v3554_v2, %v3553_v43  ;;  %4087 = vmatmul.msk.f32.gmra.mxu1 %vm395_vm2, %v6046_v59 }
 0x37e   :  { %v3347_v26 = vadd.f32 %v3181_v1, %v3053_v9  ;;  %4148 = vmatmul.msk.f32.gmra.mxu2 %vm395_vm2, %v72_v17  ;;  %v3107_v1 = vrot.slane %v74_v33, 2 }
 0x37f   :  { %v3184_v32 = vpop.f32.mrf.mxu0 }
 0x380   :  { %v3415_v54 = vadd.f32 %v6972_v40, %v3347_v26  ;;  %4213 = vmatmul.msk.f32.gmra.mxu3 %vm395_vm2, %v2812_v55  ;;  %v3108_v28 = vsel %vm1077_vm3, %v3105_v60, %v3107_v1  ;;  %v2472_v26 = vadd.f32 %v7149_v23, %v5983_v18 }
 0x381   :  { %v2594_v16 = vpop.f32.mrf.mxu2 }
 0x382   :  { %v3479_v62 = vmax.f32 %v3415_v54, 0.0  ;;  %v2758_v43 = vadd.f32 %v2594_v16, %v2470_v37  ;;  %v7197_v41 = vpop.f32.mrf.mxu1  ;;  %4278 = vmatmul.msk.f32.gmra.mxu0 %vm395_vm2, %v3106_v61 }
 0x383   :  { %v2890_v17 = vpop.f32.mrf.mxu3 }
 0x384   :  { %v3556_v10 = vsel %vm3530_vm4, %v3479_v62, 0.0  ;;  %v3054_v24 = vadd.f32 %v2890_v17, %v2758_v43  ;;  %v8273_v17 = vld [vmem:[#allocation14_spill] sm:$0xff] }
 0x385   :  { %v3557_v38 = vadd.f32 %v3556_v10, %v3555_v53  ;;  %4088 = vmatmul.msk.f32.gmra.mxu1 %vm395_vm2, %v6071_v46  ;;  %v2473_v1 = vadd.f32 %v7162_v52, %v8273_v17  ;;  %v8274_v10 = vld [vmem:[#allocation28_spill] sm:$0xff] }
 0x386   :  { %v3348_v21 = vadd.f32 %v3184_v32, %v3054_v24  ;;  %4149 = vmatmul.msk.f32.gmra.mxu2 %vm395_vm2, %v73_v30 }
 0x387   :  { %v3187_v19 = vpop.f32.mrf.mxu0 }
 0x388   :  { %v3416_v22 = vadd.f32 %v6972_v40, %v3348_v21  ;;  %4214 = vmatmul.msk.f32.gmra.mxu3 %vm395_vm2, %v2814_v29 }
 0x389   :  { %v2597_v27 = vpop.f32.mrf.mxu2 }
 0x38a   :  { %v3480_v39 = vmax.f32 %v3416_v22, 0.0  ;;  %v2759_v2 = vadd.f32 %v2597_v27, %v2471_v44  ;;  %v7210_v9 = vpop.f32.mrf.mxu1  ;;  %4279 = vmatmul.msk.f32.gmra.mxu0 %vm395_vm2, %v3108_v28  ;;  %v4410_v27 = vld [vmem:[%s7791_s0 + $0x1f8] sm:$0xff] }
 0x38b   :  { %v2893_v31 = vpop.f32.mrf.mxu3 }
 0x38c   :  { %v3558_v30 = vsel %vm3530_vm4, %v3480_v39, 0.0  ;;  %v3055_v53 = vadd.f32 %v2893_v31, %v2759_v2  ;;  %v8275_v2 = vld [vmem:[#allocation18_spill] sm:$0xff] }
 0x38d   :  { %v3559_v55 = vadd.f32 %v3558_v30, %v3557_v38  ;;  %4089 = vmatmul.msk.f32.gmra.mxu1 %vm395_vm2, %v6095_v0  ;;  %v2474_v31 = vadd.f32 %v7181_v6, %v8275_v2  ;;  %v8276_v30 = vld [vmem:[#allocation33_spill] sm:$0xff] }
 0x38e   :  { %v3349_v13 = vadd.f32 %v3187_v19, %v3055_v53  ;;  %4150 = vmatmul.msk.f32.gmra.mxu2 %vm395_vm2, %v4408_v42 }
 0x38f   :  { %v3190_v60 = vpop.f32.mrf.mxu0 }
 0x390   :  { %v3417_v33 = vadd.f32 %v6972_v40, %v3349_v13  ;;  %4215 = vmatmul.msk.f32.gmra.mxu3 %vm395_vm2, %v8113_v56  ;;  %v4409_v56 = vld [vmem:[%s7791_s0 + $0x1e8] sm:$0xff] }
 0x391   :  { %v2600_v32 = vpop.f32.mrf.mxu2 }
 0x392   :  { %v3481_v61 = vmax.f32 %v3417_v33, 0.0  ;;  %v2760_v37 = vadd.f32 %v2600_v32, %v2472_v26  ;;  %v7225_v54 = vpop.f32.mrf.mxu1  ;;  %4280 = vmatmul.msk.f32.gmra.mxu0 %vm395_vm2, %v6046_v59 }
 0x393   :  { %v2896_v16 = vpop.f32.mrf.mxu3 }
 0x394   :  { %v3560_v51 = vsel %vm3530_vm4, %v3481_v61, 0.0  ;;  %v3056_v62 = vadd.f32 %v2896_v16, %v2760_v37  ;;  %v4411_v61 = vld [vmem:[%s7791_s0 + $0x200] sm:$0xff]  ;;  %v8277_v16 = vld [vmem:[#allocation23_spill] sm:$0xff] }
 0x395   :  { %v3561_v43 = vadd.f32 %v3560_v51, %v3559_v55  ;;  %4090 = vmatmul.msk.f32.gmra.mxu1 %vm395_vm2, %v6120_v25  ;;  %v2475_v51 = vadd.f32 %v7197_v41, %v8277_v16 }
 0x396   :  { %v3350_v18 = vadd.f32 %v3190_v60, %v3056_v62  ;;  %4151 = vmatmul.msk.f32.gmra.mxu2 %vm395_vm2, %v4409_v56  ;;  %v8278_v62 = vld [vmem:[#allocation39_spill] sm:$0xff] }
 0x397   :  { %v3193_v23 = vpop.f32.mrf.mxu0 }
 0x398   :  { %v3418_v59 = vadd.f32 %v6972_v40, %v3350_v18  ;;  %4216 = vmatmul.msk.f32.gmra.mxu3 %vm395_vm2, %v8274_v10 }
 0x399   :  { %v2603_v24 = vpop.f32.mrf.mxu2 }
 0x39a   :  { %v3482_v38 = vmax.f32 %v3418_v59, 0.0  ;;  %v2761_v29 = vadd.f32 %v2603_v24, %v2473_v1  ;;  %v7241_v21 = vpop.f32.mrf.mxu1  ;;  %4281 = vmatmul.msk.f32.gmra.mxu0 %vm395_vm2, %v6071_v46  ;;  %v4412_v24 = vld [vmem:[%s7791_s0 + $0x210] sm:$0xff] }
 0x39b   :  { %v2899_v19 = vpop.f32.mrf.mxu3 }
 0x39c   :  { %v3562_v28 = vsel %vm3530_vm4, %v3482_v38, 0.0  ;;  %v3057_v44 = vadd.f32 %v2899_v19, %v2761_v29  ;;  %v8279_v29 = vld [vmem:[#allocation116_spill] sm:$0xff] }
 0x39d   :  { %v3563_v22 = vadd.f32 %v3562_v28, %v3561_v43  ;;  %4091 = vmatmul.msk.f32.gmra.mxu1 %vm395_vm2, %v6144_v20  ;;  %v2476_v19 = vadd.f32 %v7210_v9, %v8279_v29  ;;  %v8280_v28 = vld [vmem:[#allocation44_spill] sm:$0xff] }
 0x39e   :  { %v3351_v52 = vadd.f32 %v3193_v23, %v3057_v44  ;;  %4152 = vmatmul.msk.f32.gmra.mxu2 %vm395_vm2, %v4410_v27 }
 0x39f   :  { %v3196_v39 = vpop.f32.mrf.mxu0 }
 0x3a0   :  { %v3419_v46 = vadd.f32 %v6972_v40, %v3351_v52  ;;  %4217 = vmatmul.msk.f32.gmra.mxu3 %vm395_vm2, %v8276_v30  ;;  %v4413_v30 = vld [vmem:[%s7791_s0 + $0x218] sm:$0xff] }
 0x3a1   :  { %v2606_v53 = vpop.f32.mrf.mxu2 }
 0x3a2   :  { %v3483_v55 = vmax.f32 %v3419_v46, 0.0  ;;  %v2762_v13 = vadd.f32 %v2606_v53, %v2474_v31  ;;  %v7257_v42 = vpop.f32.mrf.mxu1  ;;  %4282 = vmatmul.msk.f32.gmra.mxu0 %vm395_vm2, %v6095_v0 }
 0x3a3   :  { %v2902_v60 = vpop.f32.mrf.mxu3 }
 0x3a4   :  { %v3564_v26 = vsel %vm3530_vm4, %v3483_v55, 0.0  ;;  %v3058_v33 = vadd.f32 %v2902_v60, %v2762_v13  ;;  %v8281_v55 = vld [vmem:[#allocation117_spill] sm:$0xff]  ;;  %v8282_v60 = vld [vmem:[#allocation50_spill] sm:$0xff] }
 0x3a5   :  { %v3565_v32 = vadd.f32 %v3564_v26, %v3563_v22  ;;  %4092 = vmatmul.msk.f32.gmra.mxu1 %vm395_vm2, %v6169_v15  ;;  %v2477_v13 = vadd.f32 %v7225_v54, %v8281_v55  ;;  %v8287_v55 = vld [vmem:[#allocation125_spill] sm:$0xff] }
 0x3a6   :  { %v3352_v6 = vadd.f32 %v3196_v39, %v3058_v33  ;;  %4153 = vmatmul.msk.f32.gmra.mxu2 %vm395_vm2, %v4411_v61 }
 0x3a7   :  { %v3199_v37 = vpop.f32.mrf.mxu0 }
 0x3a8   :  { %v3420_v0 = vadd.f32 %v6972_v40, %v3352_v6  ;;  %4218 = vmatmul.msk.f32.gmra.mxu3 %vm395_vm2, %v8278_v62 }
 0x3a9   :  { %v2609_v43 = vpop.f32.mrf.mxu2 }
 0x3aa   :  { %v3484_v18 = vmax.f32 %v3420_v0, 0.0  ;;  %v2763_v56 = vadd.f32 %v2609_v43, %v2475_v51  ;;  %v7273_v23 = vpop.f32.mrf.mxu1  ;;  %4283 = vmatmul.msk.f32.gmra.mxu0 %vm395_vm2, %v6120_v25  ;;  %v4414_v0 = vld [vmem:[%s7791_s0 + $0x228] sm:$0xff] }
 0x3ab   :  { %v2905_v17 = vpop.f32.mrf.mxu3  ;;  %v8283_v43 = vld [vmem:[#allocation118_spill] sm:$0xff] }
 0x3ac   :  { %v3566_v1 = vsel %vm3530_vm4, %v3484_v18, 0.0  ;;  %v3059_v59 = vadd.f32 %v2905_v17, %v2763_v56  ;;  %v2478_v18 = vadd.f32 %v7241_v21, %v8283_v43  ;;  %v8284_v56 = vld [vmem:[#allocation55_spill] sm:$0xff]  ;;  %v8290_v43 = vld [vmem:[#allocation70_spill] sm:$0xff] }
 0x3ad   :  { %v3567_v10 = vadd.f32 %v3566_v1, %v3565_v32  ;;  %4093 = vmatmul.msk.f32.gmra.mxu1 %vm395_vm2, %v6193_v14 }
 0x3ae   :  { %v3353_v41 = vadd.f32 %v3199_v37, %v3059_v59  ;;  %4154 = vmatmul.msk.f32.gmra.mxu2 %vm395_vm2, %v4412_v24 }
 0x3af   :  { %v3202_v38 = vpop.f32.mrf.mxu0 }
 0x3b0   :  { %v3421_v25 = vadd.f32 %v6972_v40, %v3353_v41  ;;  %4219 = vmatmul.msk.f32.gmra.mxu3 %vm395_vm2, %v8280_v28  ;;  %v8285_v28 = vld [vmem:[#allocation119_spill] sm:$0xff] }
 0x3b1   :  { %v2612_v44 = vpop.f32.mrf.mxu2 }
 0x3b2   :  { %v3485_v22 = vmax.f32 %v3421_v25, 0.0  ;;  %v2764_v52 = vadd.f32 %v2612_v44, %v2476_v19  ;;  %v7289_v27 = vpop.f32.mrf.mxu1  ;;  %4284 = vmatmul.msk.f32.gmra.mxu0 %vm395_vm2, %v6144_v20  ;;  %v4415_v19 = vld [vmem:[%s7791_s0 + $0x230] sm:$0xff]  ;;  %v2479_v44 = vadd.f32 %v7257_v42, %v8285_v28  ;;  %v4418_v28 = vld [vmem:[%s7791_s0 + $0x258] sm:$0xff] }
 0x3b3   :  { %v2908_v39 = vpop.f32.mrf.mxu3 }
 0x3b4   :  { %v3568_v2 = vsel %vm3530_vm4, %v3485_v22, 0.0  ;;  %v3060_v31 = vadd.f32 %v2908_v39, %v2764_v52  ;;  %v8286_v22 = vld [vmem:[#allocation58_spill] sm:$0xff] }
 0x3b5   :  { %v3569_v46 = vadd.f32 %v3568_v2, %v3567_v10  ;;  %4094 = vmatmul.msk.f32.gmra.mxu1 %vm395_vm2, %v6218_v45 }
 0x3b6   :  { %v3354_v9 = vadd.f32 %v3202_v38, %v3060_v31  ;;  %4155 = vmatmul.msk.f32.gmra.mxu2 %vm395_vm2, %v4413_v30 }
 0x3b7   :  { %v3205_v53 = vpop.f32.mrf.mxu0 }
 0x3b8   :  { %v3422_v20 = vadd.f32 %v6972_v40, %v3354_v9  ;;  %4220 = vmatmul.msk.f32.gmra.mxu3 %vm395_vm2, %v8282_v60  ;;  %v8288_v60 = vld [vmem:[#allocation120_spill] sm:$0xff] }
 0x3b9   :  { %v2615_v26 = vpop.f32.mrf.mxu2 }
 0x3ba   :  { %v3486_v33 = vmax.f32 %v3422_v20, 0.0  ;;  %v2765_v32 = vadd.f32 %v2615_v26, %v2477_v13  ;;  %v7305_v6 = vpop.f32.mrf.mxu1  ;;  %4285 = vmatmul.msk.f32.gmra.mxu0 %vm395_vm2, %v6169_v15  ;;  %v4416_v13 = vld [vmem:[%s7791_s0 + $0x240] sm:$0xff]  ;;  %v2480_v26 = vadd.f32 %v7273_v23, %v8288_v60 }
 0x3bb   :  { %v2911_v61 = vpop.f32.mrf.mxu3 }
 0x3bc   :  { %v3570_v37 = vsel %vm3530_vm4, %v3486_v33, 0.0  ;;  %v3061_v16 = vadd.f32 %v2911_v61, %v2765_v32  ;;  %v8289_v33 = vld [vmem:[#allocation61_spill] sm:$0xff] }
 0x3bd   :  { %v3571_v51 = vadd.f32 %v3570_v37, %v3569_v46  ;;  %4095 = vmatmul.msk.f32.gmra.mxu1 %vm395_vm2, %v6242_v49 }
 0x3be   :  { %v3355_v54 = vadd.f32 %v3205_v53, %v3061_v16  ;;  %4156 = vmatmul.msk.f32.gmra.mxu2 %vm395_vm2, %v4414_v0 }
 0x3bf   :  { %v3208_v62 = vpop.f32.mrf.mxu0 }
 0x3c0   :  { %v3423_v15 = vadd.f32 %v6972_v40, %v3355_v54  ;;  %4221 = vmatmul.msk.f32.gmra.mxu3 %vm395_vm2, %v8284_v56  ;;  %v8291_v56 = vld [vmem:[#allocation121_spill] sm:$0xff] }
 0x3c1   :  { %v2618_v17 = vpop.f32.mrf.mxu2 }
 0x3c2   :  { %v3487_v1 = vmax.f32 %v3423_v15, 0.0  ;;  %v2766_v59 = vadd.f32 %v2618_v17, %v2478_v18  ;;  %v7321_v10 = vpop.f32.mrf.mxu1  ;;  %4286 = vmatmul.msk.f32.gmra.mxu0 %vm395_vm2, %v6193_v14  ;;  %v4417_v18 = vld [vmem:[%s7791_s0 + $0x248] sm:$0xff]  ;;  %v2481_v17 = vadd.f32 %v7289_v27, %v8291_v56  ;;  %v8297_v56 = vld [vmem:[#allocation124_spill] sm:$0xff] }
 0x3c3   :  { %v2914_v41 = vpop.f32.mrf.mxu3 }
 0x3c4   :  { %v3572_v24 = vsel %vm3530_vm4, %v3487_v1, 0.0  ;;  %v3062_v38 = vadd.f32 %v2914_v41, %v2766_v59  ;;  %v8292_v1 = vld [vmem:[#allocation64_spill] sm:$0xff] }
 0x3c5   :  { %v3573_v29 = vadd.f32 %v3572_v24, %v3571_v51  ;;  %4096 = vmatmul.msk.f32.gmra.mxu1 %vm395_vm2, %v6267_v36 }
 0x3c6   :  { %v3356_v21 = vadd.f32 %v3208_v62, %v3062_v38  ;;  %4157 = vmatmul.msk.f32.gmra.mxu2 %vm395_vm2, %v4415_v19 }
 0x3c7   :  { %v3211_v25 = vpop.f32.mrf.mxu0 }
 0x3c8   :  { %v3424_v14 = vadd.f32 %v6972_v40, %v3356_v21  ;;  %4222 = vmatmul.msk.f32.gmra.mxu3 %vm395_vm2, %v8286_v22 }
 0x3c9   :  { %v2621_v52 = vpop.f32.mrf.mxu2 }
 0x3ca   :  { %v3488_v39 = vmax.f32 %v3424_v14, 0.0  ;;  %v2767_v2 = vadd.f32 %v2621_v52, %v2479_v44  ;;  %v7337_v31 = vpop.f32.mrf.mxu1  ;;  %4287 = vmatmul.msk.f32.gmra.mxu0 %vm395_vm2, %v6218_v45  ;;  %v8293_v14 = vld [vmem:[#allocation122_spill] sm:$0xff]  ;;  %v8294_v52 = vld [vmem:[#allocation67_spill] sm:$0xff] }
 0x3cb   :  { %v2917_v46 = vpop.f32.mrf.mxu3  ;;  %v2482_v22 = vadd.f32 %v7305_v6, %v8293_v14  ;;  %v8300_v14 = vld [vmem:[#allocation126_spill] sm:$0xff] }
 0x3cc   :  { %v3574_v9 = vsel %vm3530_vm4, %v3488_v39, 0.0  ;;  %v3063_v30 = vadd.f32 %v2917_v46, %v2767_v2 }
 0x3cd   :  { %v3575_v53 = vadd.f32 %v3574_v9, %v3573_v29  ;;  %4097 = vmatmul.msk.f32.gmra.mxu1 %vm395_vm2, %v8287_v55 }
 0x3ce   :  { %v3357_v42 = vadd.f32 %v3211_v25, %v3063_v30  ;;  %4158 = vmatmul.msk.f32.gmra.mxu2 %vm395_vm2, %v4416_v13 }
 0x3cf   :  { %v3214_v20 = vpop.f32.mrf.mxu0 }
 0x3d0   :  { %v3425_v45 = vadd.f32 %v6972_v40, %v3357_v42  ;;  %4223 = vmatmul.msk.f32.gmra.mxu3 %vm395_vm2, %v8289_v33  ;;  %v8296_v33 = vld [vmem:[#allocation7_spill] sm:$0xff] }
 0x3d1   :  { %v2624_v32 = vpop.f32.mrf.mxu2 }
 0x3d2   :  { %v3489_v61 = vmax.f32 %v3425_v45, 0.0  ;;  %v2768_v37 = vadd.f32 %v2624_v32, %v2480_v26  ;;  %v7353_v16 = vpop.f32.mrf.mxu1  ;;  %4288 = vmatmul.msk.f32.gmra.mxu0 %vm395_vm2, %v6242_v49  ;;  %v8295_v26 = vld [vmem:[#allocation123_spill] sm:$0xff] }
 0x3d3   :  { %v2920_v51 = vpop.f32.mrf.mxu3  ;;  %v2483_v45 = vadd.f32 %v7321_v10, %v8295_v26 }
 0x3d4   :  { %v3576_v54 = vsel %vm3530_vm4, %v3489_v61, 0.0  ;;  %v3064_v0 = vadd.f32 %v2920_v51, %v2768_v37 }
 0x3d5   :  { %v3577_v62 = vadd.f32 %v3576_v54, %v3575_v53  ;;  %4098 = vmatmul.msk.f32.gmra.mxu1 %vm395_vm2, %v8290_v43 }
 0x3d6   :  { %v3358_v23 = vadd.f32 %v3214_v20, %v3064_v0  ;;  %4159 = vmatmul.msk.f32.gmra.mxu2 %vm395_vm2, %v4417_v18  ;;  %v4419_v20 = vld [vmem:[%s7791_s0 + $0x260] sm:$0xff]  ;;  %v4420_v18 = vld [vmem:[%s7791_s0 + $0x270] sm:$0xff] }
 0x3d7   :  { %v3217_v15 = vpop.f32.mrf.mxu0 }
 0x3d8   :  { %v3426_v49 = vadd.f32 %v6972_v40, %v3358_v23  ;;  %4224 = vmatmul.msk.f32.gmra.mxu3 %vm395_vm2, %v8292_v1 }
 0x3d9   :  { %v2627_v59 = vpop.f32.mrf.mxu2 }
 0x3da   :  { %v3490_v41 = vmax.f32 %v3426_v49, 0.0  ;;  %v2769_v24 = vadd.f32 %v2627_v59, %v2481_v17  ;;  %v7369_v38 = vpop.f32.mrf.mxu1  ;;  %4289 = vmatmul.msk.f32.gmra.mxu0 %vm395_vm2, %v6267_v36  ;;  %v2484_v17 = vadd.f32 %v7337_v31, %v8297_v56  ;;  %v8298_v49 = vld [vmem:[#allocation10_spill] sm:$0xff] }
 0x3db   :  { %v2923_v29 = vpop.f32.mrf.mxu3 }
 0x3dc   :  { %v3578_v21 = vsel %vm3530_vm4, %v3490_v41, 0.0  ;;  %v3065_v19 = vadd.f32 %v2923_v29, %v2769_v24 }
 0x3dd   :  { %v3579_v25 = vadd.f32 %v3578_v21, %v3577_v62  ;;  %4099 = vmatmul.msk.f32.gmra.mxu1 %vm395_vm2, %v6340_v8 }
 0x3de   :  { %v3359_v27 = vadd.f32 %v3217_v15, %v3065_v19  ;;  %4160 = vmatmul.msk.f32.gmra.mxu2 %vm395_vm2, %v4418_v28  ;;  %v4421_v28 = vld [vmem:[%s7791_s0 + $0x278] sm:$0xff] }
 0x3df   :  { %v3220_v44 = vpop.f32.mrf.mxu0 }
 0x3e0   :  { %v3427_v36 = vadd.f32 %v6972_v40, %v3359_v27  ;;  %4225 = vmatmul.msk.f32.gmra.mxu3 %vm395_vm2, %v8294_v52  ;;  %v8299_v27 = vld [vmem:[#allocation130_spill] sm:$0xff] }
 0x3e1   :  { %v2630_v39 = vpop.f32.mrf.mxu2 }
 0x3e2   :  { %v3491_v2 = vmax.f32 %v3427_v36, 0.0  ;;  %v2770_v46 = vadd.f32 %v2630_v39, %v2482_v22  ;;  %v7385_v9 = vpop.f32.mrf.mxu1  ;;  %4290 = vmatmul.msk.f32.gmra.mxu0 %vm395_vm2, %v8287_v55  ;;  %v2485_v22 = vadd.f32 %v7353_v16, %v8300_v14  ;;  %v8301_v36 = vld [vmem:[#allocation11_spill] sm:$0xff]  ;;  %v8308_v14 = vld [vmem:[#allocation20_spill] sm:$0xff] }
 0x3e3   :  { %v2926_v30 = vpop.f32.mrf.mxu3 }
 0x3e4   :  { %v3580_v53 = vsel %vm3530_vm4, %v3491_v2, 0.0  ;;  %v3066_v42 = vadd.f32 %v2926_v30, %v2770_v46 }
 0x3e5   :  { %v3581_v13 = vadd.f32 %v3580_v53, %v3579_v25  ;;  %4100 = vmatmul.msk.f32.gmra.mxu1 %vm395_vm2, %v6365_v48 }
 0x3e6   :  { %v3360_v6 = vadd.f32 %v3220_v44, %v3066_v42  ;;  %4161 = vmatmul.msk.f32.gmra.mxu2 %vm395_vm2, %v4419_v20 }
 0x3e7   :  { %v3223_v60 = vpop.f32.mrf.mxu0 }
 0x3e8   :  { %v3428_v55 = vadd.f32 %v6972_v40, %v3360_v6  ;;  %4226 = vmatmul.msk.f32.gmra.mxu3 %vm395_vm2, %v8296_v33  ;;  %v4422_v6 = vld [vmem:[%s7791_s0 + $0x288] sm:$0xff] }
 0x3e9   :  { %v2633_v32 = vpop.f32.mrf.mxu2 }
 0x3ea   :  { %v3492_v61 = vmax.f32 %v3428_v55, 0.0  ;;  %v2771_v37 = vadd.f32 %v2633_v32, %v2483_v45  ;;  %v7401_v51 = vpop.f32.mrf.mxu1  ;;  %4291 = vmatmul.msk.f32.gmra.mxu0 %vm395_vm2, %v8290_v43  ;;  %v8303_v45 = vld [vmem:[#allocation13_spill] sm:$0xff] }
 0x3eb   :  { %v2929_v54 = vpop.f32.mrf.mxu3 }
 0x3ec   :  { %v3582_v0 = vsel %vm3530_vm4, %v3492_v61, 0.0  ;;  %v3067_v62 = vadd.f32 %v2929_v54, %v2771_v37 }
 0x3ed   :  { %v3583_v23 = vadd.f32 %v3582_v0, %v3581_v13  ;;  %4101 = vmatmul.msk.f32.gmra.mxu1 %vm395_vm2, %v6389_v57 }
 0x3ee   :  { %v3361_v10 = vadd.f32 %v3223_v60, %v3067_v62  ;;  %4162 = vmatmul.msk.f32.gmra.mxu2 %vm395_vm2, %v4420_v18  ;;  %v8302_v60 = vld [vmem:[#allocation127_spill] sm:$0xff] }
 0x3ef   :  { %v3226_v15 = vpop.f32.mrf.mxu0  ;;  %v2486_v26 = vadd.f32 %v7369_v38, %v8302_v60 }
 0x3f0   :  { %v3429_v43 = vadd.f32 %v6972_v40, %v3361_v10  ;;  %4227 = vmatmul.msk.f32.gmra.mxu3 %vm395_vm2, %v8298_v49  ;;  %v4423_v10 = vld [vmem:[%s7791_s0 + $0x290] sm:$0xff] }
 0x3f1   :  { %v2636_v1 = vpop.f32.mrf.mxu2 }
 0x3f2   :  { %v3493_v59 = vmax.f32 %v3429_v43, 0.0  ;;  %v2772_v41 = vadd.f32 %v2636_v1, %v2484_v17  ;;  %v7417_v24 = vpop.f32.mrf.mxu1  ;;  %4292 = vmatmul.msk.f32.gmra.mxu0 %vm395_vm2, %v6340_v8  ;;  %v8306_v17 = vld [vmem:[#allocation15_spill] sm:$0xff] }
 0x3f3   :  { %v2932_v29 = vpop.f32.mrf.mxu3 }
 0x3f4   :  { %v3584_v21 = vsel %vm3530_vm4, %v3493_v59, 0.0  ;;  %v3068_v19 = vadd.f32 %v2932_v29, %v2772_v41 }
 0x3f5   :  { %v3585_v25 = vadd.f32 %v3584_v21, %v3583_v23  ;;  %4102 = vmatmul.msk.f32.gmra.mxu1 %vm395_vm2, %v8299_v27  ;;  %v8304_v23 = vld [vmem:[#allocation132_spill] sm:$0xff] }
 0x3f6   :  { %v3362_v31 = vadd.f32 %v3226_v15, %v3068_v19  ;;  %4163 = vmatmul.msk.f32.gmra.mxu2 %vm395_vm2, %v4421_v28  ;;  %v8305_v15 = vld [vmem:[#allocation72_spill] sm:$0xff] }
 0x3f7   :  { %v3229_v44 = vpop.f32.mrf.mxu0  ;;  %v2487_v56 = vadd.f32 %v7385_v9, %v8305_v15  ;;  %v4424_v9 = vld [vmem:[%s7791_s0 + $0x2a0] sm:$0xff] }
 0x3f8   :  { %v3430_v8 = vadd.f32 %v6972_v40, %v3362_v31  ;;  %4228 = vmatmul.msk.f32.gmra.mxu3 %vm395_vm2, %v8301_v36  ;;  %v8307_v31 = vld [vmem:[#allocation128_spill] sm:$0xff] }
 0x3f9   :  { %v2639_v52 = vpop.f32.mrf.mxu2  ;;  %v2488_v28 = vadd.f32 %v7401_v51, %v8307_v31 }
 0x3fa   :  { %v3494_v39 = vmax.f32 %v3430_v8, 0.0  ;;  %v2773_v2 = vadd.f32 %v2639_v52, %v2485_v22  ;;  %v7433_v46 = vpop.f32.mrf.mxu1  ;;  %4293 = vmatmul.msk.f32.gmra.mxu0 %vm395_vm2, %v6365_v48 }
 0x3fb   :  { %v2935_v30 = vpop.f32.mrf.mxu3 }
 0x3fc   :  { %v3586_v53 = vsel %vm3530_vm4, %v3494_v39, 0.0  ;;  %v3069_v42 = vadd.f32 %v2935_v30, %v2773_v2 }
 0x3fd   :  { %v3587_v13 = vadd.f32 %v3586_v53, %v3585_v25  ;;  %4103 = vmatmul.msk.f32.gmra.mxu1 %vm395_vm2, %v6438_v50  ;;  %v8309_v53 = vld [vmem:[#allocation134_spill] sm:$0xff] }
 0x3fe   :  { %v3363_v16 = vadd.f32 %v3229_v44, %v3069_v42  ;;  %4164 = vmatmul.msk.f32.gmra.mxu2 %vm395_vm2, %v4422_v6  ;;  %v8310_v6 = vld [vmem:[#allocation129_spill] sm:$0xff] }
 0x3ff   :  { %v3232_v20 = vpop.f32.mrf.mxu0 }
 0x400   :  { %v3431_v48 = vadd.f32 %v6972_v40, %v3363_v16  ;;  %4229 = vmatmul.msk.f32.gmra.mxu3 %vm395_vm2, %v8303_v45 }
 0x401   :  { %v2642_v55 = vpop.f32.mrf.mxu2 }
 0x402   :  { %v3495_v33 = vmax.f32 %v3431_v48, 0.0  ;;  %v2774_v32 = vadd.f32 %v2642_v55, %v2486_v26  ;;  %v7449_v61 = vpop.f32.mrf.mxu1  ;;  %4294 = vmatmul.msk.f32.gmra.mxu0 %vm395_vm2, %v6389_v57 }
 0x403   :  { %v2938_v37 = vpop.f32.mrf.mxu3 }
 0x404   :  { %v3588_v54 = vsel %vm3530_vm4, %v3495_v33, 0.0  ;;  %v3070_v0 = vadd.f32 %v2938_v37, %v2774_v32  ;;  %v8312_v32 = vld [vmem:[#allocation90_spill] sm:$0xff] }
 0x405   :  { %v3589_v62 = vadd.f32 %v3588_v54, %v3587_v13  ;;  %4104 = vmatmul.msk.f32.gmra.mxu1 %vm395_vm2, %v8304_v23  ;;  %v4426_v13 = vld [vmem:[%s7791_s0 + $0x2a8] sm:$0xff] }
 0x406   :  { %v3364_v38 = vadd.f32 %v3232_v20, %v3070_v0  ;;  %4165 = vmatmul.msk.f32.gmra.mxu2 %vm395_vm2, %v4423_v10  ;;  %v8311_v20 = vld [vmem:[#allocation25_spill] sm:$0xff]  ;;  %v8313_v0 = vld [vmem:[#allocation131_spill] sm:$0xff]  ;;  %v8314_v10 = vld [vmem:[#allocation30_spill] sm:$0xff] }
 0x407   :  { %v3235_v18 = vpop.f32.mrf.mxu0 }
 0x408   :  { %v3432_v57 = vadd.f32 %v6972_v40, %v3364_v38  ;;  %4230 = vmatmul.msk.f32.gmra.mxu3 %vm395_vm2, %v8306_v17 }
 0x409   :  { %v2645_v43 = vpop.f32.mrf.mxu2 }
 0x40a   :  { %v3496_v49 = vmax.f32 %v3432_v57, 0.0  ;;  %v2775_v1 = vadd.f32 %v2645_v43, %v2487_v56  ;;  %v7465_v59 = vpop.f32.mrf.mxu1  ;;  %4295 = vmatmul.msk.f32.gmra.mxu0 %vm395_vm2, %v8299_v27  ;;  %v7481_v27 = vld [vmem:[%s7793_s2] ss:$0 sm:$0xff] }
 0x40b   :  { %v2941_v41 = vpop.f32.mrf.mxu3 }
 0x40c   :  { %v3590_v29 = vsel %vm3530_vm4, %v3496_v49, 0.0  ;;  %v3071_v21 = vadd.f32 %v2941_v41, %v2775_v1  ;;  %v8315_v41 = vld [vmem:[#allocation137_spill] sm:$0xff] }
 0x40d   :  { %v3591_v19 = vadd.f32 %v3590_v29, %v3589_v62  ;;  %4105 = vmatmul.msk.f32.gmra.mxu1 %vm395_vm2, %v6487_v63  ;;  %v2490_v62 = vadd.f32 %v7433_v46, %v8313_v0 }
 0x40e   :  { %v3365_v40 = vadd.f32 %v3235_v18, %v3071_v21  ;;  %4166 = vmatmul.msk.f32.gmra.mxu2 %vm395_vm2, %v4424_v9  ;;  %v4428_v21 = vld [vmem:[%s7791_s0 + $0x2c0] sm:$0xff] }
 0x40f   :  { %v3238_v25 = vpop.f32.mrf.mxu0 }
 0x410   :  { %v3433_v44 = vadd.f32 %v7481_v27, %v3365_v40  ;;  %4231 = vmatmul.msk.f32.gmra.mxu3 %vm395_vm2, %v8308_v14  ;;  %v8316_v40 = vld [vmem:[#allocation80_spill] sm:$0xff] }
 0x411   :  { %v2648_v22 = vpop.f32.mrf.mxu2 }
 0x412   :  { %v3497_v8 = vmax.f32 %v3433_v44, 0.0  ;;  %v2776_v36 = vadd.f32 %v2648_v22, %v2488_v28  ;;  %v7486_v52 = vpop.f32.mrf.mxu1  ;;  %4296 = vmatmul.msk.f32.gmra.mxu0 %vm395_vm2, %v6438_v50  ;;  %v2489_v50 = vadd.f32 %v7417_v24, %v8310_v6  ;;  %v4427_v24 = vld [vmem:[%s7791_s0 + $0x2b8] sm:$0xff]  ;;  %v8320_v6 = vld [vmem:[#allocation41_spill] sm:$0xff] }
 0x413   :  { %v2944_v39 = vpop.f32.mrf.mxu3 }
 0x414   :  { %v3592_v51 = vsel %vm3530_vm4, %v3497_v8, 0.0  ;;  %v3072_v2 = vadd.f32 %v2944_v39, %v2776_v36 }
 0x415   :  { %v7491_v30 = vadd.f32 %v3592_v51, %v3591_v19  ;;  %4106 = vmatmul.msk.f32.gmra.mxu1 %vm395_vm2, %v8309_v53  ;;  %v8318_v51 = vld [vmem:[#allocation95_spill] sm:$0xff] }
 0x416   :  { %v3366_v42 = vadd.f32 %v3238_v25, %v3072_v2  ;;  %4167 = vmatmul.msk.f32.gmra.mxu2 %vm395_vm2, %v4426_v13  ;;  %v8317_v25 = vld [vmem:[#allocation36_spill] sm:$0xff]  ;;  %v4429_v2 = vld [vmem:[%s7791_s0 + $0x2d0] sm:$0xff]  ;;  %v8319_v13 = vld [vmem:[#allocation133_spill] sm:$0xff] }
 0x417   :  { %v3241_v16 = vpop.f32.mrf.mxu0 }
 0x418   :  { %4232 = vmatmul.msk.f32.gmra.mxu3 %vm395_vm2, %v8311_v20  ;;  %v3434_v55 = vadd.f32 %v7481_v27, %v3366_v42 }
 0x419   :  { %v2651_v60 = vpop.f32.mrf.mxu2 }
 0x41a   :  { %v2777_v26 = vadd.f32 %v2651_v60, %v2489_v50  ;;  %v7503_v48 = vpop.f32.mrf.mxu1  ;;  %4297 = vmatmul.msk.f32.gmra.mxu0 %vm395_vm2, %v8304_v23  ;;  %v3498_v38 = vmax.f32 %v3434_v55, 0.0 }
 0x41b   :  { %v2947_v45 = vpop.f32.mrf.mxu3 }
 0x41c   :  { %v3073_v33 = vadd.f32 %v2947_v45, %v2777_v26  ;;  %v3600_v43 = vsel %vm3530_vm4, %v3498_v38, 0.0  ;;  %v8321_v45 = vld [vmem:[#allocation139_spill] sm:$0xff] }
 0x41d   :  { %4107 = vmatmul.msk.f32.gmra.mxu1 %vm395_vm2, %v8312_v32 }
 0x41e   :  { %v3367_v37 = vadd.f32 %v3241_v16, %v3073_v33  ;;  %4168 = vmatmul.msk.f32.gmra.mxu2 %vm395_vm2, %v4427_v24  ;;  %v2492_v16 = vadd.f32 %v7465_v59, %v8319_v13 }
 0x41f   :  { %v3244_v54 = vpop.f32.mrf.mxu0 }
 0x420   :  { %v3435_v23 = vadd.f32 %v7481_v27, %v3367_v37  ;;  %4233 = vmatmul.msk.f32.gmra.mxu3 %vm395_vm2, %v8314_v10 }
 0x421   :  { %v2654_v18 = vpop.f32.mrf.mxu2 }
 0x422   :  { %v3499_v15 = vmax.f32 %v3435_v23, 0.0  ;;  %v2778_v56 = vadd.f32 %v2654_v18, %v2490_v62  ;;  %v7519_v57 = vpop.f32.mrf.mxu1  ;;  %4298 = vmatmul.msk.f32.gmra.mxu0 %vm395_vm2, %v6487_v63  ;;  %v2491_v63 = vadd.f32 %v7449_v61, %v8316_v40  ;;  %v4430_v62 = vld [vmem:[%s7791_s0 + $0x2d8] sm:$0xff] }
 0x423   :  { %v2950_v17 = vpop.f32.mrf.mxu3  ;;  %v8324_v18 = vld [vmem:[#allocation47_spill] sm:$0xff] }
 0x424   :  { %v3601_v49 = vsel %vm3530_vm4, %v3499_v15, 0.0  ;;  %v3074_v46 = vadd.f32 %v2950_v17, %v2778_v56 }
 0x425   :  { %v3602_v1 = vadd.f32 %v3601_v49, %v3600_v43  ;;  %4108 = vmatmul.msk.f32.gmra.mxu1 %vm395_vm2, %v8315_v41  ;;  %v8325_v49 = vld [vmem:[#allocation141_spill] sm:$0xff] }
 0x426   :  { %v3368_v29 = vadd.f32 %v3244_v54, %v3074_v46  ;;  %4169 = vmatmul.msk.f32.gmra.mxu2 %vm395_vm2, %v4428_v21  ;;  %v8322_v54 = vld [vmem:[#allocation140_spill] sm:$0xff] }
 0x427   :  { %v3247_v19 = vpop.f32.mrf.mxu0 }
 0x428   :  { %v3436_v9 = vadd.f32 %v7481_v27, %v3368_v29  ;;  %4234 = vmatmul.msk.f32.gmra.mxu3 %vm395_vm2, %v8317_v25 }
 0x429   :  { %v2657_v31 = vpop.f32.mrf.mxu2 }
 0x42a   :  { %v3500_v28 = vmax.f32 %v3436_v9, 0.0  ;;  %v2779_v44 = vadd.f32 %v2657_v31, %v2491_v63  ;;  %v7536_v14 = vpop.f32.mrf.mxu1  ;;  %4299 = vmatmul.msk.f32.gmra.mxu0 %vm395_vm2, %v8309_v53  ;;  %v4431_v63 = vld [vmem:[%s7791_s0 + $0x2e8] sm:$0xff] }
 0x42b   :  { %v2953_v22 = vpop.f32.mrf.mxu3 }
 0x42c   :  { %v3603_v8 = vsel %vm3530_vm4, %v3500_v28, 0.0  ;;  %v3075_v36 = vadd.f32 %v2953_v22, %v2779_v44  ;;  %v8328_v28 = vld [vmem:[#allocation52_spill] sm:$0xff] }
 0x42d   :  { %v3604_v39 = vadd.f32 %v3603_v8, %v3602_v1  ;;  %4109 = vmatmul.msk.f32.gmra.mxu1 %vm395_vm2, %v8318_v51 }
 0x42e   :  { %v3369_v61 = vadd.f32 %v3247_v19, %v3075_v36  ;;  %4170 = vmatmul.msk.f32.gmra.mxu2 %vm395_vm2, %v4429_v2  ;;  %v8326_v19 = vld [vmem:[#allocation100_spill] sm:$0xff] }
 0x42f   :  { %v3250_v42 = vpop.f32.mrf.mxu0 }
 0x430   :  { %v3437_v53 = vadd.f32 %v7481_v27, %v3369_v61  ;;  %4235 = vmatmul.msk.f32.gmra.mxu3 %vm395_vm2, %v8320_v6  ;;  %v4432_v6 = vld [vmem:[%s7791_s0 + $0x2f0] sm:$0xff] }
 0x431   :  { %v2660_v50 = vpop.f32.mrf.mxu2 }
 0x432   :  { %v3501_v20 = vmax.f32 %v3437_v53, 0.0  ;;  %v2780_v60 = vadd.f32 %v2660_v50, %v2492_v16  ;;  %v2387_v26 = vpop.f32.mrf.mxu1  ;;  %4300 = vmatmul.msk.f32.gmra.mxu0 %vm395_vm2, %v8312_v32  ;;  %v8323_v32 = vld [vmem:[#allocation85_spill] sm:$0xff]  ;;  %v8330_v16 = vld [vmem:[#allocation103_spill] sm:$0xff] }
 0x433   :  { %v7555_v55 = vadd.f32 %v2387_v26, %v8321_v45  ;;  %v2956_v33 = vpop.f32.mrf.mxu3  ;;  %v2493_v23 = vadd.f32 %v7486_v52, %v8323_v32  ;;  %v8332_v26 = vld [vmem:[#allocation56_spill] sm:$0xff] }
 0x434   :  { %v3605_v37 = vsel %vm3530_vm4, %v3501_v20, 0.0  ;;  %v3076_v24 = vadd.f32 %v2956_v33, %v2780_v60 }
 0x435   :  { %v3606_v59 = vadd.f32 %v3605_v37, %v3604_v39  ;;  %4110 = vmatmul.msk.f32.gmra.mxu1 %vm395_vm2, %v8322_v54  ;;  %v8329_v39 = vld [vmem:[#allocation75_spill] sm:$0xff] }
 0x436   :  { %v3370_v0 = vadd.f32 %v3250_v42, %v3076_v24  ;;  %4171 = vmatmul.msk.f32.gmra.mxu2 %vm395_vm2, %v4430_v62 }
 0x437   :  { %v3253_v38 = vpop.f32.mrf.mxu0 }
 0x438   :  { %v3438_v10 = vadd.f32 %v7481_v27, %v3370_v0  ;;  %4236 = vmatmul.msk.f32.gmra.mxu3 %vm395_vm2, %v8324_v18  ;;  %v4433_v18 = vld [vmem:[%s7791_s0 + $0x300] sm:$0xff] }
 0x439   :  { %v2663_v15 = vpop.f32.mrf.mxu2 }
 0x43a   :  { %v3502_v56 = vmax.f32 %v3438_v10, 0.0  ;;  %v2781_v17 = vadd.f32 %v2663_v15, %v2493_v23  ;;  %v2390_v43 = vpop.f32.mrf.mxu1  ;;  %4301 = vmatmul.msk.f32.gmra.mxu0 %vm395_vm2, %v8315_v41  ;;  %v8327_v41 = vld [vmem:[#allocation135_spill] sm:$0xff]  ;;  %v8334_v23 = vld [vmem:[#allocation106_spill] sm:$0xff] }
 0x43b   :  { %v7572_v46 = vadd.f32 %v2390_v43, %v8325_v49  ;;  %v2959_v1 = vpop.f32.mrf.mxu3  ;;  %v2494_v25 = vadd.f32 %v7503_v48, %v8327_v41  ;;  %v8336_v43 = vld [vmem:[#allocation59_spill] sm:$0xff] }
 0x43c   :  { %v3607_v29 = vsel %vm3530_vm4, %v3502_v56, 0.0  ;;  %v3077_v21 = vadd.f32 %v2959_v1, %v2781_v17 }
 0x43d   :  { %v3608_v52 = vadd.f32 %v3607_v29, %v3606_v59  ;;  %4111 = vmatmul.msk.f32.gmra.mxu1 %vm395_vm2, %v8326_v19  ;;  %v8333_v59 = vld [vmem:[#allocation77_spill] sm:$0xff] }
 0x43e   :  { %v3371_v40 = vadd.f32 %v3253_v38, %v3077_v21  ;;  %4172 = vmatmul.msk.f32.gmra.mxu2 %vm395_vm2, %v4431_v63 }
 0x43f   :  { %v3256_v9 = vpop.f32.mrf.mxu0 }
 0x440   :  { %v3439_v31 = vadd.f32 %v7481_v27, %v3371_v40  ;;  %4237 = vmatmul.msk.f32.gmra.mxu3 %vm395_vm2, %v8328_v28 }
 0x441   :  { %v2666_v44 = vpop.f32.mrf.mxu2 }
 0x442   :  { %v3503_v22 = vmax.f32 %v3439_v31, 0.0  ;;  %v2782_v8 = vadd.f32 %v2666_v44, %v2494_v25  ;;  %v2393_v36 = vpop.f32.mrf.mxu1  ;;  %4302 = vmatmul.msk.f32.gmra.mxu0 %vm395_vm2, %v8318_v51  ;;  %v8331_v51 = vld [vmem:[#allocation136_spill] sm:$0xff]  ;;  %v4434_v25 = vld [vmem:[%s7791_s0 + $0x330] sm:$0xff] }
 0x443   :  { %v7589_v61 = vadd.f32 %v2393_v36, %v8329_v39  ;;  %v2962_v2 = vpop.f32.mrf.mxu3  ;;  %v2495_v20 = vadd.f32 %v7519_v57, %v8331_v51  ;;  %v2231_v31 = vrot.slane %v4434_v25, 2  ;;  %v8338_v39 = vld [vmem:[#allocation62_spill] sm:$0xff] }
 0x444   :  { %v3609_v42 = vsel %vm3530_vm4, %v3503_v22, 0.0  ;;  %v3078_v13 = vadd.f32 %v2962_v2, %v2782_v8  ;;  %v4436_v22 = vld [vmem:[%s7791_s0 + $0x308] sm:$0xff] }
 0x445   :  { %v3610_v48 = vadd.f32 %v3609_v42, %v3608_v52  ;;  %4112 = vmatmul.msk.f32.gmra.mxu1 %vm395_vm2, %v8330_v16  ;;  %v8337_v52 = vld [vmem:[#allocation79_spill] sm:$0xff] }
 0x446   :  { %v3372_v53 = vadd.f32 %v3256_v9, %v3078_v13  ;;  %4173 = vmatmul.msk.f32.gmra.mxu2 %vm395_vm2, %v4432_v6 }
 0x447   :  { %v3259_v50 = vpop.f32.mrf.mxu0 }
 0x448   :  { %v3440_v60 = vadd.f32 %v7481_v27, %v3372_v53  ;;  %4238 = vmatmul.msk.f32.gmra.mxu3 %vm395_vm2, %v8332_v26 }
 0x449   :  { %v2669_v45 = vpop.f32.mrf.mxu2 }
 0x44a   :  { %v3504_v33 = vmax.f32 %v3440_v60, 0.0  ;;  %v2783_v37 = vadd.f32 %v2669_v45, %v2495_v20  ;;  %v2396_v24 = vpop.f32.mrf.mxu1  ;;  %4303 = vmatmul.msk.f32.gmra.mxu0 %vm395_vm2, %v8322_v54  ;;  %v8335_v54 = vld [vmem:[#allocation138_spill] sm:$0xff] }
 0x44b   :  { %v7606_v0 = vadd.f32 %v2396_v24, %v8333_v59  ;;  %v2965_v62 = vpop.f32.mrf.mxu3  ;;  %v2496_v56 = vadd.f32 %v7536_v14, %v8335_v54 }
 0x44c   :  { %v3611_v38 = vsel %vm3530_vm4, %v3504_v33, 0.0  ;;  %v3079_v32 = vadd.f32 %v2965_v62, %v2783_v37  ;;  %v8339_v37 = vld [vmem:[#allocation65_spill] sm:$0xff] }
 0x44d   :  { %v3612_v57 = vadd.f32 %v3611_v38, %v3610_v48  ;;  %4113 = vmatmul.msk.f32.gmra.mxu1 %vm395_vm2, %v8334_v23 }
 0x44e   :  { %v3373_v10 = vadd.f32 %v3259_v50, %v3079_v32  ;;  %4174 = vmatmul.msk.f32.gmra.mxu2 %vm395_vm2, %v4433_v18 }
 0x44f   :  { %v3262_v15 = vpop.f32.mrf.mxu0 }
 0x450   :  { %v3441_v17 = vadd.f32 %v7481_v27, %v3373_v10  ;;  %4239 = vmatmul.msk.f32.gmra.mxu3 %vm395_vm2, %v8336_v43  ;;  %v8340_v43 = vld [vmem:[#allocation68_spill] sm:$0xff] }
 0x451   :  { %v2672_v49 = vpop.f32.mrf.mxu2 }
 0x452   :  { %v3505_v1 = vmax.f32 %v3441_v17, 0.0  ;;  %v2784_v29 = vadd.f32 %v2672_v49, %v2496_v56  ;;  %v2399_v21 = vpop.f32.mrf.mxu1  ;;  %4304 = vmatmul.msk.f32.gmra.mxu0 %vm395_vm2, %v8326_v19  ;;  %v7634_v19 = vld [vmem:[%s7791_s0 + $0x338] sm:$0xff] }
 0x453   :  { %v7623_v40 = vadd.f32 %v2399_v21, %v8337_v52  ;;  %v2968_v63 = vpop.f32.mrf.mxu3  ;;  %v2232_v28 = vrot.slane %v7634_v19, 2  ;;  %v8341_v21 = vld [vmem:[#allocation82_spill] sm:$0xff] }
 0x454   :  { %v3613_v9 = vsel %vm3530_vm4, %v3505_v1, 0.0  ;;  %v3080_v41 = vadd.f32 %v2968_v63, %v2784_v29 }
 0x455   :  { %v3614_v14 = vadd.f32 %v3613_v9, %v3612_v57  ;;  %4114 = vmatmul.msk.f32.gmra.mxu1 %vm395_vm2, %v6704_v34  ;;  %v2233_v53 = vsel %vm1077_vm3, %v2231_v31, %v2232_v28 }
 0x456   :  { %v3374_v44 = vadd.f32 %v3262_v15, %v3080_v41  ;;  %4175 = vmatmul.msk.f32.gmra.mxu2 %vm395_vm2, %v4436_v22  ;;  %v8342_v22 = vld [vmem:[#allocation142_spill] sm:$0xff] }
 0x457   :  { %v3265_v8 = vpop.f32.mrf.mxu0 }
 0x458   :  { %v3442_v36 = vadd.f32 %v7481_v27, %v3374_v44  ;;  %4240 = vmatmul.msk.f32.gmra.mxu3 %vm395_vm2, %v8338_v39  ;;  %v8343_v39 = vld [vmem:[#allocation71_spill] sm:$0xff] }
 0x459   :  { %v2675_v2 = vpop.f32.mrf.mxu2 }
 0x45a   :  { %v3506_v42 = vmax.f32 %v3442_v36, 0.0  ;;  %v2785_v13 = vadd.f32 %v2675_v2, %v7555_v55  ;;  %v2402_v48 = vpop.f32.mrf.mxu1  ;;  %4305 = vmatmul.msk.f32.gmra.mxu0 %vm395_vm2, %v8330_v16  ;;  %v4437_v55 = vld [vmem:[%s7791_s0 + $0x318] sm:$0xff]  ;;  %v4438_v16 = vld [vmem:[%s7791_s0 + $0x340] sm:$0x3] }
 0x45b   :  { %v7649_v6 = vadd.f32 %v2402_v48, %v6708_v58  ;;  %v2971_v50 = vpop.f32.mrf.mxu3  ;;  %v2234_v58 = vrot.slane %v4438_v16, 2 }
 0x45c   :  { %v3615_v51 = vsel %vm3530_vm4, %v3506_v42, 0.0  ;;  %v3081_v20 = vadd.f32 %v2971_v50, %v2785_v13 }
 0x45d   :  { %v3616_v60 = vadd.f32 %v3615_v51, %v3614_v14  ;;  %4115 = vmatmul.msk.f32.gmra.mxu1 %vm395_vm2, %v2233_v53  ;;  %v2235_v32 = vsel %vm1077_vm3, %v2232_v28, %v2234_v58  ;;  %v126_v51 = vld [vmem:[%s7791_s0 + $0x348] sm:$0xff] }
 0x45e   :  { %v3375_v26 = vadd.f32 %v3265_v8, %v3081_v20  ;;  %4176 = vmatmul.msk.f32.gmra.mxu2 %vm395_vm2, %v4437_v55  ;;  %v2815_v55 = vrot.slane %v126_v51, 1 }
 0x45f   :  { %v3268_v45 = vpop.f32.mrf.mxu0 }
 0x460   :  { %v3443_v33 = vadd.f32 %v7481_v27, %v3375_v26  ;;  %4241 = vmatmul.msk.f32.gmra.mxu3 %vm395_vm2, %v8339_v37 }
 0x461   :  { %v2678_v24 = vpop.f32.mrf.mxu2 }
 0x462   :  { %v3507_v59 = vmax.f32 %v3443_v33, 0.0  ;;  %v2786_v62 = vadd.f32 %v2678_v24, %v7572_v46  ;;  %v2405_v38 = vpop.f32.mrf.mxu1  ;;  %4306 = vmatmul.msk.f32.gmra.mxu0 %vm395_vm2, %v8334_v23  ;;  %v4439_v46 = vld [vmem:[%s7791_s0 + $0x320] sm:$0xff] }
 0x463   :  { %v7668_v57 = vadd.f32 %v2405_v38, %v6722_v4  ;;  %v2974_v10 = vpop.f32.mrf.mxu3  ;;  %v8345_v33 = vld [vmem:[#allocation84_spill] sm:$0xff] }
 0x464   :  { %v3617_v18 = vsel %vm3530_vm4, %v3507_v59, 0.0  ;;  %v3082_v15 = vadd.f32 %v2974_v10, %v2786_v62  ;;  %v3109_v59 = vrot.slane %v126_v51, 2 }
 0x465   :  { %v3618_v54 = vadd.f32 %v3617_v18, %v3616_v60  ;;  %4116 = vmatmul.msk.f32.gmra.mxu1 %vm395_vm2, %v2235_v32  ;;  %v8344_v60 = vld [vmem:[#allocation109_spill] sm:$0xff] }
 0x466   :  { %v3376_v56 = vadd.f32 %v3268_v45, %v3082_v15  ;;  %4177 = vmatmul.msk.f32.gmra.mxu2 %vm395_vm2, %v4439_v46 }
 0x467   :  { %v3271_v17 = vpop.f32.mrf.mxu0 }
 0x468   :  { %v3444_v23 = vadd.f32 %v7481_v27, %v3376_v56  ;;  %4242 = vmatmul.msk.f32.gmra.mxu3 %vm395_vm2, %v8340_v43 }
 0x469   :  { %v2681_v4 = vpop.f32.mrf.mxu2 }
 0x46a   :  { %v3508_v49 = vmax.f32 %v3444_v23, 0.0  ;;  %v2787_v1 = vadd.f32 %v2681_v4, %v7589_v61  ;;  %v2408_v29 = vpop.f32.mrf.mxu1  ;;  %4307 = vmatmul.msk.f32.gmra.mxu0 %vm395_vm2, %v6704_v34 }
 0x46b   :  { %v7683_v52 = vadd.f32 %v2408_v29, %v8341_v21  ;;  %v2977_v63 = vpop.f32.mrf.mxu3 }
 0x46c   :  { %v3619_v9 = vsel %vm3530_vm4, %v3508_v49, 0.0  ;;  %v3083_v41 = vadd.f32 %v2977_v63, %v2787_v1  ;;  %v8346_v1 = vld [vmem:[#allocation73_spill] sm:$0xff] }
 0x46d   :  { %v3620_v14 = vadd.f32 %v3619_v9, %v3618_v54 }
 0x46e   :  { %v3377_v31 = vadd.f32 %v3271_v17, %v3083_v41  ;;  %4178 = vmatmul.msk.f32.gmra.mxu2 %vm395_vm2, %v4434_v25 }
 0x46f   :  { %v3274_v28 = vpop.f32.mrf.mxu0 }
 0x470   :  { %v3445_v44 = vadd.f32 %v7481_v27, %v3377_v31  ;;  %4243 = vmatmul.msk.f32.gmra.mxu3 %vm395_vm2, %v8342_v22 }
 0x471   :  { %v2684_v61 = vpop.f32.mrf.mxu2 }
 0x472   :  { %v3509_v8 = vmax.f32 %v3445_v44, 0.0  ;;  %v2788_v34 = vadd.f32 %v2684_v61, %v7606_v0  ;;  %v2411_v36 = vpop.f32.mrf.mxu1  ;;  %4308 = vmatmul.msk.f32.gmra.mxu0 %vm395_vm2, %v2233_v53  ;;  %v127_v0 = vld [vmem:[%s7791_s0 + $0x350] sm:$0xff] }
 0x473   :  { %v7693_v2 = vadd.f32 %v2411_v36, %v8343_v39  ;;  %v2980_v42 = vpop.f32.mrf.mxu3  ;;  %v2816_v16 = vrot.slane %v127_v0, 1  ;;  %v3110_v62 = vrot.slane %v127_v0, 2  ;;  %v8347_v39 = vld [vmem:[#allocation16_spill] sm:$0xff] }
 0x474   :  { %v3621_v13 = vsel %vm3530_vm4, %v3509_v8, 0.0  ;;  %v3084_v25 = vadd.f32 %v2980_v42, %v2788_v34 }
 0x475   :  { %v3622_v48 = vadd.f32 %v3621_v13, %v3620_v14  ;;  %v2817_v15 = vsel %vm234_vm1, %v2815_v55, %v2816_v16  ;;  %v3111_v56 = vsel %vm1077_vm3, %v3109_v59, %v3110_v62 }
 0x476   :  { %v3378_v50 = vadd.f32 %v3274_v28, %v3084_v25  ;;  %4179 = vmatmul.msk.f32.gmra.mxu2 %vm395_vm2, %v7634_v19 }
 0x477   :  { %v3277_v53 = vpop.f32.mrf.mxu0 }
 0x478   :  { %v3446_v20 = vadd.f32 %v7481_v27, %v3378_v50  ;;  %4244 = vmatmul.msk.f32.gmra.mxu3 %vm395_vm2, %v8344_v60 }
 0x479   :  { %v2687_v26 = vpop.f32.mrf.mxu2 }
 0x47a   :  { %v3510_v58 = vmax.f32 %v3446_v20, 0.0  ;;  %v2789_v19 = vadd.f32 %v2687_v26, %v7623_v40  ;;  %v2414_v45 = vpop.f32.mrf.mxu1  ;;  %4309 = vmatmul.msk.f32.gmra.mxu0 %vm395_vm2, %v2235_v32  ;;  %v128_v40 = vld [vmem:[%s7791_s0 + $0x358] sm:$0x3] }
 0x47b   :  { %v7710_v37 = vadd.f32 %v2414_v45, %v8345_v33  ;;  %v2983_v24 = vpop.f32.mrf.mxu3  ;;  %v2818_v23 = vrot.slane %v128_v40, 1  ;;  %v3112_v63 = vrot.slane %v128_v40, 2 }
 0x47c   :  { %v3623_v38 = vsel %vm3530_vm4, %v3510_v58, 0.0  ;;  %v3085_v10 = vadd.f32 %v2983_v24, %v2789_v19 }
 0x47d   :  { %v3624_v18 = vadd.f32 %v3623_v38, %v3622_v48  ;;  %v2819_v31 = vsel %vm234_vm1, %v2816_v16, %v2818_v23  ;;  %v3113_v22 = vsel %vm1077_vm3, %v3110_v62, %v3112_v63 }
 0x47e   :  { %v3379_v54 = vadd.f32 %v3277_v53, %v3085_v10  ;;  %4180 = vmatmul.msk.f32.gmra.mxu2 %vm395_vm2, %v126_v51 }
 0x47f   :  { %v3280_v32 = vpop.f32.mrf.mxu0 }
 0x480   :  { %v3447_v46 = vadd.f32 %v7481_v27, %v3379_v54  ;;  %4245 = vmatmul.msk.f32.gmra.mxu3 %vm395_vm2, %v2817_v15 }
 0x481   :  { %v2690_v17 = vpop.f32.mrf.mxu2 }
 0x482   :  { %v3511_v43 = vmax.f32 %v3447_v46, 0.0  ;;  %v2790_v4 = vadd.f32 %v2690_v17, %v7649_v6  ;;  %v2417_v49 = vpop.f32.mrf.mxu1  ;;  %4310 = vmatmul.msk.f32.gmra.mxu0 %vm395_vm2, %v3111_v56 }
 0x483   :  { %v2507_v29 = vadd.f32 %v2417_v49, %v8346_v1  ;;  %v2986_v21 = vpop.f32.mrf.mxu3 }
 0x484   :  { %v3625_v9 = vsel %vm3530_vm4, %v3511_v43, 0.0  ;;  %v3086_v41 = vadd.f32 %v2986_v21, %v2790_v4 }
 0x485   :  { %v3626_v14 = vadd.f32 %v3625_v9, %v3624_v18 }
 0x486   :  { %v3380_v28 = vadd.f32 %v3280_v32, %v3086_v41  ;;  %4181 = vmatmul.msk.f32.gmra.mxu2 %vm395_vm2, %v127_v0 }
 0x487   :  { %v3283_v44 = vpop.f32.mrf.mxu0 }
 0x488   :  { %v3448_v6 = vadd.f32 %v7481_v27, %v3380_v28  ;;  %4246 = vmatmul.msk.f32.gmra.mxu3 %vm395_vm2, %v2819_v31 }
 0x489   :  { %v2693_v61 = vpop.f32.mrf.mxu2 }
 0x48a   :  { %v3512_v8 = vmax.f32 %v3448_v6, 0.0  ;;  %v2791_v34 = vadd.f32 %v2693_v61, %v7668_v57  ;;  %v2420_v36 = vpop.f32.mrf.mxu1  ;;  %4311 = vmatmul.msk.f32.gmra.mxu0 %vm395_vm2, %v3113_v22 }
 0x48b   :  { %v2508_v42 = vadd.f32 %v2420_v36, %v8347_v39  ;;  %v2989_v13 = vpop.f32.mrf.mxu3 }
 0x48c   :  { %v3627_v25 = vsel %vm3530_vm4, %v3512_v8, 0.0  ;;  %v3087_v48 = vadd.f32 %v2989_v13, %v2791_v34 }
 0x48d   :  { %v3628_v50 = vadd.f32 %v3627_v25, %v3626_v14 }
 0x48e   :  { %v3381_v51 = vadd.f32 %v3283_v44, %v3087_v48 }
 0x48f   :  { %v3286_v0 = vpop.f32.mrf.mxu0 }
 0x490   :  { %v3449_v53 = vadd.f32 %v7481_v27, %v3381_v51 }
 0x491   :  { %v2696_v20 = vpop.f32.mrf.mxu2 }
 0x492   :  { %v3513_v60 = vmax.f32 %v3449_v53, 0.0  ;;  %v2792_v26 = vadd.f32 %v2696_v20, %v7683_v52  ;;  %v2423_v32 = vpop.f32.mrf.mxu1 }
 0x493   :  { %v2992_v55 = vpop.f32.mrf.mxu3 }
 0x494   :  { %v3629_v57 = vsel %vm3530_vm4, %v3513_v60, 0.0  ;;  %v3088_v16 = vadd.f32 %v2992_v55, %v2792_v26 }
 0x495   :  { %v3630_v58 = vadd.f32 %v3629_v57, %v3628_v50 }
 0x496   :  { %v3382_v19 = vadd.f32 %v3286_v0, %v3088_v16  ;;  %v8348_v0 = vld [vmem:[#allocation87_spill] sm:$0xff] }
 0x497   :  { %v3289_v45 = vpop.f32.mrf.mxu0  ;;  %v2509_v53 = vadd.f32 %v2423_v32, %v8348_v0 }
 0x498   :  { %v3450_v33 = vadd.f32 %v7481_v27, %v3382_v19 }
 0x499   :  { %v2699_v24 = vpop.f32.mrf.mxu2 }
 0x49a   :  { %v3514_v59 = vmax.f32 %v3450_v33, 0.0  ;;  %v2793_v62 = vadd.f32 %v2699_v24, %v7693_v2  ;;  %v2426_v14 = vpop.f32.mrf.mxu1  ;;  %v8349_v24 = vld [vmem:[#allocation74_spill] sm:$0xff] }
 0x49b   :  { %v2995_v38 = vpop.f32.mrf.mxu3 }
 0x49c   :  { %v3631_v10 = vsel %vm3530_vm4, %v3514_v59, 0.0  ;;  %v3089_v18 = vadd.f32 %v2995_v38, %v2793_v62  ;;  %v2510_v59 = vadd.f32 %v2426_v14, %v8349_v24 }
 0x49d   :  { %v3632_v15 = vadd.f32 %v3631_v10, %v3630_v58 }
 0x49e   :  { %v3383_v54 = vadd.f32 %v3289_v45, %v3089_v18 }
 0x49f   :  { %v3292_v52 = vpop.f32.mrf.mxu0 }
 0x4a0   :  { %v3451_v40 = vadd.f32 %v7481_v27, %v3383_v54 }
 0x4a1   :  { %v2702_v56 = vpop.f32.mrf.mxu2 }
 0x4a2   :  { %v3515_v46 = vmax.f32 %v3451_v40, 0.0  ;;  %v2794_v17 = vadd.f32 %v2702_v56, %v7710_v37  ;;  %v2429_v48 = vpop.f32.mrf.mxu1 }
 0x4a3   :  { %v2998_v23 = vpop.f32.mrf.mxu3 }
 0x4a4   :  { %v3633_v43 = vsel %vm3530_vm4, %v3515_v46, 0.0  ;;  %v3090_v4 = vadd.f32 %v2998_v23, %v2794_v17  ;;  %v8350_v46 = vld [vmem:[#allocation21_spill] sm:$0xff] }
 0x4a5   :  { %v3634_v49 = vadd.f32 %v3633_v43, %v3632_v15  ;;  %v2511_v17 = vadd.f32 %v2429_v48, %v8350_v46 }
 0x4a6   :  { %v3384_v2 = vadd.f32 %v3292_v52, %v3090_v4 }
 0x4a7   :  { %v3295_v1 = vpop.f32.mrf.mxu0 }
 0x4a8   :  { %v3452_v21 = vadd.f32 %v7481_v27, %v3384_v2 }
 0x4a9   :  { %v2705_v63 = vpop.f32.mrf.mxu2 }
 0x4aa   :  { %v3516_v9 = vmax.f32 %v3452_v21, 0.0  ;;  %v2795_v41 = vadd.f32 %v2705_v63, %v2507_v29  ;;  %v2432_v45 = vpop.f32.mrf.mxu1 }
 0x4ab   :  { %v3001_v31 = vpop.f32.mrf.mxu3 }
 0x4ac   :  { %v3635_v28 = vsel %vm3530_vm4, %v3516_v9, 0.0  ;;  %v3091_v44 = vadd.f32 %v3001_v31, %v2795_v41  ;;  %v8351_v31 = vld [vmem:[#allocation89_spill] sm:$0xff] }
 0x4ad   :  { %v3636_v22 = vadd.f32 %v3635_v28, %v3634_v49  ;;  %v2512_v28 = vadd.f32 %v2432_v45, %v8351_v31 }
 0x4ae   :  { %v3385_v6 = vadd.f32 %v3295_v1, %v3091_v44 }
 0x4af   :  { %v3298_v37 = vpop.f32.mrf.mxu0 }
 0x4b0   :  { %v3453_v61 = vadd.f32 %v7481_v27, %v3385_v6 }
 0x4b1   :  { %v2708_v8 = vpop.f32.mrf.mxu2 }
 0x4b2   :  { %v3517_v34 = vmax.f32 %v3453_v61, 0.0  ;;  %v2796_v36 = vadd.f32 %v2708_v8, %v2508_v42  ;;  %v2435_v43 = vpop.f32.mrf.mxu1 }
 0x4b3   :  { %v3004_v39 = vpop.f32.mrf.mxu3  ;;  %v2513_v48 = vadd.f32 %v2435_v43, %v6856_v11 }
 0x4b4   :  { %v3637_v13 = vsel %vm3530_vm4, %v3517_v34, 0.0  ;;  %v3092_v25 = vadd.f32 %v3004_v39, %v2796_v36 }
 0x4b5   :  { %v3638_v50 = vadd.f32 %v3637_v13, %v3636_v22 }
 0x4b6   :  { %v3386_v29 = vadd.f32 %v3298_v37, %v3092_v25 }
 0x4b7   :  { %v3301_v51 = vpop.f32.mrf.mxu0 }
 0x4b8   :  { %v3454_v20 = vadd.f32 %v7481_v27, %v3386_v29 }
 0x4b9   :  { %v2711_v60 = vpop.f32.mrf.mxu2 }
 0x4ba   :  { %v3518_v26 = vmax.f32 %v3454_v20, 0.0  ;;  %v2797_v55 = vadd.f32 %v2711_v60, %v2509_v53  ;;  %v2438_v61 = vpop.f32.mrf.mxu1 }
 0x4bb   :  { %v3007_v57 = vpop.f32.mrf.mxu3 }
 0x4bc   :  { %v3639_v16 = vsel %vm3530_vm4, %v3518_v26, 0.0  ;;  %v3093_v58 = vadd.f32 %v3007_v57, %v2797_v55 }
 0x4bd   :  { %v3640_v42 = vadd.f32 %v3639_v16, %v3638_v50 }
 0x4be   :  { %v3387_v19 = vadd.f32 %v3301_v51, %v3093_v58  ;;  %v2514_v58 = vadd.f32 %v2438_v61, %v6869_v3 }
 0x4bf   :  { %v3304_v33 = vpop.f32.mrf.mxu0 }
 0x4c0   :  { %v3455_v62 = vadd.f32 %v7481_v27, %v3387_v19 }
 0x4c1   :  { %v2714_v38 = vpop.f32.mrf.mxu2 }
 0x4c2   :  { %v3519_v10 = vmax.f32 %v3455_v62, 0.0  ;;  %v2798_v18 = vadd.f32 %v2714_v38, %v2510_v59  ;;  %v2441_v26 = vpop.f32.mrf.mxu1 }
 0x4c3   :  { %v3010_v15 = vpop.f32.mrf.mxu3 }
 0x4c4   :  { %v3641_v54 = vsel %vm3530_vm4, %v3519_v10, 0.0  ;;  %v3094_v52 = vadd.f32 %v3010_v15, %v2798_v18  ;;  %v2515_v15 = vadd.f32 %v2441_v26, %v6884_v5 }
 0x4c5   :  { %v3642_v40 = vadd.f32 %v3641_v54, %v3640_v42 }
 0x4c6   :  { %v3388_v32 = vadd.f32 %v3304_v33, %v3094_v52 }
 0x4c7   :  { %v3307_v56 = vpop.f32.mrf.mxu0 }
 0x4c8   :  { %v3456_v23 = vadd.f32 %v7481_v27, %v3388_v32 }
 0x4c9   :  { %v2717_v4 = vpop.f32.mrf.mxu2 }
 0x4ca   :  { %v3520_v49 = vmax.f32 %v3456_v23, 0.0  ;;  %v2799_v2 = vadd.f32 %v2717_v4, %v2511_v17  ;;  %v2444_v10 = vpop.f32.mrf.mxu1 }
 0x4cb   :  { %v3013_v1 = vpop.f32.mrf.mxu3  ;;  %v2516_v4 = vadd.f32 %v2444_v10, %v6899_v35 }
 0x4cc   :  { %v3643_v21 = vsel %vm3530_vm4, %v3520_v49, 0.0  ;;  %v3095_v63 = vadd.f32 %v3013_v1, %v2799_v2 }
 0x4cd   :  { %v3644_v9 = vadd.f32 %v3643_v21, %v3642_v40 }
 0x4ce   :  { %v3389_v41 = vadd.f32 %v3307_v56, %v3095_v63 }
 0x4cf   :  { %v3310_v14 = vpop.f32.mrf.mxu0 }
 0x4d0   :  { %v3457_v44 = vadd.f32 %v7481_v27, %v3389_v41 }
 0x4d1   :  { %v2720_v22 = vpop.f32.mrf.mxu2 }
 0x4d2   :  { %v3521_v6 = vmax.f32 %v3457_v44, 0.0  ;;  %v2800_v37 = vadd.f32 %v2720_v22, %v2512_v28  ;;  %v2447_v2 = vpop.f32.mrf.mxu1 }
 0x4d3   :  { %v3016_v8 = vpop.f32.mrf.mxu3  ;;  %v2517_v44 = vadd.f32 %v2447_v2, %v6914_v7 }
 0x4d4   :  { %v3645_v34 = vsel %vm3530_vm4, %v3521_v6, 0.0  ;;  %v3096_v36 = vadd.f32 %v3016_v8, %v2800_v37 }
 0x4d5   :  { %v3646_v39 = vadd.f32 %v3645_v34, %v3644_v9 }
 0x4d6   :  { %v3390_v13 = vadd.f32 %v3310_v14, %v3096_v36 }
 0x4d7   :  { %v3313_v25 = vpop.f32.mrf.mxu0 }
 0x4d8   :  { %v3458_v50 = vadd.f32 %v7481_v27, %v3390_v13 }
 0x4d9   :  { %v2723_v29 = vpop.f32.mrf.mxu2 }
 0x4da   :  { %v3522_v51 = vmax.f32 %v3458_v50, 0.0  ;;  %v2801_v0 = vadd.f32 %v2723_v29, %v2513_v48  ;;  %v2450_v61 = vpop.f32.mrf.mxu1 }
 0x4db   :  { %v3019_v53 = vpop.f32.mrf.mxu3 }
 0x4dc   :  { %v3647_v20 = vsel %vm3530_vm4, %v3522_v51, 0.0  ;;  %v3097_v60 = vadd.f32 %v3019_v53, %v2801_v0 }
 0x4dd   :  { %v3648_v55 = vadd.f32 %v3647_v20, %v3646_v39 }
 0x4de   :  { %v3391_v57 = vadd.f32 %v3313_v25, %v3097_v60  ;;  %v2518_v25 = vadd.f32 %v2450_v61, %v6929_v12 }
 0x4df   :  { %v3316_v16 = vpop.f32.mrf.mxu0 }
 0x4e0   :  { %v3459_v42 = vadd.f32 %v7481_v27, %v3391_v57  ;;  %v4466_v57 = vmov 256.0  }
 0x4e1   :  { %v2726_v19 = vpop.f32.mrf.mxu2  ;;  %4320 = vrcp.f32 %v4466_v57 }
 0x4e2   :  { %v3523_v45 = vmax.f32 %v3459_v42, 0.0  ;;  %v2802_v11 = vadd.f32 %v2726_v19, %v2514_v58  ;;  %v2453_v60 = vpop.f32.mrf.mxu1 }
 0x4e3   :  { %v3022_v33 = vpop.f32.mrf.mxu3 }
 0x4e4   :  { %v3649_v24 = vsel %vm3530_vm4, %v3523_v45, 0.0  ;;  %v3098_v59 = vadd.f32 %v3022_v33, %v2802_v11  ;;  %v3594_v45 = vrot.slane %v7491_v30, 4 }
 0x4e5   :  { %v3650_v62 = vadd.f32 %v3649_v24, %v3648_v55 }
 0x4e6   :  { %v3392_v38 = vadd.f32 %v3316_v16, %v3098_v59  ;;  %v2519_v16 = vadd.f32 %v2453_v60, %v6947_v47 }
 0x4e7   :  { %v3319_v18 = vpop.f32.mrf.mxu0 }
 0x4e8   :  { %v3460_v54 = vadd.f32 %v7481_v27, %v3392_v38 }
 0x4e9   :  { %v2729_v52 = vpop.f32.mrf.mxu2 }
 0x4ea   :  { %v3524_v40 = vmax.f32 %v3460_v54, 0.0  ;;  %v2803_v3 = vadd.f32 %v2729_v52, %v2515_v15 }
 0x4eb   :  { %v3025_v32 = vpop.f32.mrf.mxu3 }
 0x4ec   :  { %v3651_v56 = vsel %vm3530_vm4, %v3524_v40, 0.0  ;;  %v3099_v46 = vadd.f32 %v3025_v32, %v2803_v3 }
 0x4ed   :  { %v3652_v17 = vadd.f32 %v3651_v56, %v3650_v62  ;;  %v4321_v62 = vpop.eup %4320 }
 0x4ee   :  { %v3393_v23 = vadd.f32 %v3319_v18, %v3099_v46  ;;  %v3595_v18 = vadd.f32 %v3594_v45, %v7491_v30  ;;  %v3670_v47 = vmul.f32 256.0, %v4321_v62  ;;  %vm3674_vm5 = vweird.f32 %v4321_v62 }
 0x4ef   :  { %v3322_v43 = vpop.f32.mrf.mxu0 }
 0x4f0   :  { %v3461_v49 = vadd.f32 %v7481_v27, %v3393_v23  ;;  %v3596_v52 = vrot.slane %v3595_v18, 2  ;;  %v3671_v3 = vsub.f32 1.0, %v3670_v47 }
 0x4f1   :  { %v2732_v1 = vpop.f32.mrf.mxu2 }
 0x4f2   :  { %v3525_v21 = vmax.f32 %v3461_v49, 0.0  ;;  %v2804_v5 = vadd.f32 %v2732_v1, %v2516_v4  ;;  %v3597_v56 = vadd.f32 %v3596_v52, %v3595_v18 }
 0x4f3   :  { %v3028_v63 = vpop.f32.mrf.mxu3 }
 0x4f4   :  { %v3653_v9 = vsel %vm3530_vm4, %v3525_v21, 0.0  ;;  %v3100_v41 = vadd.f32 %v3028_v63, %v2804_v5 }
 0x4f5   :  { %v3654_v14 = vadd.f32 %v3653_v9, %v3652_v17  ;;  %v3672_v17 = vmul.f32 %v4321_v62, %v3671_v3 }
 0x4f6   :  { %v3394_v31 = vadd.f32 %v3322_v43, %v3100_v41  ;;  %v3598_v43 = vrot.slane %v3597_v56, 1  ;;  %v4319_v41 = vld [vmem:[%s7795_s4] ss:$0 sm:$0xff] }
 0x4f7   :  { %v3325_v28 = vpop.f32.mrf.mxu0  ;;  %v3673_v49 = vadd.f32 %v4321_v62, %v3672_v17 }
 0x4f8   :  { %v3462_v22 = vadd.f32 %v7481_v27, %v3394_v31  ;;  %v3599_v1 = vadd.f32 %v3598_v43, %v3597_v56 }
 0x4f9   :  { %v2735_v6 = vpop.f32.mrf.mxu2  ;;  %v3675_v21 = vsel %vm3674_vm5, %v4321_v62, %v3673_v49 }
 0x4fa   :  { %v3526_v37 = vmax.f32 %v3462_v22, 0.0  ;;  %v2805_v35 = vadd.f32 %v2735_v6, %v2517_v44  ;;  %v3676_v5 = vmul.f32 %v3675_v21, %v3599_v1 }
 0x4fb   :  { %v3031_v8 = vpop.f32.mrf.mxu3 }
 0x4fc   :  { %v3655_v34 = vsel %vm3530_vm4, %v3526_v37, 0.0  ;;  %v3101_v36 = vadd.f32 %v3031_v8, %v2805_v35 }
 0x4fd   :  { %v3656_v39 = vadd.f32 %v3655_v34, %v3654_v14 }
 0x4fe   :  { %v3395_v13 = vadd.f32 %v3325_v28, %v3101_v36 }
 0x4ff   :  { %v3328_v29 = vpop.f32.mrf.mxu0 }
 0x500   :  { %v3463_v48 = vadd.f32 %v7481_v27, %v3395_v13 }
 0x501   :  { %v2738_v50 = vpop.f32.mrf.mxu2 }
 0x502   :  { %v3527_v51 = vmax.f32 %v3463_v48, 0.0  ;;  %v2806_v7 = vadd.f32 %v2738_v50, %v2518_v25 }
 0x503   :  { %v3034_v0 = vpop.f32.mrf.mxu3 }
 0x504   :  { %v3657_v53 = vsel %vm3530_vm4, %v3527_v51, 0.0  ;;  %v3102_v20 = vadd.f32 %v3034_v0, %v2806_v7 }
 0x505   :  { %v3658_v26 = vadd.f32 %v3657_v53, %v3656_v39 }
 0x506   :  { %v3396_v55 = vadd.f32 %v3328_v29, %v3102_v20 }
 0x507   :  { %v3331_v33 = vpop.f32.mrf.mxu0 }
 0x508   :  { %v3464_v58 = vadd.f32 %v7481_v27, %v3396_v55 }
 0x509   :  { %v2741_v12 = vpop.f32.mrf.mxu2 }
 0x50a   :  { %v3528_v42 = vmax.f32 %v3464_v58, 0.0  ;;  %v2807_v19 = vadd.f32 %v2741_v12, %v2519_v16 }
 0x50b   :  { %v3037_v11 = vpop.f32.mrf.mxu3 }
 0x50c   :  { %v3659_v24 = vsel %vm3530_vm4, %v3528_v42, 0.0  ;;  %v3103_v59 = vadd.f32 %v3037_v11, %v2807_v19 }
 0x50d   :  { %v3660_v38 = vadd.f32 %v3659_v24, %v3658_v26 }
 0x50e   :  { %v3397_v10 = vadd.f32 %v3331_v33, %v3103_v59 }
 0x510   :  { %v3465_v15 = vadd.f32 %v7481_v27, %v3397_v10 }
 0x512   :  { %v3529_v54 = vmax.f32 %v3465_v15, 0.0 }
 0x514   :  { %v3661_v40 = vsel %vm3530_vm4, %v3529_v54, 0.0 }
 0x515   :  { %v3662_v32 = vadd.f32 %v3661_v40, %v3660_v38 }
 0x517   :  { %v3663_v46 = vrot.slane %v3662_v32, 4 }
 0x519   :  { %v3664_v23 = vadd.f32 %v3663_v46, %v3662_v32 }
 0x51b   :  { %v3665_v4 = vrot.slane %v3664_v23, 2 }
 0x51d   :  { %v3666_v2 = vadd.f32 %v3665_v4, %v3664_v23 }
 0x51f   :  { %v3667_v30 = vrot.slane %v3666_v2, 1 }
 0x521   :  { %v3668_v27 = vadd.f32 %v3667_v30, %v3666_v2 }
 0x523   :  { %v3677_v63 = vmul.f32 %v3675_v21, %v3668_v27 }
 0x525   :  { %v3686_v9 = vsel %vm3685_vm6, %v3677_v63, %v3676_v5 }
 0x526   :  { %4312 = vmatmul.msk.f32.vlgmr.msrb.gmra.mxu1 %vm3530_vm4, %v3686_v9 }
 0x5a3   :  { %v3706_v14 = vpop.f32.mrf.mxu1 }
 0x5a4   :  { %v3707_v31 = vadd.f32 %v4319_v41, %v3706_v14 }
 0x5a6   :  { %3710 = vst.msk [vmem:[#allocation2] sm:$0x3] %vm3709_vm7, %v3707_v31 }
 0x5a7   :  { %3721 = dma.vmem_to_hbm [thread:$0]  %s3717_s27, 32, %s3719_s29, [#allocation3]  }
 0x5a8   :  { %4464 = dma.done.wait [#allocation3], 32  }
 0x5a9   :  { %4465 = vsyncadd [#allocation3], 4294967264 }
 0x5aa   :  { %3726 = vsyncpa [#allocation3], 1 }

</bundles_post_ra>
